<compile_context>
chip_gen: v5e
topology: v5e:2x2
jax: 0.10.0
libtpu: 0.0.40
codegen_flags: <defaults>
</compile_context>

<pallas_src>
import functools

import jax
import jax.numpy as jnp
from jax.experimental import pallas as pl
from jax.experimental.pallas import tpu as pltpu

# Fold the 3 kw taps into the matmul K dim only while K=C underfills the MXU
# systolic depth (128 on v5e; could be raised to 256 for v6e/v7x).
_FOLD_KW_MAX_C = 128


def _resnet_block_kernel(x_ref, w1_ref, w2_ref, o_ref, acc_ref, *, fold_kw):
    # x_ref : (1, H, W, C)   I/O dtype (f32 or bf16) — residual + conv1 input
    # w*_ref: (3, 3, C, C)   bf16, HWIO conv weights
    # o_ref : (1, H, W, C)   I/O dtype
    # acc_ref: (H*W, C)      f32 VMEM scratch accumulator (persistent)
    H, W, C = x_ref.shape[1], x_ref.shape[2], x_ref.shape[3]
    HW = H * W
    eps = 1e-5

    def reflect_pad(a):
        # ReflectionPad2d(1) (exclude-edge). a: (H, W, C) bf16 -> (H+2, W+2, C).
        a = jnp.concatenate([a[1:2], a, a[H - 2:H - 1]], axis=0)
        a = jnp.concatenate([a[:, 1:2], a, a[:, W - 2:W - 1]], axis=1)
        return a

    def conv3x3(ap, w_r):
        # ap: (H+2, W+2, C) bf16, w_r: (3, 3, C, C) bf16 -> (HW, C) f32 in acc_ref.
        acc_ref[...] = jnp.zeros_like(acc_ref)
        for ki in range(3):
            s = ap[ki:ki + H]                                     # (H, W+2, C)
            if fold_kw:
                # Small C: im2col along kw -> one (HW,3C)x(3C,C) matmul per kh
                # (keeps MXU K utilization when C alone underfills it).
                patch = jnp.concatenate(
                    [s[:, 0:W], s[:, 1:W + 1], s[:, 2:W + 2]], axis=-1
                ).reshape(HW, 3 * C)
                acc_ref[...] += jnp.dot(patch, w_r[ki].reshape(3 * C, C),
                                        preferred_element_type=jnp.float32)
            else:
                # Large C: MXU K already full at K=C; skip the (HW,3C) patch copy.
                for kj in range(3):
                    tap = s[:, kj:kj + W].reshape(HW, C)
                    acc_ref[...] += jnp.dot(tap, w_r[ki, kj],
                                            preferred_element_type=jnp.float32)
        return acc_ref[...]

    def instance_norm(a):
        # Per-channel stats over the spatial axis of (HW, C); shifted variance
        # (no E[x^2]-mean^2 cancellation). Biased var, eps=1e-5, affine=False.
        inv_n = 1.0 / HW
        mean = jnp.sum(a, axis=0, keepdims=True) * inv_n
        d = a - mean
        var = jnp.sum(d * d, axis=0, keepdims=True) * inv_n
        return d * jax.lax.rsqrt(var + eps)

    # conv1 -> InstanceNorm -> ReLU. Reflect pad done in-kernel (no side input).
    # Conv bias omitted: InstanceNorm's per-channel mean subtraction cancels it.
    xp = reflect_pad(x_ref[0].astype(jnp.bfloat16))
    y = instance_norm(conv3x3(xp, w1_ref[...]))
    y = jnp.maximum(y, 0.0)
    # TODO(synk): use_dropout=False; Dropout(0.5) omitted (identity at inference).

    # reflect pad -> conv2 -> InstanceNorm.
    yp = reflect_pad(y.astype(jnp.bfloat16).reshape(H, W, C))
    y = instance_norm(conv3x3(yp, w2_ref[...]))

    # Residual connection in f32; store in I/O dtype.
    o_ref[0] = (x_ref[0].astype(jnp.float32) + y.reshape(H, W, C)).astype(o_ref.dtype)


def _vmem_limit_bytes(H, W, C, io_itemsize, fold_kw):
    # Estimated footprint: double-buffered x/out blocks + weights, scratch acc,
    # and the largest in-kernel temporaries (padded bf16 copies, im2col patch,
    # f32 norm temps). Generous on purpose; checked against the device capacity.
    blocks = (H * W * C * io_itemsize) * 2 * 2          # x + out, double-buffered
    blocks += (3 * 3 * C * C * 2) * 2 * 2               # w1 + w2 (bf16), double-buffered
    scratch = H * W * C * 4                             # f32 accumulator
    temps = (H + 2) * (W + 2) * C * 2 * 2               # padded bf16 copies
    temps += H * W * C * 4 * 4                          # f32 temporaries (y, d, d*d, ...)
    if fold_kw:
        temps += H * W * 3 * C * 2                      # (HW, 3C) bf16 patch
    need = blocks + scratch + temps + (4 << 20)         # + headroom

    try:
        cap = int(pltpu.get_tpu_info().vmem_capacity_bytes)
    except Exception:                                   # conservative fallback
        cap = 64 * 1024 * 1024
    budget = int(cap * 0.9)
    if need > budget:
        raise ValueError(
            f"ResnetBlock whole-image block needs ~{need >> 20} MiB VMEM but only "
            f"~{budget >> 20} MiB is available on this chip; this shape requires the "
            "row-chunked streaming variant (see TODO at top of file)."
        )
    return int(min(max(need, 32 * 1024 * 1024), budget))


def resnet_block_nhwc(x, w1, w2):
    """x: (B, H, W, C) f32 or bf16; w1/w2: (3, 3, Cin, Cout) HWIO conv weights."""
    B, H, W, C = x.shape
    assert H >= 2 and W >= 2, "reflect padding requires H >= 2 and W >= 2"
    assert w1.shape == (3, 3, C, C) and w2.shape == (3, 3, C, C)

    fold_kw = C < _FOLD_KW_MAX_C
    w1b = w1.astype(jnp.bfloat16)
    w2b = w2.astype(jnp.bfloat16)
    vmem_limit = _vmem_limit_bytes(H, W, C, x.dtype.itemsize, fold_kw)

    kernel = functools.partial(_resnet_block_kernel, fold_kw=fold_kw)
    return pl.pallas_call(
        kernel,
        out_shape=jax.ShapeDtypeStruct((B, H, W, C), x.dtype),
        grid_spec=pltpu.PrefetchScalarGridSpec(
            num_scalar_prefetch=0,
            grid=(B,),
            in_specs=[
                pl.BlockSpec((1, H, W, C), lambda b: (b, 0, 0, 0)),
                pl.BlockSpec((3, 3, C, C), lambda b: (0, 0, 0, 0)),
                pl.BlockSpec((3, 3, C, C), lambda b: (0, 0, 0, 0)),
            ],
            out_specs=pl.BlockSpec((1, H, W, C), lambda b: (b, 0, 0, 0)),
            scratch_shapes=[pltpu.VMEM((H * W, C), jnp.float32)],
        ),
        compiler_params=pltpu.CompilerParams(
            dimension_semantics=("parallel",),
            vmem_limit_bytes=vmem_limit,
        ),
    )(x, w1b, w2b)


def resnet_block_nchw(x_nchw, w1, w2):
    # Convenience entry for PyTorch-layout callers. Prefer resnet_block_nhwc and
    # keep the whole chain NHWC: each transpose here is a full HBM relayout.
    x_nhwc = jnp.transpose(x_nchw, (0, 2, 3, 1))
    y_nhwc = resnet_block_nhwc(x_nhwc, w1, w2)
    return jnp.transpose(y_nhwc, (0, 3, 1, 2))


def _ref_forward_nhwc(x, w1, b1, w2, b2):
    # Pure-JAX f32 reference (includes the conv biases like the PyTorch module;
    # InstanceNorm cancels them, so the bias-free kernel must still match).
    def pad(a):
        return jnp.pad(a, ((0, 0), (1, 1), (1, 1), (0, 0)), mode="reflect")

    def conv(a, w, b):
        return jax.lax.conv_general_dilated(
            pad(a), w, window_strides=(1, 1), padding="VALID",
            dimension_numbers=("NHWC", "HWIO", "NHWC"),
        ) + b

    def inorm(a, eps=1e-5):
        m = a.mean(axis=(1, 2), keepdims=True)
        v = ((a - m) ** 2).mean(axis=(1, 2), keepdims=True)
        return (a - m) / jnp.sqrt(v + eps)

    y = conv(x, w1, b1)
    y = inorm(y)
    y = jnp.maximum(y, 0.0)
    y = conv(y, w2, b2)
    y = inorm(y)
    return x + y


if __name__ == "__main__":
    # Small correctness shapes only (NOT perf-representative; production CycleGAN
    # blocks run at C=128/256 where the non-folded MXU path is taken).
    B, C, H, W = 2, 4, 16, 16
    key = jax.random.PRNGKey(0)
    k_x, k_w1, k_b1, k_w2, k_b2 = jax.random.split(key, 5)

    x = jax.random.normal(k_x, (B, H, W, C), dtype=jnp.float32)  # NHWC activations

    # Conv2d weights: PyTorch layout (Cout, Cin, kh, kw) -> HWIO (kh, kw, Cin, Cout).
    w1_t = jax.random.normal(k_w1, (C, C, 3, 3), dtype=jnp.float32) * 0.1
    w2_t = jax.random.normal(k_w2, (C, C, 3, 3), dtype=jnp.float32) * 0.1
    w1 = jnp.transpose(w1_t, (2, 3, 1, 0))
    w2 = jnp.transpose(w2_t, (2, 3, 1, 0))
    b1 = jax.random.normal(k_b1, (1, C), dtype=jnp.float32) * 0.1
    b2 = jax.random.normal(k_b2, (1, C), dtype=jnp.float32) * 0.1

    out = jax.block_until_ready(resnet_block_nhwc(x, w1, w2))
    ref = _ref_forward_nhwc(x, w1, b1, w2, b2)
    assert out.shape == (B, H, W, C)
    # Tolerance reflects bf16 MXU operands (f32 accumulation).
    assert jnp.allclose(out, ref, atol=5e-2, rtol=5e-2), "mismatch vs reference (f32 I/O)"

    # bf16 I/O path (halves residual/out HBM traffic): smoke-check only.
    out_bf16 = jax.block_until_ready(resnet_block_nhwc(x.astype(jnp.bfloat16), w1, w2))
    assert out_bf16.shape == (B, H, W, C) and out_bf16.dtype == jnp.bfloat16
    assert bool(jnp.all(jnp.isfinite(out_bf16.astype(jnp.float32))))

    # NCHW convenience wrapper (PyTorch layout) should match as well.
    out_nchw = jax.block_until_ready(
        resnet_block_nchw(jnp.transpose(x, (0, 3, 1, 2)), w1, w2))
    assert jnp.allclose(jnp.transpose(out_nchw, (0, 2, 3, 1)), ref,
                        atol=5e-2, rtol=5e-2), "mismatch vs reference (NCHW entry)"

    print("KERNEL_OK")
</pallas_src>

<mosaic_0001>
module attributes {stable_mosaic.version = 11 : i64} {
  func.func @_resnet_block_kernel(%arg0: i32, %arg1: memref<1x16x16x4xf32, #tpu.memory_space<vmem>>, %arg2: memref<3x3x4x4xbf16, #tpu.memory_space<vmem>>, %arg3: memref<3x3x4x4xbf16, #tpu.memory_space<vmem>>, %arg4: memref<1x16x16x4xf32, #tpu.memory_space<vmem>>, %arg5: memref<256x4xf32, #tpu.memory_space<vmem>>) attributes {dimension_semantics = [#tpu.dimension_semantics<parallel>], iteration_bounds = array<i64: 2>, scalar_prefetch = 0 : i64, scratch_operands = 1 : i64, tpu.core_type = #tpu.core_type<tc>, window_params = [{transform_indices = @transform_0, window_bounds = array<i64: 1, 16, 16, 4>}, {pipeline_mode = #tpu.pipeline_mode<synchronous>, transform_indices = @transform_1, window_bounds = array<i64: 3, 3, 4, 4>}, {pipeline_mode = #tpu.pipeline_mode<synchronous>, transform_indices = @transform_2, window_bounds = array<i64: 3, 3, 4, 4>}, {transform_indices = @transform_3, window_bounds = array<i64: 1, 16, 16, 4>}]} {
    %c0 = arith.constant 0 : index
    %c0_0 = arith.constant 0 : index
    %c0_1 = arith.constant 0 : index
    %c0_2 = arith.constant 0 : index
    %0 = vector.load %arg1[%c0, %c0_0, %c0_1, %c0_2] : memref<1x16x16x4xf32, #tpu.memory_space<vmem>>, vector<1x16x16x4xf32>
    %1 = vector.shape_cast %0 : vector<1x16x16x4xf32> to vector<16x16x4xf32>
    %2 = arith.truncf %1 : vector<16x16x4xf32> to vector<16x16x4xbf16>
    %3 = vector.extract_strided_slice %2 {offsets = [1, 0, 0], sizes = [1, 16, 4], strides = [1, 1, 1]} : vector<16x16x4xbf16> to vector<1x16x4xbf16>
    %4 = vector.extract_strided_slice %2 {offsets = [14, 0, 0], sizes = [1, 16, 4], strides = [1, 1, 1]} : vector<16x16x4xbf16> to vector<1x16x4xbf16>
    %5 = tpu.concatenate %3, %2, %4 in 0 : vector<1x16x4xbf16>, vector<16x16x4xbf16>, vector<1x16x4xbf16> -> vector<18x16x4xbf16>
    %6 = vector.extract_strided_slice %5 {offsets = [0, 1, 0], sizes = [18, 1, 4], strides = [1, 1, 1]} : vector<18x16x4xbf16> to vector<18x1x4xbf16>
    %7 = vector.extract_strided_slice %5 {offsets = [0, 14, 0], sizes = [18, 1, 4], strides = [1, 1, 1]} : vector<18x16x4xbf16> to vector<18x1x4xbf16>
    %8 = tpu.concatenate %6, %5, %7 in 1 : vector<18x1x4xbf16>, vector<18x16x4xbf16>, vector<18x1x4xbf16> -> vector<18x18x4xbf16>
    %c0_3 = arith.constant 0 : index
    %c0_4 = arith.constant 0 : index
    %c0_5 = arith.constant 0 : index
    %c0_6 = arith.constant 0 : index
    %9 = vector.load %arg2[%c0_3, %c0_4, %c0_5, %c0_6] : memref<3x3x4x4xbf16, #tpu.memory_space<vmem>>, vector<3x3x4x4xbf16>
    %cst = arith.constant 0.000000e+00 : f32
    %10 = vector.broadcast %cst : f32 to vector<256x4xf32>
    %c0_7 = arith.constant 0 : index
    %c0_8 = arith.constant 0 : index
    %11 = vector.load %arg5[%c0_7, %c0_8] : memref<256x4xf32, #tpu.memory_space<vmem>>, vector<256x4xf32>
    tpu.vector_store %arg5[%c0_7, %c0_8], %10 {strides = array<i32>} : memref<256x4xf32, #tpu.memory_space<vmem>>, vector<256x4xf32>,
    %12 = vector.extract_strided_slice %8 {offsets = [0, 0, 0], sizes = [16, 18, 4], strides = [1, 1, 1]} : vector<18x18x4xbf16> to vector<16x18x4xbf16>
    %13 = vector.extract_strided_slice %12 {offsets = [0, 0, 0], sizes = [16, 16, 4], strides = [1, 1, 1]} : vector<16x18x4xbf16> to vector<16x16x4xbf16>
    %14 = vector.extract_strided_slice %12 {offsets = [0, 1, 0], sizes = [16, 16, 4], strides = [1, 1, 1]} : vector<16x18x4xbf16> to vector<16x16x4xbf16>
    %15 = vector.extract_strided_slice %12 {offsets = [0, 2, 0], sizes = [16, 16, 4], strides = [1, 1, 1]} : vector<16x18x4xbf16> to vector<16x16x4xbf16>
    %16 = tpu.concatenate %13, %14, %15 in 2 : vector<16x16x4xbf16>, vector<16x16x4xbf16>, vector<16x16x4xbf16> -> vector<16x16x12xbf16>
    %17 = vector.shape_cast %16 : vector<16x16x12xbf16> to vector<256x12xbf16>
    %c0_9 = arith.constant 0 : index
    %c0_10 = arith.constant 0 : index
    %18 = vector.load %arg5[%c0_9, %c0_10] : memref<256x4xf32, #tpu.memory_space<vmem>>, vector<256x4xf32>
    %19 = vector.extract_strided_slice %9 {offsets = [0, 0, 0, 0], sizes = [1, 3, 4, 4], strides = [1, 1, 1, 1]} : vector<3x3x4x4xbf16> to vector<1x3x4x4xbf16>
    %20 = vector.shape_cast %19 : vector<1x3x4x4xbf16> to vector<3x4x4xbf16>
    %21 = vector.shape_cast %20 : vector<3x4x4xbf16> to vector<12x4xbf16>
    %cst_11 = arith.constant dense<0.000000e+00> : vector<256x4xf32>
    %22 = tpu.matmul %17, %21, %cst_11 {dimension_numbers = #tpu.dot_dimension_numbers<[1], [0], [0], [1], [0, 0, 1, 1], [], []>} : vector<256x12xbf16>, vector<12x4xbf16>, vector<256x4xf32> -> vector<256x4xf32>
    %23 = arith.addf %18, %22 : vector<256x4xf32>
    %c0_12 = arith.constant 0 : index
    %c0_13 = arith.constant 0 : index
    %24 = vector.load %arg5[%c0_12, %c0_13] : memref<256x4xf32, #tpu.memory_space<vmem>>, vector<256x4xf32>
    tpu.vector_store %arg5[%c0_12, %c0_13], %23 {strides = array<i32>} : memref<256x4xf32, #tpu.memory_space<vmem>>, vector<256x4xf32>,
    %25 = vector.extract_strided_slice %8 {offsets = [1, 0, 0], sizes = [16, 18, 4], strides = [1, 1, 1]} : vector<18x18x4xbf16> to vector<16x18x4xbf16>
    %26 = vector.extract_strided_slice %25 {offsets = [0, 0, 0], sizes = [16, 16, 4], strides = [1, 1, 1]} : vector<16x18x4xbf16> to vector<16x16x4xbf16>
    %27 = vector.extract_strided_slice %25 {offsets = [0, 1, 0], sizes = [16, 16, 4], strides = [1, 1, 1]} : vector<16x18x4xbf16> to vector<16x16x4xbf16>
    %28 = vector.extract_strided_slice %25 {offsets = [0, 2, 0], sizes = [16, 16, 4], strides = [1, 1, 1]} : vector<16x18x4xbf16> to vector<16x16x4xbf16>
    %29 = tpu.concatenate %26, %27, %28 in 2 : vector<16x16x4xbf16>, vector<16x16x4xbf16>, vector<16x16x4xbf16> -> vector<16x16x12xbf16>
    %30 = vector.shape_cast %29 : vector<16x16x12xbf16> to vector<256x12xbf16>
    %c0_14 = arith.constant 0 : index
    %c0_15 = arith.constant 0 : index
    %31 = vector.load %arg5[%c0_14, %c0_15] : memref<256x4xf32, #tpu.memory_space<vmem>>, vector<256x4xf32>
    %32 = vector.extract_strided_slice %9 {offsets = [1, 0, 0, 0], sizes = [1, 3, 4, 4], strides = [1, 1, 1, 1]} : vector<3x3x4x4xbf16> to vector<1x3x4x4xbf16>
    %33 = vector.shape_cast %32 : vector<1x3x4x4xbf16> to vector<3x4x4xbf16>
    %34 = vector.shape_cast %33 : vector<3x4x4xbf16> to vector<12x4xbf16>
    %cst_16 = arith.constant dense<0.000000e+00> : vector<256x4xf32>
    %35 = tpu.matmul %30, %34, %cst_16 {dimension_numbers = #tpu.dot_dimension_numbers<[1], [0], [0], [1], [0, 0, 1, 1], [], []>} : vector<256x12xbf16>, vector<12x4xbf16>, vector<256x4xf32> -> vector<256x4xf32>
    %36 = arith.addf %31, %35 : vector<256x4xf32>
    %c0_17 = arith.constant 0 : index
    %c0_18 = arith.constant 0 : index
    %37 = vector.load %arg5[%c0_17, %c0_18] : memref<256x4xf32, #tpu.memory_space<vmem>>, vector<256x4xf32>
    tpu.vector_store %arg5[%c0_17, %c0_18], %36 {strides = array<i32>} : memref<256x4xf32, #tpu.memory_space<vmem>>, vector<256x4xf32>,
    %38 = vector.extract_strided_slice %8 {offsets = [2, 0, 0], sizes = [16, 18, 4], strides = [1, 1, 1]} : vector<18x18x4xbf16> to vector<16x18x4xbf16>
    %39 = vector.extract_strided_slice %38 {offsets = [0, 0, 0], sizes = [16, 16, 4], strides = [1, 1, 1]} : vector<16x18x4xbf16> to vector<16x16x4xbf16>
    %40 = vector.extract_strided_slice %38 {offsets = [0, 1, 0], sizes = [16, 16, 4], strides = [1, 1, 1]} : vector<16x18x4xbf16> to vector<16x16x4xbf16>
    %41 = vector.extract_strided_slice %38 {offsets = [0, 2, 0], sizes = [16, 16, 4], strides = [1, 1, 1]} : vector<16x18x4xbf16> to vector<16x16x4xbf16>
    %42 = tpu.concatenate %39, %40, %41 in 2 : vector<16x16x4xbf16>, vector<16x16x4xbf16>, vector<16x16x4xbf16> -> vector<16x16x12xbf16>
    %43 = vector.shape_cast %42 : vector<16x16x12xbf16> to vector<256x12xbf16>
    %c0_19 = arith.constant 0 : index
    %c0_20 = arith.constant 0 : index
    %44 = vector.load %arg5[%c0_19, %c0_20] : memref<256x4xf32, #tpu.memory_space<vmem>>, vector<256x4xf32>
    %45 = vector.extract_strided_slice %9 {offsets = [2, 0, 0, 0], sizes = [1, 3, 4, 4], strides = [1, 1, 1, 1]} : vector<3x3x4x4xbf16> to vector<1x3x4x4xbf16>
    %46 = vector.shape_cast %45 : vector<1x3x4x4xbf16> to vector<3x4x4xbf16>
    %47 = vector.shape_cast %46 : vector<3x4x4xbf16> to vector<12x4xbf16>
    %cst_21 = arith.constant dense<0.000000e+00> : vector<256x4xf32>
    %48 = tpu.matmul %43, %47, %cst_21 {dimension_numbers = #tpu.dot_dimension_numbers<[1], [0], [0], [1], [0, 0, 1, 1], [], []>} : vector<256x12xbf16>, vector<12x4xbf16>, vector<256x4xf32> -> vector<256x4xf32>
    %49 = arith.addf %44, %48 : vector<256x4xf32>
    %c0_22 = arith.constant 0 : index
    %c0_23 = arith.constant 0 : index
    %50 = vector.load %arg5[%c0_22, %c0_23] : memref<256x4xf32, #tpu.memory_space<vmem>>, vector<256x4xf32>
    tpu.vector_store %arg5[%c0_22, %c0_23], %49 {strides = array<i32>} : memref<256x4xf32, #tpu.memory_space<vmem>>, vector<256x4xf32>,
    %c0_24 = arith.constant 0 : index
    %c0_25 = arith.constant 0 : index
    %51 = vector.load %arg5[%c0_24, %c0_25] : memref<256x4xf32, #tpu.memory_space<vmem>>, vector<256x4xf32>
    %cst_26 = arith.constant dense<0.000000e+00> : vector<4xf32>
    %52 = vector.multi_reduction <add>, %51, %cst_26 [0] : vector<256x4xf32> to vector<4xf32>
    %53 = vector.shape_cast %52 : vector<4xf32> to vector<1x4xf32>
    %cst_27 = arith.constant 3.906250e-03 : f32
    %54 = vector.broadcast %cst_27 : f32 to vector<1x4xf32>
    %55 = arith.mulf %53, %54 : vector<1x4xf32>
    %56 = vector.broadcast %55 : vector<1x4xf32> to vector<256x4xf32>
    %57 = arith.subf %51, %56 : vector<256x4xf32>
    %58 = arith.mulf %57, %57 : vector<256x4xf32>
    %cst_28 = arith.constant dense<0.000000e+00> : vector<4xf32>
    %59 = vector.multi_reduction <add>, %58, %cst_28 [0] : vector<256x4xf32> to vector<4xf32>
    %60 = vector.shape_cast %59 : vector<4xf32> to vector<1x4xf32>
    %cst_29 = arith.constant 3.906250e-03 : f32
    %61 = vector.broadcast %cst_29 : f32 to vector<1x4xf32>
    %62 = arith.mulf %60, %61 : vector<1x4xf32>
    %cst_30 = arith.constant 9.99999974E-6 : f32
    %63 = vector.broadcast %cst_30 : f32 to vector<1x4xf32>
    %64 = arith.addf %62, %63 : vector<1x4xf32>
    %65 = math.rsqrt %64 : vector<1x4xf32>
    %66 = vector.broadcast %65 : vector<1x4xf32> to vector<256x4xf32>
    %67 = arith.mulf %57, %66 : vector<256x4xf32>
    %cst_31 = arith.constant 0.000000e+00 : f32
    %68 = vector.broadcast %cst_31 : f32 to vector<256x4xf32>
    %69 = arith.maximumf %67, %68 : vector<256x4xf32>
    %70 = arith.truncf %69 : vector<256x4xf32> to vector<256x4xbf16>
    %71 = vector.shape_cast %70 : vector<256x4xbf16> to vector<16x16x4xbf16>
    %72 = vector.extract_strided_slice %71 {offsets = [1, 0, 0], sizes = [1, 16, 4], strides = [1, 1, 1]} : vector<16x16x4xbf16> to vector<1x16x4xbf16>
    %73 = vector.extract_strided_slice %71 {offsets = [14, 0, 0], sizes = [1, 16, 4], strides = [1, 1, 1]} : vector<16x16x4xbf16> to vector<1x16x4xbf16>
    %74 = tpu.concatenate %72, %71, %73 in 0 : vector<1x16x4xbf16>, vector<16x16x4xbf16>, vector<1x16x4xbf16> -> vector<18x16x4xbf16>
    %75 = vector.extract_strided_slice %74 {offsets = [0, 1, 0], sizes = [18, 1, 4], strides = [1, 1, 1]} : vector<18x16x4xbf16> to vector<18x1x4xbf16>
    %76 = vector.extract_strided_slice %74 {offsets = [0, 14, 0], sizes = [18, 1, 4], strides = [1, 1, 1]} : vector<18x16x4xbf16> to vector<18x1x4xbf16>
    %77 = tpu.concatenate %75, %74, %76 in 1 : vector<18x1x4xbf16>, vector<18x16x4xbf16>, vector<18x1x4xbf16> -> vector<18x18x4xbf16>
    %c0_32 = arith.constant 0 : index
    %c0_33 = arith.constant 0 : index
    %c0_34 = arith.constant 0 : index
    %c0_35 = arith.constant 0 : index
    %78 = vector.load %arg3[%c0_32, %c0_33, %c0_34, %c0_35] : memref<3x3x4x4xbf16, #tpu.memory_space<vmem>>, vector<3x3x4x4xbf16>
    %cst_36 = arith.constant 0.000000e+00 : f32
    %79 = vector.broadcast %cst_36 : f32 to vector<256x4xf32>
    %c0_37 = arith.constant 0 : index
    %c0_38 = arith.constant 0 : index
    %80 = vector.load %arg5[%c0_37, %c0_38] : memref<256x4xf32, #tpu.memory_space<vmem>>, vector<256x4xf32>
    tpu.vector_store %arg5[%c0_37, %c0_38], %79 {strides = array<i32>} : memref<256x4xf32, #tpu.memory_space<vmem>>, vector<256x4xf32>,
    %81 = vector.extract_strided_slice %77 {offsets = [0, 0, 0], sizes = [16, 18, 4], strides = [1, 1, 1]} : vector<18x18x4xbf16> to vector<16x18x4xbf16>
    %82 = vector.extract_strided_slice %81 {offsets = [0, 0, 0], sizes = [16, 16, 4], strides = [1, 1, 1]} : vector<16x18x4xbf16> to vector<16x16x4xbf16>
    %83 = vector.extract_strided_slice %81 {offsets = [0, 1, 0], sizes = [16, 16, 4], strides = [1, 1, 1]} : vector<16x18x4xbf16> to vector<16x16x4xbf16>
    %84 = vector.extract_strided_slice %81 {offsets = [0, 2, 0], sizes = [16, 16, 4], strides = [1, 1, 1]} : vector<16x18x4xbf16> to vector<16x16x4xbf16>
    %85 = tpu.concatenate %82, %83, %84 in 2 : vector<16x16x4xbf16>, vector<16x16x4xbf16>, vector<16x16x4xbf16> -> vector<16x16x12xbf16>
    %86 = vector.shape_cast %85 : vector<16x16x12xbf16> to vector<256x12xbf16>
    %c0_39 = arith.constant 0 : index
    %c0_40 = arith.constant 0 : index
    %87 = vector.load %arg5[%c0_39, %c0_40] : memref<256x4xf32, #tpu.memory_space<vmem>>, vector<256x4xf32>
    %88 = vector.extract_strided_slice %78 {offsets = [0, 0, 0, 0], sizes = [1, 3, 4, 4], strides = [1, 1, 1, 1]} : vector<3x3x4x4xbf16> to vector<1x3x4x4xbf16>
    %89 = vector.shape_cast %88 : vector<1x3x4x4xbf16> to vector<3x4x4xbf16>
    %90 = vector.shape_cast %89 : vector<3x4x4xbf16> to vector<12x4xbf16>
    %cst_41 = arith.constant dense<0.000000e+00> : vector<256x4xf32>
    %91 = tpu.matmul %86, %90, %cst_41 {dimension_numbers = #tpu.dot_dimension_numbers<[1], [0], [0], [1], [0, 0, 1, 1], [], []>} : vector<256x12xbf16>, vector<12x4xbf16>, vector<256x4xf32> -> vector<256x4xf32>
    %92 = arith.addf %87, %91 : vector<256x4xf32>
    %c0_42 = arith.constant 0 : index
    %c0_43 = arith.constant 0 : index
    %93 = vector.load %arg5[%c0_42, %c0_43] : memref<256x4xf32, #tpu.memory_space<vmem>>, vector<256x4xf32>
    tpu.vector_store %arg5[%c0_42, %c0_43], %92 {strides = array<i32>} : memref<256x4xf32, #tpu.memory_space<vmem>>, vector<256x4xf32>,
    %94 = vector.extract_strided_slice %77 {offsets = [1, 0, 0], sizes = [16, 18, 4], strides = [1, 1, 1]} : vector<18x18x4xbf16> to vector<16x18x4xbf16>
    %95 = vector.extract_strided_slice %94 {offsets = [0, 0, 0], sizes = [16, 16, 4], strides = [1, 1, 1]} : vector<16x18x4xbf16> to vector<16x16x4xbf16>
    %96 = vector.extract_strided_slice %94 {offsets = [0, 1, 0], sizes = [16, 16, 4], strides = [1, 1, 1]} : vector<16x18x4xbf16> to vector<16x16x4xbf16>
    %97 = vector.extract_strided_slice %94 {offsets = [0, 2, 0], sizes = [16, 16, 4], strides = [1, 1, 1]} : vector<16x18x4xbf16> to vector<16x16x4xbf16>
    %98 = tpu.concatenate %95, %96, %97 in 2 : vector<16x16x4xbf16>, vector<16x16x4xbf16>, vector<16x16x4xbf16> -> vector<16x16x12xbf16>
    %99 = vector.shape_cast %98 : vector<16x16x12xbf16> to vector<256x12xbf16>
    %c0_44 = arith.constant 0 : index
    %c0_45 = arith.constant 0 : index
    %100 = vector.load %arg5[%c0_44, %c0_45] : memref<256x4xf32, #tpu.memory_space<vmem>>, vector<256x4xf32>
    %101 = vector.extract_strided_slice %78 {offsets = [1, 0, 0, 0], sizes = [1, 3, 4, 4], strides = [1, 1, 1, 1]} : vector<3x3x4x4xbf16> to vector<1x3x4x4xbf16>
    %102 = vector.shape_cast %101 : vector<1x3x4x4xbf16> to vector<3x4x4xbf16>
    %103 = vector.shape_cast %102 : vector<3x4x4xbf16> to vector<12x4xbf16>
    %cst_46 = arith.constant dense<0.000000e+00> : vector<256x4xf32>
    %104 = tpu.matmul %99, %103, %cst_46 {dimension_numbers = #tpu.dot_dimension_numbers<[1], [0], [0], [1], [0, 0, 1, 1], [], []>} : vector<256x12xbf16>, vector<12x4xbf16>, vector<256x4xf32> -> vector<256x4xf32>
    %105 = arith.addf %100, %104 : vector<256x4xf32>
    %c0_47 = arith.constant 0 : index
    %c0_48 = arith.constant 0 : index
    %106 = vector.load %arg5[%c0_47, %c0_48] : memref<256x4xf32, #tpu.memory_space<vmem>>, vector<256x4xf32>
    tpu.vector_store %arg5[%c0_47, %c0_48], %105 {strides = array<i32>} : memref<256x4xf32, #tpu.memory_space<vmem>>, vector<256x4xf32>,
    %107 = vector.extract_strided_slice %77 {offsets = [2, 0, 0], sizes = [16, 18, 4], strides = [1, 1, 1]} : vector<18x18x4xbf16> to vector<16x18x4xbf16>
    %108 = vector.extract_strided_slice %107 {offsets = [0, 0, 0], sizes = [16, 16, 4], strides = [1, 1, 1]} : vector<16x18x4xbf16> to vector<16x16x4xbf16>
    %109 = vector.extract_strided_slice %107 {offsets = [0, 1, 0], sizes = [16, 16, 4], strides = [1, 1, 1]} : vector<16x18x4xbf16> to vector<16x16x4xbf16>
    %110 = vector.extract_strided_slice %107 {offsets = [0, 2, 0], sizes = [16, 16, 4], strides = [1, 1, 1]} : vector<16x18x4xbf16> to vector<16x16x4xbf16>
    %111 = tpu.concatenate %108, %109, %110 in 2 : vector<16x16x4xbf16>, vector<16x16x4xbf16>, vector<16x16x4xbf16> -> vector<16x16x12xbf16>
    %112 = vector.shape_cast %111 : vector<16x16x12xbf16> to vector<256x12xbf16>
    %c0_49 = arith.constant 0 : index
    %c0_50 = arith.constant 0 : index
    %113 = vector.load %arg5[%c0_49, %c0_50] : memref<256x4xf32, #tpu.memory_space<vmem>>, vector<256x4xf32>
    %114 = vector.extract_strided_slice %78 {offsets = [2, 0, 0, 0], sizes = [1, 3, 4, 4], strides = [1, 1, 1, 1]} : vector<3x3x4x4xbf16> to vector<1x3x4x4xbf16>
    %115 = vector.shape_cast %114 : vector<1x3x4x4xbf16> to vector<3x4x4xbf16>
    %116 = vector.shape_cast %115 : vector<3x4x4xbf16> to vector<12x4xbf16>
    %cst_51 = arith.constant dense<0.000000e+00> : vector<256x4xf32>
    %117 = tpu.matmul %112, %116, %cst_51 {dimension_numbers = #tpu.dot_dimension_numbers<[1], [0], [0], [1], [0, 0, 1, 1], [], []>} : vector<256x12xbf16>, vector<12x4xbf16>, vector<256x4xf32> -> vector<256x4xf32>
    %118 = arith.addf %113, %117 : vector<256x4xf32>
    %c0_52 = arith.constant 0 : index
    %c0_53 = arith.constant 0 : index
    %119 = vector.load %arg5[%c0_52, %c0_53] : memref<256x4xf32, #tpu.memory_space<vmem>>, vector<256x4xf32>
    tpu.vector_store %arg5[%c0_52, %c0_53], %118 {strides = array<i32>} : memref<256x4xf32, #tpu.memory_space<vmem>>, vector<256x4xf32>,
    %c0_54 = arith.constant 0 : index
    %c0_55 = arith.constant 0 : index
    %120 = vector.load %arg5[%c0_54, %c0_55] : memref<256x4xf32, #tpu.memory_space<vmem>>, vector<256x4xf32>
    %cst_56 = arith.constant dense<0.000000e+00> : vector<4xf32>
    %121 = vector.multi_reduction <add>, %120, %cst_56 [0] : vector<256x4xf32> to vector<4xf32>
    %122 = vector.shape_cast %121 : vector<4xf32> to vector<1x4xf32>
    %cst_57 = arith.constant 3.906250e-03 : f32
    %123 = vector.broadcast %cst_57 : f32 to vector<1x4xf32>
    %124 = arith.mulf %122, %123 : vector<1x4xf32>
    %125 = vector.broadcast %124 : vector<1x4xf32> to vector<256x4xf32>
    %126 = arith.subf %120, %125 : vector<256x4xf32>
    %127 = arith.mulf %126, %126 : vector<256x4xf32>
    %cst_58 = arith.constant dense<0.000000e+00> : vector<4xf32>
    %128 = vector.multi_reduction <add>, %127, %cst_58 [0] : vector<256x4xf32> to vector<4xf32>
    %129 = vector.shape_cast %128 : vector<4xf32> to vector<1x4xf32>
    %cst_59 = arith.constant 3.906250e-03 : f32
    %130 = vector.broadcast %cst_59 : f32 to vector<1x4xf32>
    %131 = arith.mulf %129, %130 : vector<1x4xf32>
    %cst_60 = arith.constant 9.99999974E-6 : f32
    %132 = vector.broadcast %cst_60 : f32 to vector<1x4xf32>
    %133 = arith.addf %131, %132 : vector<1x4xf32>
    %134 = math.rsqrt %133 : vector<1x4xf32>
    %135 = vector.broadcast %134 : vector<1x4xf32> to vector<256x4xf32>
    %136 = arith.mulf %126, %135 : vector<256x4xf32>
    %c0_61 = arith.constant 0 : index
    %c0_62 = arith.constant 0 : index
    %c0_63 = arith.constant 0 : index
    %c0_64 = arith.constant 0 : index
    %137 = vector.load %arg1[%c0_61, %c0_62, %c0_63, %c0_64] : memref<1x16x16x4xf32, #tpu.memory_space<vmem>>, vector<1x16x16x4xf32>
    %138 = vector.shape_cast %137 : vector<1x16x16x4xf32> to vector<16x16x4xf32>
    %139 = vector.shape_cast %136 : vector<256x4xf32> to vector<16x16x4xf32>
    %140 = arith.addf %138, %139 : vector<16x16x4xf32>
    %c0_65 = arith.constant 0 : index
    %c0_66 = arith.constant 0 : index
    %c0_67 = arith.constant 0 : index
    %c0_68 = arith.constant 0 : index
    %141 = vector.load %arg4[%c0_65, %c0_66, %c0_67, %c0_68] : memref<1x16x16x4xf32, #tpu.memory_space<vmem>>, vector<1x16x16x4xf32>
    %142 = vector.shape_cast %141 : vector<1x16x16x4xf32> to vector<16x16x4xf32>
    %143 = vector.shape_cast %140 : vector<16x16x4xf32> to vector<1x16x16x4xf32>
    tpu.vector_store %arg4[%c0_65, %c0_66, %c0_67, %c0_68], %143 {strides = array<i32>} : memref<1x16x16x4xf32, #tpu.memory_space<vmem>>, vector<1x16x16x4xf32>,
    return
  }
  func.func @transform_0(%arg0: i32) -> (i32, i32, i32, i32) {
    %c0_i32 = arith.constant 0 : i32
    %c0_i32_0 = arith.constant 0 : i32
    %c0_i32_1 = arith.constant 0 : i32
    %c0_i32_2 = arith.constant 0 : i32
    return %arg0, %c0_i32, %c0_i32_0, %c0_i32_1 : i32, i32, i32, i32
  }
  func.func @transform_1(%arg0: i32) -> (i32, i32, i32, i32) {
    %c0_i32 = arith.constant 0 : i32
    %c0_i32_0 = arith.constant 0 : i32
    %c0_i32_1 = arith.constant 0 : i32
    %c0_i32_2 = arith.constant 0 : i32
    %c0_i32_3 = arith.constant 0 : i32
    return %c0_i32, %c0_i32_0, %c0_i32_1, %c0_i32_2 : i32, i32, i32, i32
  }
  func.func @transform_2(%arg0: i32) -> (i32, i32, i32, i32) {
    %c0_i32 = arith.constant 0 : i32
    %c0_i32_0 = arith.constant 0 : i32
    %c0_i32_1 = arith.constant 0 : i32
    %c0_i32_2 = arith.constant 0 : i32
    %c0_i32_3 = arith.constant 0 : i32
    return %c0_i32, %c0_i32_0, %c0_i32_1, %c0_i32_2 : i32, i32, i32, i32
  }
  func.func @transform_3(%arg0: i32) -> (i32, i32, i32, i32) {
    %c0_i32 = arith.constant 0 : i32
    %c0_i32_0 = arith.constant 0 : i32
    %c0_i32_1 = arith.constant 0 : i32
    %c0_i32_2 = arith.constant 0 : i32
    return %arg0, %c0_i32, %c0_i32_0, %c0_i32_1 : i32, i32, i32, i32
  }
}

</mosaic_0001>

<bundles_post_ra>
// kernel: tpu_custom_call.1
= control target key start
LH: loop header
LB: loop body
LE: loop exit
PB: predicated region body
PF: predicated region fallthrough
CT: control target
= control target key end

     0   :  { %s4161_s12 = smov 0   ;;  %s6316_s0 = inlined_call_operand.vmem [shape: f32[2,16,16,4], index: 0, kind: input, shape index: {}]   ;;  %s6317_s1 = inlined_call_operand.vmem [shape: bf16[3,3,4,4], index: 1, kind: input, shape index: {}]   ;;  %s6318_s2 = inlined_call_operand.vmem [shape: bf16[3,3,4,4], index: 2, kind: input, shape index: {}]   ;;  %s6319_s3 = inlined_call_operand.vmem [shape: f32[2,16,16,4], index: 3, kind: output, shape index: {}]  }
   0x1 LB: > { %s4004_s13 = sadd.s32 4294967295, %s4136_s12   ;;  %p4008_p0 = scmp.ge.s32.totalorder %s4136_s12, 1  ;;  %s4136_s12 = sphi %s4161_s12, %s13_s12  }
   0x2   : > { %p137_p1 = scmp.lt.s32.totalorder %s4136_s12, 3 }
   0x4   : > { %p138_p2 = pnand %p4008_p0, %p137_p1 }
   0x5   : > { %p161_p3 = scmp.lt.s32.totalorder (!%p138_p2), %s4004_s13, 1  ;;  %s4138_s18 = smov (!%p138_p2), 4  }
   0x6   : > { %141 = sbr.rel (%p138_p2) target bundleno = 1496 (0x5d8), region = 32  ;;  %s4139_s19 = smov (!%p138_p2), 8  }
   0xb   : > { %s6323_s13 = smov (!%p161_p3, %s4004_s13), 1  ;;  %vm636_vm0 = vcmask 1040384   ;;  %vm637_vm1 = vsmask.f32 256  ;;  %vm954_vm2 = vcmask 1046528   ;;  %vm1163_vm5 = vcmask 1045504  }
   0xc   : > { %s4111_s14 = sshll.u32 %s6323_s13, 8  ;;  %vm713_vm3 = vsmask.f32 7424  ;;  %vm4193_vm4 = vmand %vm636_vm0, %vm637_vm1  ;;  %vm680_vm6 = vcmask 31744   ;;  %vm1060_vm7 = vcmask 64512   ;;  %vm1132_vm8 = vcmask 97280  }
   0xd   : > { %s4177_s17 = scalar_lea.vmem %s6316_s0, %s4111_s14  ;;  %s6165_s8 = scalar_lea.vmem %s6319_s3, %s4111_s14 }
   0xe   : > { %v188_v0 = vld [vmem:[%s4177_s17 + $0x80] sm:$0xff]  ;;  %v189_v1 = vld [vmem:[%s4177_s17 + $0x88] sm:$0xff]  ;;  %v186_v2 = vld [vmem:[%s4177_s17 + $0x70] sm:$0xff] }
   0xf   : > { %v220_v3 = vpack.c.bf16 %v188_v0, %v188_v0  ;;  %v221_v4 = vpack.c.bf16 %v189_v1, %v189_v1  ;;  %v187_v5 = vld [vmem:[%s4177_s17 + $0x78] sm:$0xff]  ;;  %v218_v6 = vpack.c.bf16 %v186_v2, %v186_v2  ;;  %v192_v7 = vld [vmem:[%s4177_s17 + $0xa0] sm:$0xff]  ;;  %v193_v8 = vld [vmem:[%s4177_s17 + $0xa8] sm:$0xff] }
  0x10   : > { %v219_v9 = vpack.c.bf16 %v187_v5, %v187_v5  ;;  %v224_v10 = vpack.c.bf16 %v192_v7, %v192_v7  ;;  %v225_v11 = vpack.c.bf16 %v193_v8, %v193_v8  ;;  %v196_v12 = vld [vmem:[%s4177_s17 + $0xc0] sm:$0xff]  ;;  %v4187_v13 = vld [vmem:[%s4177_s17 + $0xc8] sm:$0xff]  ;;  %v190_v7 = vld [vmem:[%s4177_s17 + $0x90] sm:$0xff] }
  0x11   : > { %v260_v14 = vunpack.c.l.b16 %v220_v3  ;;  %v372_v15 = vunpack.c.l.b16 %v221_v4  ;;  %v259_v16 = vunpack.c.l.b16 %v218_v6  ;;  %v228_v17 = vpack.c.bf16 %v196_v12, %v196_v12  ;;  %v191_v8 = vld [vmem:[%s4177_s17 + $0x98] sm:$0xff] }
  0x12   : > { %v371_v18 = vunpack.c.l.b16 %v219_v9  ;;  %v262_v19 = vunpack.c.l.b16 %v224_v10  ;;  %v374_v20 = vunpack.c.l.b16 %v225_v11  ;;  %v229_v21 = vpack.c.bf16 %v4187_v13, %v4187_v13 }
  0x13   : > { %v276_v22 = vpack.c.b16 %v260_v14, %v260_v14  ;;  %v388_v23 = vpack.c.b16 %v372_v15, %v260_v14  ;;  %v548_v24 = vpack.c.b16 %v372_v15, %v372_v15  ;;  %v275_v25 = vpack.c.b16 %v259_v16, %v259_v16 }
  0x14   : > { %v387_v26 = vpack.c.b16 %v371_v18, %v259_v16  ;;  %v547_v27 = vpack.c.b16 %v371_v18, %v371_v18  ;;  %v278_v28 = vpack.c.b16 %v262_v19, %v262_v19  ;;  %v390_v29 = vpack.c.b16 %v374_v20, %v262_v19 }
  0x15   : > { %v309_v30 = vshrl.u32 %v276_v22, 16  ;;  %v453_v31 = vshrl.u32 %v388_v23, 16  ;;  %v456_v32 = vshll.u32 %v388_v23, 16  ;;  %v589_v33 = vshll.u32 %v548_v24, 16  ;;  %v198_v22 = vld [vmem:[%s4177_s17 + $0xd0] sm:$0xff] }
  0x16   : > { %v306_v34 = vshrl.u32 %v275_v25, 16  ;;  %v446_v35 = vshrl.u32 %v387_v26, 16  ;;  %v449_v36 = vshll.u32 %v387_v26, 16  ;;  %v585_v37 = vshll.u32 %v547_v27, 16 }
  0x17   : > { %v455_v38 = vrot.slane %v453_v31, 7  ;;  %v591_v39 = vrot.slane %v589_v33, 3  ;;  %v315_v40 = vshrl.u32 %v278_v28, 16  ;;  %v467_v41 = vshrl.u32 %v390_v29, 16 }
  0x18   : > { %v448_v43 = vrot.slane %v446_v35, 7  ;;  %v587_v44 = vrot.slane %v585_v37, 3  ;;  %v470_v45 = vshll.u32 %v390_v29, 16  ;;  %v550_v46 = vpack.c.b16 %v374_v20, %v374_v20 }
  0x19   : > { %v458_v47 = vor.u32 %v456_v32, %v455_v38  ;;  %v663_v48 = vsel %vm4193_vm4, %v455_v38, %v591_v39  ;;  %v469_v49 = vrot.slane %v467_v41, 7  ;;  %v264_v50 = vunpack.c.l.b16 %v228_v17 }
  0x1a   : > { %v818_v51 = vshll.u32 %v663_v48, 16  ;;  %v451_v52 = vor.u32 %v449_v36, %v448_v43  ;;  %v662_v53 = vsel %vm4193_vm4, %v448_v43, %v587_v44  ;;  %v980_v54 = vrot.slane %v663_v48, 1  ;;  %v174_v44 = vld [vmem:[%s4177_s17 + $0x10] sm:$0xff] }
  0x1b   : > { %v4203_v55 = vsel %vm4193_vm4, %v309_v30, %v458_v47  ;;  %v806_v56 = vshll.u32 %v662_v53, 16  ;;  %v977_v57 = vrot.slane %v662_v53, 1  ;;  %v472_v58 = vor.u32 %v470_v45, %v469_v49  ;;  %v199_v30 = vld [vmem:[%s4177_s17 + $0xd8] sm:$0xff] }
  0x1c   : > { %v811_v59 = vshrl.u32 %v4203_v55, 16  ;;  %v813_v60 = vshll.u32 %v4203_v55, 16  ;;  %v820_v61 = vrot.slane %v818_v51, 1  ;;  %v4209_v62 = vsel %vm4193_vm4, %v306_v34, %v451_v52 }
  0x1d   : > { %v799_v63 = vshrl.u32 %v4209_v62, 16  ;;  %v801_v0 = vshll.u32 %v4209_v62, 16  ;;  %v808_v1 = vrot.slane %v806_v56, 1  ;;  %v979_v2 = vrot.slane %v4203_v55, 1 }
  0x1e   : > { %v815_v3 = vrot.slane %v813_v60, 1  ;;  %v976_v4 = vrot.slane %v4209_v62, 1  ;;  %v597_v5 = vshll.u32 %v550_v46, 16  ;;  %v4217_v6 = vsel %vm4193_vm4, %v315_v40, %v472_v58 }
  0x1f   : > { %v803_v9 = vrot.slane %v801_v0, 1  ;;  %v981_v10 = vsel %vm954_vm2, %v979_v2, %v980_v54  ;;  %v985_v11 = vrot.slane %v4217_v6, 1  ;;  %v280_v12 = vpack.c.b16 %v264_v50, %v264_v50 }
  0x20   : > { %v816_v13 = vor.u32 %v815_v3, %v811_v59  ;;  %v978_v14 = vsel %vm954_vm2, %v976_v4, %v977_v57  ;;  %v599_v15 = vrot.slane %v597_v5, 3  ;;  %v376_v16 = vunpack.c.l.b16 %v229_v21 }
  0x21   : > { %v804_v17 = vor.u32 %v803_v9, %v799_v63  ;;  %v321_v18 = vshrl.u32 %v280_v12, 16  ;;  %v222_v19 = vpack.c.bf16 %v190_v7, %v190_v7  ;;  %v223_v20 = vpack.c.bf16 %v191_v8, %v191_v8  ;;  %v175_v8 = vld [vmem:[%s4177_s17 + $0x18] sm:$0xff] }
  0x22   : > { %v821_v23 = vsel %vm713_vm3, %v816_v13, %v820_v61  ;;  %v4228_v24 = vsel %vm4193_vm4, %v469_v49, %v599_v15  ;;  %v392_v25 = vpack.c.b16 %v376_v16, %v264_v50  ;;  %v552_v26 = vpack.c.b16 %v376_v16, %v376_v16 }
  0x23   : > { %910 = vrot.lane.b32.xlu1 %v821_v23, %s4138_s18  ;;  %v809_v27 = vsel %vm713_vm3, %v804_v17, %v808_v1  ;;  %v986_v21 = vrot.slane %v4228_v24, 1  ;;  %v261_v28 = vunpack.c.l.b16 %v222_v19  ;;  %v373_v29 = vunpack.c.l.b16 %v223_v20 }
  0x24   : > { %908 = vrot.lane.b32.xlu0 %v809_v27, %s4138_s18  ;;  %v481_v31 = vshrl.u32 %v392_v25, 16  ;;  %v484_v32 = vshll.u32 %v392_v25, 16  ;;  %v605_v33 = vshll.u32 %v552_v26, 16  ;;  %v230_v34 = vpack.c.bf16 %v198_v22, %v198_v22  ;;  %v194_v22 = vld [vmem:[%s4177_s17 + $0xb0] sm:$0xff] }
  0x25   : > { %v987_v35 = vsel %vm954_vm2, %v985_v11, %v986_v21  ;;  %v277_v36 = vpack.c.b16 %v261_v28, %v261_v28  ;;  %v389_v37 = vpack.c.b16 %v373_v29, %v261_v28  ;;  %v549_v38 = vpack.c.b16 %v373_v29, %v373_v29  ;;  %v195_v21 = vld [vmem:[%s4177_s17 + $0xb8] sm:$0xff] }
  0x26   : > { %v483_v39 = vrot.slane %v481_v31, 7  ;;  %v607_v40 = vrot.slane %v605_v33, 3  ;;  %v231_v41 = vpack.c.bf16 %v199_v30, %v199_v30  ;;  %v265_v43 = vunpack.c.l.b16 %v230_v34 }
  0x27   : > { %v312_v45 = vshrl.u32 %v277_v36, 16  ;;  %v460_v46 = vshrl.u32 %v389_v37, 16  ;;  %v463_v47 = vshll.u32 %v389_v37, 16  ;;  %v593_v48 = vshll.u32 %v549_v38, 16 }
  0x28   : > { %v486_v49 = vor.u32 %v484_v32, %v483_v39  ;;  %v4239_v50 = vsel %vm4193_vm4, %v483_v39, %v607_v40  ;;  %v281_v51 = vpack.c.b16 %v265_v43, %v265_v43  ;;  %v377_v52 = vunpack.c.l.b16 %v231_v41 }
  0x29   : > { %v866_v53 = vshll.u32 %v4239_v50, 16  ;;  %v462_v54 = vrot.slane %v460_v46, 7  ;;  %v595_v56 = vrot.slane %v593_v48, 3  ;;  %v206_v57 = vpack.c.bf16 %v174_v44, %v174_v44  ;;  %v177_v46 = vld [vmem:[%s4177_s17 + $0x28] sm:$0xff] }
  0x2a   : > { %v4244_v58 = vsel %vm4193_vm4, %v321_v18, %v486_v49  ;;  %v324_v59 = vshrl.u32 %v281_v51, 16  ;;  %v393_v60 = vpack.c.b16 %v377_v52, %v265_v43  ;;  %v553_v61 = vpack.c.b16 %v377_v52, %v377_v52 }
  0x2b   : > { %1016 = vrot.lane.b32.xlu1 %v981_v10, %s4139_s19  ;;  %v859_v63 = vshrl.u32 %v4244_v58, 16  ;;  %v861_v0 = vshll.u32 %v4244_v58, 16  ;;  %v868_v1 = vrot.slane %v866_v53, 1  ;;  %v465_v2 = vor.u32 %v463_v47, %v462_v54 }
  0x2c   : > { %1014 = vrot.lane.b32.xlu0 %v978_v14, %s4139_s19  ;;  %v664_v3 = vsel %vm4193_vm4, %v462_v54, %v595_v56  ;;  %v488_v4 = vshrl.u32 %v393_v60, 16  ;;  %v491_v5 = vshll.u32 %v393_v60, 16  ;;  %v609_v7 = vshll.u32 %v553_v61, 16 }
  0x2d   : > { %v863_v9 = vrot.slane %v861_v0, 1  ;;  %v4255_v10 = vsel %vm4193_vm4, %v312_v45, %v465_v2  ;;  %v830_v11 = vshll.u32 %v664_v3, 16  ;;  %v983_v12 = vrot.slane %v664_v3, 1  ;;  %v176_v45 = vld [vmem:[%s4177_s17 + $0x20] sm:$0xff] }
  0x2e   : > { %v823_v13 = vshrl.u32 %v4255_v10, 16  ;;  %v825_v14 = vshll.u32 %v4255_v10, 16  ;;  %v490_v15 = vrot.slane %v488_v4, 7  ;;  %v611_v16 = vrot.slane %v609_v7, 3 }
  0x2f   : > { %v864_v17 = vor.u32 %v863_v9, %v859_v63  ;;  %v832_v18 = vrot.slane %v830_v11, 1  ;;  %v982_v19 = vrot.slane %v4255_v10, 1  ;;  %v207_v20 = vpack.c.bf16 %v175_v8, %v175_v8 }
  0x30   : > { %v827_v23 = vrot.slane %v825_v14, 1  ;;  %v493_v25 = vor.u32 %v491_v5, %v490_v15  ;;  %v4263_v26 = vsel %vm4193_vm4, %v490_v15, %v611_v16  ;;  %v252_v27 = vunpack.c.l.b16 %v206_v57 }
  0x31   : > { %v869_v28 = vsel %vm713_vm3, %v864_v17, %v868_v1  ;;  %v995_v29 = vrot.slane %v4263_v26, 1  ;;  %v364_v30 = vunpack.c.l.b16 %v207_v20  ;;  %v226_v34 = vpack.c.bf16 %v194_v22, %v194_v22 }
  0x32   : > { %v828_v31 = vor.u32 %v827_v23, %v823_v13  ;;  %v4270_v32 = vsel %vm4193_vm4, %v324_v59, %v493_v25  ;;  %v268_v33 = vpack.c.b16 %v252_v27, %v252_v27  ;;  %v984_v36 = vsel %vm954_vm2, %v982_v19, %v983_v12 }
  0x33   : > { %1020 = vrot.lane.b32.xlu1 %v987_v35, %s4139_s19  ;;  %v380_v37 = vpack.c.b16 %v364_v30, %v252_v27  ;;  %v540_v38 = vpack.c.b16 %v364_v30, %v364_v30  ;;  %v227_v39 = vpack.c.bf16 %v195_v21, %v195_v21  ;;  %v994_v41 = vrot.slane %v4270_v32, 1 }
  0x34   : > { %v833_v40 = vsel %vm713_vm3, %v828_v31, %v832_v18  ;;  %v285_v43 = vshrl.u32 %v268_v33, 16  ;;  %v263_v44 = vunpack.c.l.b16 %v226_v34  ;;  %v835_v35 = vshrl.u32 %v4217_v6, 16  ;;  %v180_v34 = vld [vmem:[%s4177_s17 + $0x40] sm:$0xff] }
  0x35   : > { %912 = vrot.lane.b32.xlu2 %v833_v40, %s4138_s18  ;;  %v397_v47 = vshrl.u32 %v380_v37, 16  ;;  %v400_v48 = vshll.u32 %v380_v37, 16  ;;  %v557_v49 = vshll.u32 %v540_v38, 16  ;;  %v375_v52 = vunpack.c.l.b16 %v227_v39  ;;  %v181_v40 = vld [vmem:[%s4177_s17 + $0x48] sm:$0xff] }
  0x36   : > { %v279_v51 = vpack.c.b16 %v263_v44, %v263_v44  ;;  %v837_v53 = vshll.u32 %v4217_v6, 16  ;;  %v842_v54 = vshll.u32 %v4228_v24, 16  ;;  %v208_v59 = vpack.c.bf16 %v176_v45, %v176_v45 }
  0x37   : > { %v399_v56 = vrot.slane %v397_v47, 7  ;;  %v559_v57 = vrot.slane %v557_v49, 3  ;;  %v209_v60 = vpack.c.bf16 %v177_v46, %v177_v46  ;;  %v996_v61 = vsel %vm954_vm2, %v994_v41, %v995_v29  ;;  %v200_v41 = vld [vmem:[%s4177_s17 + $0xe0] sm:$0xff]  ;;  %v201_v47 = vld [vmem:[%s4177_s17 + $0xe8] sm:$0xff] }
  0x38   : > { %v391_v63 = vpack.c.b16 %v375_v52, %v263_v44  ;;  %v551_v0 = vpack.c.b16 %v375_v52, %v375_v52  ;;  %v839_v1 = vrot.slane %v837_v53, 1  ;;  %v844_v4 = vrot.slane %v842_v54, 1 }
  0x39   : > { %v402_v2 = vor.u32 %v400_v48, %v399_v56  ;;  %v4285_v3 = vsel %vm4193_vm4, %v399_v56, %v559_v57  ;;  %v254_v5 = vunpack.c.l.b16 %v208_v59  ;;  %v318_v12 = vshrl.u32 %v279_v51, 16 }
  0x3a   : > { %v722_v7 = vshll.u32 %v4285_v3, 16  ;;  %v474_v8 = vshrl.u32 %v391_v63, 16  ;;  %v477_v24 = vshll.u32 %v391_v63, 16  ;;  %v601_v9 = vshll.u32 %v551_v0, 16 }
  0x3b   : > { %918 = vrot.lane.b32.xlu1 %v869_v28, %s4138_s18  ;;  %v4291_v11 = vsel %vm4193_vm4, %v285_v43, %v402_v2  ;;  %v840_v13 = vor.u32 %v839_v1, %v835_v35  ;;  %v366_v14 = vunpack.c.l.b16 %v209_v60  ;;  %v270_v18 = vpack.c.b16 %v254_v5, %v254_v5 }
  0x3c   : > { %v715_v15 = vshrl.u32 %v4291_v11, 16  ;;  %v717_v16 = vshll.u32 %v4291_v11, 16  ;;  %v476_v17 = vrot.slane %v474_v8, 7  ;;  %v724_v19 = vrot.slane %v722_v7, 1 }
  0x3d   : > { %1018 = vrot.lane.b32.xlu2 %v984_v36, %s4139_s19  ;;  %v603_v20 = vrot.slane %v601_v9, 3  ;;  %v845_v22 = vsel %vm713_vm3, %v840_v13, %v844_v4  ;;  %v382_v23 = vpack.c.b16 %v366_v14, %v254_v5  ;;  %v542_v21 = vpack.c.b16 %v366_v14, %v366_v14 }
  0x3e   : > { %v719_v25 = vrot.slane %v717_v16, 1  ;;  %v479_v27 = vor.u32 %v477_v24, %v476_v17  ;;  %914 = vrot.lane.b32.xlu0 %v845_v22, %s4138_s18  ;;  %v991_v28 = vrot.slane %v4244_v58, 1  ;;  %v992_v33 = vrot.slane %v4239_v50, 1  ;;  %v182_v16 = vld [vmem:[%s4177_s17 + $0x50] sm:$0xff]  ;;  %v183_v22 = vld [vmem:[%s4177_s17 + $0x58] sm:$0xff] }
  0x3f   : > { %v666_v29 = vsel %vm4193_vm4, %v476_v17, %v603_v20  ;;  %v411_v30 = vshrl.u32 %v382_v23, 16  ;;  %v414_v31 = vshll.u32 %v382_v23, 16  ;;  %v565_v39 = vshll.u32 %v542_v21, 16 }
  0x40   : > { %v720_v36 = vor.u32 %v719_v25, %v715_v15  ;;  %v4305_v37 = vsel %vm4193_vm4, %v318_v12, %v479_v27  ;;  %v854_v38 = vshll.u32 %v666_v29, 16  ;;  %v291_v45 = vshrl.u32 %v270_v18, 16 }
  0x41   : > { %v847_v43 = vshrl.u32 %v4305_v37, 16  ;;  %v849_v44 = vshll.u32 %v4305_v37, 16  ;;  %v413_v46 = vrot.slane %v411_v30, 7  ;;  %v567_v49 = vrot.slane %v565_v39, 3  ;;  %v172_v39 = vld [vmem:[%s4177_s17] sm:$0xff] }
  0x42   : > { %v856_v48 = vrot.slane %v854_v38, 1  ;;  %v212_v50 = vpack.c.bf16 %v180_v34, %v180_v34  ;;  %v213_v52 = vpack.c.bf16 %v181_v40, %v181_v40  ;;  %v232_v53 = vpack.c.bf16 %v200_v41, %v200_v41 }
  0x43   : > { %1026 = vrot.lane.b32.xlu1 %v996_v61, %s4139_s19  ;;  %v851_v35 = vrot.slane %v849_v44, 1  ;;  %v416_v51 = vor.u32 %v414_v31, %v413_v46  ;;  %v725_v54 = vsel %vm713_vm3, %v720_v36, %v724_v19  ;;  %v993_v56 = vsel %vm954_vm2, %v991_v28, %v992_v33 }
  0x44   : > { %v256_v57 = vunpack.c.l.b16 %v212_v50  ;;  %v233_v59 = vpack.c.bf16 %v201_v47, %v201_v47  ;;  %v4321_v0 = vsel %vm4193_vm4, %v413_v46, %v567_v49  ;;  %v368_v61 = vunpack.c.l.b16 %v213_v52 }
  0x45   : > { %v852_v60 = vor.u32 %v851_v35, %v847_v43  ;;  %v4317_v63 = vsel %vm4193_vm4, %v291_v45, %v416_v51  ;;  %v266_v2 = vunpack.c.l.b16 %v232_v53  ;;  %v988_v5 = vrot.slane %v4305_v37, 1  ;;  %v173_v51 = vld [vmem:[%s4177_s17 + $0x8] sm:$0xff] }
  0x46   : > { %v272_v1 = vpack.c.b16 %v256_v57, %v256_v57  ;;  %v378_v4 = vunpack.c.l.b16 %v233_v59  ;;  %v384_v8 = vpack.c.b16 %v368_v61, %v256_v57  ;;  %v544_v24 = vpack.c.b16 %v368_v61, %v368_v61 }
  0x47   : > { %v857_v7 = vsel %vm713_vm3, %v852_v60, %v856_v48  ;;  %v989_v9 = vrot.slane %v666_v29, 1  ;;  %v961_v12 = vrot.slane %v4317_v63, 1  ;;  %v962_v13 = vrot.slane %v4321_v0, 1  ;;  %v178_v60 = vld [vmem:[%s4177_s17 + $0x30] sm:$0xff] }
  0x48   : > { %916 = vrot.lane.b32.xlu2 %v857_v7, %s4138_s18  ;;  %v282_v14 = vpack.c.b16 %v266_v2, %v266_v2  ;;  %v394_v15 = vpack.c.b16 %v378_v4, %v266_v2  ;;  %v425_v17 = vshrl.u32 %v384_v8, 16  ;;  %v428_v18 = vshll.u32 %v384_v8, 16  ;;  %v179_v8 = vld [vmem:[%s4177_s17 + $0x38] sm:$0xff] }
  0x49   : > { %v573_v19 = vshll.u32 %v544_v24, 16  ;;  %v554_v20 = vpack.c.b16 %v378_v4, %v378_v4  ;;  %v297_v23 = vshrl.u32 %v272_v1, 16  ;;  %v990_v21 = vsel %vm954_vm2, %v988_v5, %v989_v9 }
  0x4a   : > { %v495_v25 = vshrl.u32 %v394_v15, 16  ;;  %v498_v27 = vshll.u32 %v394_v15, 16  ;;  %v427_v28 = vrot.slane %v425_v17, 7  ;;  %1022 = vrot.lane.b32.xlu0 %v990_v21, %s4139_s19  ;;  %v214_v31 = vpack.c.bf16 %v182_v16, %v182_v16 }
  0x4b   : > { %894 = vrot.lane.b32.xlu1 %v725_v54, %s4138_s18  ;;  %v575_v29 = vrot.slane %v573_v19, 3  ;;  %v613_v30 = vshll.u32 %v554_v20, 16  ;;  %v963_v33 = vsel %vm954_vm2, %v961_v12, %v962_v13  ;;  %v327_v34 = vshrl.u32 %v282_v14, 16 }
  0x4c   : > { %v497_v36 = vrot.slane %v495_v25, 7  ;;  %v215_v38 = vpack.c.bf16 %v183_v22, %v183_v22  ;;  %v430_v40 = vor.u32 %v428_v18, %v427_v28  ;;  %v955_v44 = vrot.slane %v4291_v11, 1 }
  0x4d   : > { %v4337_v41 = vsel %vm4193_vm4, %v427_v28, %v575_v29  ;;  %v615_v43 = vrot.slane %v613_v30, 3  ;;  %v257_v47 = vunpack.c.l.b16 %v214_v31  ;;  %v956_v35 = vrot.slane %v4285_v3, 1 }
  0x4e   : > { %v770_v45 = vshll.u32 %v4337_v41, 16  ;;  %v500_v46 = vor.u32 %v498_v27, %v497_v36  ;;  %v369_v48 = vunpack.c.l.b16 %v215_v38  ;;  %v4343_v49 = vsel %vm4193_vm4, %v297_v23, %v430_v40 }
  0x4f   : > { %v4347_v50 = vsel %vm4193_vm4, %v497_v36, %v615_v43  ;;  %v204_v52 = vpack.c.bf16 %v172_v39, %v172_v39  ;;  %v763_v53 = vshrl.u32 %v4343_v49, 16  ;;  %v765_v54 = vshll.u32 %v4343_v49, 16 }
  0x50   : > { %1024 = vrot.lane.b32.xlu2 %v993_v56, %s4139_s19  ;;  %v4356_v57 = vsel %vm4193_vm4, %v327_v34, %v500_v46  ;;  %v273_v59 = vpack.c.b16 %v257_v47, %v257_v47  ;;  %v772_v61 = vrot.slane %v770_v45, 1  ;;  %v890_v2 = vshll.u32 %v4347_v50, 16 }
  0x51   : > { %v883_v1 = vshrl.u32 %v4356_v57, 16  ;;  %v885_v3 = vshll.u32 %v4356_v57, 16  ;;  %v767_v4 = vrot.slane %v765_v54, 1  ;;  %v385_v5 = vpack.c.b16 %v369_v48, %v257_v47 }
  0x52   : > { %v545_v56 = vpack.c.b16 %v369_v48, %v369_v48  ;;  %v205_v7 = vpack.c.bf16 %v173_v51, %v173_v51  ;;  %v892_v9 = vrot.slane %v890_v2, 1  ;;  %v253_v12 = vunpack.c.l.b16 %v204_v52 }
  0x53   : > { %1004 = vrot.lane.b32.xlu1 %v963_v33, %s4139_s19  ;;  %v887_v24 = vrot.slane %v885_v3, 1  ;;  %v210_v13 = vpack.c.bf16 %v178_v60, %v178_v60  ;;  %v768_v14 = vor.u32 %v767_v4, %v763_v53  ;;  %v432_v15 = vshrl.u32 %v385_v5, 16 }
  0x54   : > { %v435_v16 = vshll.u32 %v385_v5, 16  ;;  %v577_v17 = vshll.u32 %v545_v56, 16  ;;  %v269_v19 = vpack.c.b16 %v253_v12, %v253_v12  ;;  %v365_v20 = vunpack.c.l.b16 %v205_v7 }
  0x55   : > { %v888_v18 = vor.u32 %v887_v24, %v883_v1  ;;  %v211_v22 = vpack.c.bf16 %v179_v8, %v179_v8  ;;  %v300_v23 = vshrl.u32 %v273_v59, 16  ;;  %v434_v25 = vrot.slane %v432_v15, 7 }
  0x56   : > { %v579_v27 = vrot.slane %v577_v17, 3  ;;  %v255_v21 = vunpack.c.l.b16 %v210_v13  ;;  %v957_v29 = vsel %vm954_vm2, %v955_v44, %v956_v35  ;;  %v381_v30 = vpack.c.b16 %v365_v20, %v253_v12 }
  0x57   : > { %v893_v28 = vsel %vm713_vm3, %v888_v18, %v892_v9  ;;  %v541_v31 = vpack.c.b16 %v365_v20, %v365_v20  ;;  %v773_v33 = vsel %vm713_vm3, %v768_v14, %v772_v61  ;;  %v437_v34 = vor.u32 %v435_v16, %v434_v25  ;;  %v184_v16 = vld [vmem:[%s4177_s17 + $0x60] sm:$0xff]  ;;  %v185_v20 = vld [vmem:[%s4177_s17 + $0x68] sm:$0xff] }
  0x58   : > { %922 = vrot.lane.b32.xlu2 %v893_v28, %s4138_s18  ;;  %v4370_v36 = vsel %vm4193_vm4, %v434_v25, %v579_v27  ;;  %v367_v38 = vunpack.c.l.b16 %v211_v22  ;;  %v288_v39 = vshrl.u32 %v269_v19, 16  ;;  %v404_v40 = vshrl.u32 %v381_v30, 16 }
  0x59   : > { %v407_v43 = vshll.u32 %v381_v30, 16  ;;  %v561_v45 = vshll.u32 %v541_v31, 16  ;;  %v4374_v46 = vsel %vm4193_vm4, %v300_v23, %v437_v34  ;;  %v271_v44 = vpack.c.b16 %v255_v21, %v255_v21 }
  0x5a   : > { %v383_v47 = vpack.c.b16 %v367_v38, %v255_v21  ;;  %v543_v48 = vpack.c.b16 %v367_v38, %v367_v38  ;;  %v970_v35 = vrot.slane %v4374_v46, 1  ;;  %v971_v51 = vrot.slane %v4370_v36, 1 }
  0x5b   : > { %902 = vrot.lane.b32.xlu1 %v773_v33, %s4138_s18  ;;  %v406_v52 = vrot.slane %v404_v40, 7  ;;  %v563_v53 = vrot.slane %v561_v45, 3  ;;  %v873_v61 = vshll.u32 %v4270_v32, 16  ;;  %v871_v2 = vshrl.u32 %v4270_v32, 16 }
  0x5c   : > { %v418_v54 = vshrl.u32 %v383_v47, 16  ;;  %v421_v59 = vshll.u32 %v383_v47, 16  ;;  %v569_v60 = vshll.u32 %v543_v48, 16  ;;  %v878_v4 = vshll.u32 %v4263_v26, 16 }
  0x5d   : > { %v409_v1 = vor.u32 %v407_v43, %v406_v52  ;;  %v4382_v3 = vsel %vm4193_vm4, %v406_v52, %v563_v53  ;;  %v294_v5 = vshrl.u32 %v271_v44, 16  ;;  %v875_v8 = vrot.slane %v873_v61, 1 }
  0x5e   : > { %v420_v56 = vrot.slane %v418_v54, 7  ;;  %v571_v7 = vrot.slane %v569_v60, 3  ;;  %v972_v24 = vsel %vm954_vm2, %v970_v35, %v971_v51  ;;  %v880_v12 = vrot.slane %v878_v4, 1 }
  0x5f   : > { %v4389_v9 = vsel %vm4193_vm4, %v288_v39, %v409_v1  ;;  %v734_v26 = vshll.u32 %v4382_v3, 16  ;;  %v876_v18 = vor.u32 %v875_v8, %v871_v2  ;;  %v997_v19 = vrot.slane %v4356_v57, 1 }
  0x60   : > { %1000 = vrot.lane.b32.xlu2 %v957_v29, %s4139_s19  ;;  %v727_v13 = vshrl.u32 %v4389_v9, 16  ;;  %v729_v14 = vshll.u32 %v4389_v9, 16  ;;  %v423_v15 = vor.u32 %v421_v59, %v420_v56  ;;  %v4398_v17 = vsel %vm4193_vm4, %v420_v56, %v571_v7 }
  0x61   : > { %v758_v25 = vshll.u32 %v4398_v17, 16  ;;  %v998_v27 = vrot.slane %v4347_v50, 1  ;;  %v881_v29 = vsel %vm713_vm3, %v876_v18, %v880_v12  ;;  %v216_v30 = vpack.c.bf16 %v184_v16, %v184_v16  ;;  %v672_v12 = vld [vmem:[%s6317_s1 + $0x2] sm:$0x3]  ;;  %v202_v18 = vld [vmem:[%s4177_s17 + $0xf0] sm:$0xff] }
  0x62   : > { %v731_v22 = vrot.slane %v729_v14, 1  ;;  %v4404_v23 = vsel %vm4193_vm4, %v294_v5, %v423_v15  ;;  %v736_v33 = vrot.slane %v734_v26, 1  ;;  %920 = vrot.lane.b32.xlu0 %v881_v29, %s4138_s18  ;;  %v217_v34 = vpack.c.bf16 %v185_v20, %v185_v20  ;;  %1127 = vst [vmem:[#allocation1 + $0x1] ss:$4 sm:$0xff] %v672_v12  ;;  %v678_v12 = vld [vmem:[%s6317_s1 + $0xe] sm:$0x3] }
  0x63   : > { %1010 = vrot.lane.b32.xlu1 %v972_v24, %s4139_s19  ;;  %v751_v21 = vshrl.u32 %v4404_v23, 16  ;;  %v753_v28 = vshll.u32 %v4404_v23, 16  ;;  %v760_v39 = vrot.slane %v758_v25, 1  ;;  %v258_v40 = vunpack.c.l.b16 %v216_v30 }
  0x64   : > { %v732_v31 = vor.u32 %v731_v22, %v727_v13  ;;  %v741_v43 = vshll.u32 %v4317_v63, 16  ;;  %v370_v50 = vunpack.c.l.b16 %v217_v34  ;;  %v999_v44 = vsel %vm954_vm2, %v997_v19, %v998_v27  ;;  %v203_v19 = vld [vmem:[%s4177_s17 + $0xf8] sm:$0xff] }
  0x65   : > { %v755_v38 = vrot.slane %v753_v28, 1  ;;  %v274_v48 = vpack.c.b16 %v258_v40, %v258_v40  ;;  %v739_v53 = vshrl.u32 %v4317_v63, 16  ;;  %v746_v59 = vshll.u32 %v4321_v0, 16  ;;  %v671_v0 = vld [vmem:[%s6317_s1] sm:$0x3] }
  0x66   : > { %v737_v47 = vsel %vm713_vm3, %v732_v31, %v736_v33  ;;  %v386_v35 = vpack.c.b16 %v370_v50, %v258_v40  ;;  %v546_v51 = vpack.c.b16 %v370_v50, %v370_v50  ;;  %v743_v54 = vrot.slane %v741_v43, 1  ;;  %1124 = vst [vmem:[#allocation1] ss:$4 sm:$0xff] %v671_v0  ;;  %v674_v40 = vld [vmem:[%s6317_s1 + $0x6] sm:$0x3] }
  0x67   : > { %v756_v45 = vor.u32 %v755_v38, %v751_v21  ;;  %v967_v2 = vrot.slane %v4343_v49, 1  ;;  %v968_v4 = vrot.slane %v4337_v41, 1  ;;  %v303_v5 = vshrl.u32 %v274_v48, 16  ;;  %v673_v41 = vld [vmem:[%s6317_s1 + $0x4] sm:$0x3] }
  0x68   : > { %v439_v60 = vshrl.u32 %v386_v35, 16  ;;  %v442_v61 = vshll.u32 %v386_v35, 16  ;;  %v581_v1 = vshll.u32 %v546_v51, 16  ;;  %v744_v8 = vor.u32 %v743_v54, %v739_v53  ;;  %1130 = vst [vmem:[#allocation1 + $0x2] ss:$4 sm:$0xff] %v673_v41 }
  0x69   : > { %v761_v52 = vsel %vm713_vm3, %v756_v45, %v760_v39  ;;  %v748_v24 = vrot.slane %v746_v59, 1  ;;  %v969_v26 = vsel %vm954_vm2, %v967_v2, %v968_v4  ;;  %v234_v27 = vpack.c.bf16 %v202_v18, %v202_v18  ;;  %v675_v43 = vld [vmem:[%s6317_s1 + $0x8] sm:$0x3] }
  0x6a   : > { %900 = vrot.lane.b32.xlu2 %v761_v52, %s4138_s18  ;;  %1028 = vrot.lane.b32.xlu0 %v999_v44, %s4139_s19  ;;  %v441_v56 = vrot.slane %v439_v60, 7  ;;  %v583_v7 = vrot.slane %v581_v1, 3  ;;  %v235_v21 = vpack.c.bf16 %v203_v19, %v203_v19  ;;  %v964_v34 = vrot.slane %v4404_v23, 1 }
  0x6b   : > { %896 = vrot.lane.b32.xlu1 %v737_v47, %s4138_s18  ;;  %v749_v25 = vsel %vm713_vm3, %v744_v8, %v748_v24  ;;  %v267_v30 = vunpack.c.l.b16 %v234_v27  ;;  %v965_v38 = vrot.slane %v4398_v17, 1  ;;  %v777_v39 = vshll.u32 %v4374_v46, 16  ;;  %v676_v47 = vld [vmem:[%s6317_s1 + $0xa] sm:$0x3]  ;;  %v677_v24 = vld [vmem:[%s6317_s1 + $0xc] sm:$0x3] }
  0x6c   : > { %v444_v13 = vor.u32 %v442_v61, %v441_v56  ;;  %v4435_v14 = vsel %vm4193_vm4, %v441_v56, %v583_v7  ;;  %v379_v31 = vunpack.c.l.b16 %v235_v21  ;;  %v775_v17 = vshrl.u32 %v4374_v46, 16 }
  0x6d   : > { %v794_v15 = vshll.u32 %v4435_v14, 16  ;;  %v966_v51 = vsel %vm954_vm2, %v964_v34, %v965_v38  ;;  %v779_v52 = vrot.slane %v777_v39, 1  ;;  %v782_v53 = vshll.u32 %v4370_v36, 16 }
  0x6e   : > { %v4441_v16 = vsel %vm4193_vm4, %v303_v5, %v444_v13  ;;  %v395_v50 = vpack.c.b16 %v379_v31, %v267_v30  ;;  %v555_v54 = vpack.c.b16 %v379_v31, %v379_v31  ;;  %v283_v59 = vpack.c.b16 %v267_v30, %v267_v30  ;;  %v679_v13 = vld [vmem:[%s6317_s1 + $0x10] sm:$0x3] }
  0x6f   : > { %v787_v20 = vshrl.u32 %v4441_v16, 16  ;;  %v789_v22 = vshll.u32 %v4441_v16, 16  ;;  %v796_v29 = vrot.slane %v794_v15, 1  ;;  %v1131_v44 = vld.sshfl [vmem:[#allocation1] sm:$0xff pattern:$0x73625140]  ;;  %v780_v5 = vor.u32 %v779_v52, %v775_v17 }
  0x70   : > { %v1164_v48 = vsel %vm1163_vm5, %v1131_v44, 0  ;;  %1377 = vst [vmem:[#allocation1] ss:$4 sm:$0xff] %v674_v40  ;;  %v502_v35 = vshrl.u32 %v395_v50, 16  ;;  %v505_v61 = vshll.u32 %v395_v50, 16  ;;  %v958_v1 = vrot.slane %v4389_v9, 1 }
  0x71   : > { %v791_v28 = vrot.slane %v789_v22, 1  ;;  %4113 = vmatpush.bf16.msra.mxu2 %v1164_v48  ;;  %1380 = vst [vmem:[#allocation1 + $0x1] ss:$4 sm:$0xff] %v675_v43  ;;  %1173 = vmatpush.bf16.msra.mxu0 %v1164_v48  ;;  %v959_v2 = vrot.slane %v4382_v3, 1  ;;  %v617_v4 = vshll.u32 %v555_v54, 16  ;;  %v784_v56 = vrot.slane %v782_v53, 1 }
  0x72   : > { %1008 = vrot.lane.b32.xlu2 %v969_v26, %s4139_s19  ;;  %898 = vrot.lane.b32.xlu0 %v749_v25, %s4138_s18  ;;  %1383 = vst [vmem:[#allocation1 + $0x2] ss:$4 sm:$0xff] %v676_v47  ;;  %v504_v60 = vrot.slane %v502_v35, 7  ;;  %v330_v36 = vshrl.u32 %v283_v59, 16  ;;  %v973_v22 = vrot.slane %v4441_v16, 1  ;;  %v974_v25 = vrot.slane %v4435_v14, 1 }
  0x73   : > { %v792_v33 = vor.u32 %v791_v28, %v787_v20  ;;  %v619_v0 = vrot.slane %v617_v4, 3  ;;  %v960_v8 = vsel %vm954_vm2, %v958_v1, %v959_v2  ;;  %v785_v3 = vsel %vm713_vm3, %v780_v5, %v784_v56 }
  0x74   : > { %v507_v7 = vor.u32 %v505_v61, %v504_v60  ;;  %v975_v28 = vsel %vm954_vm2, %v973_v22, %v974_v25 }
  0x75   : > { %v797_v45 = vsel %vm713_vm3, %v792_v33, %v796_v29  ;;  %v670_v18 = vsel %vm4193_vm4, %v504_v60, %v619_v0 }
  0x76   : > { %v4486_v15 = vsel %vm4193_vm4, %v330_v36, %v507_v7  ;;  %v1336_v20 = vrot.slane %v670_v18, 1  ;;  %v1327_v31 = vshll.u32 %v670_v18, 16 }
  0x77   : > { %v1335_v19 = vrot.slane %v4486_v15, 1  ;;  %v1322_v27 = vshll.u32 %v4486_v15, 16  ;;  %v1320_v29 = vshrl.u32 %v4486_v15, 16 }
  0x78   : > { %v1329_v14 = vrot.slane %v1327_v31, 1  ;;  %v4140_v31 = vmov 0.0  }
  0x79   : > { %v1384_v41 = vld.sshfl [vmem:[#allocation1] sm:$0xff pattern:$0x73625140]  ;;  %v1337_v21 = vsel %vm954_vm2, %v1335_v19, %v1336_v20  ;;  %v1324_v30 = vrot.slane %v1322_v27, 1  ;;  %697 = vst.msk [vmem:[#allocation2 + $0x80] sm:$0xff] %vm680_vm6, %v4140_v31 }
  0x7a   : > { %906 = vrot.lane.b32.xlu2 %v797_v45, %s4138_s18  ;;  %1006 = vrot.lane.b32.xlu0 %v966_v51, %s4139_s19  ;;  %v1387_v26 = vsel %vm1163_vm5, %v1384_v41, 0  ;;  %1575 = vst [vmem:[#allocation1] ss:$4 sm:$0xff] %v677_v24 }
  0x7b   : > { %4114 = vmatpush.bf16.msra.mxu3 %v1387_v26  ;;  %1578 = vst [vmem:[#allocation1 + $0x1] ss:$4 sm:$0xff] %v678_v12  ;;  %1396 = vmatpush.bf16.msra.mxu1 %v1387_v26  ;;  %v1325_v38 = vor.u32 %v1324_v30, %v1320_v29 }
  0x7c   : > { %1581 = vst [vmem:[#allocation1 + $0x2] ss:$4 sm:$0xff] %v679_v13  ;;  %1338 = vrot.lane.b32.xlu1 %v1337_v21, %s4139_s19 }
  0x7d   : > { %v1330_v40 = vsel %vm713_vm3, %v1325_v38, %v1329_v14  ;;  %681 = vst.msk [vmem:[#allocation2] sm:$0xff] %vm680_vm6, %v4140_v31 }
  0x7e   : > { %682 = vst.msk [vmem:[#allocation2 + $0x8] sm:$0xff] %vm680_vm6, %v4140_v31 }
  0x7f   : > { %683 = vst.msk [vmem:[#allocation2 + $0x10] sm:$0xff] %vm680_vm6, %v4140_v31 }
  0x80   : > { %684 = vst.msk [vmem:[#allocation2 + $0x18] sm:$0xff] %vm680_vm6, %v4140_v31 }
  0x81   : > { %685 = vst.msk [vmem:[#allocation2 + $0x20] sm:$0xff] %vm680_vm6, %v4140_v31 }
  0x82   : > { %1002 = vrot.lane.b32.xlu2 %v960_v8, %s4139_s19  ;;  %904 = vrot.lane.b32.xlu0 %v785_v3, %s4138_s18  ;;  %686 = vst.msk [vmem:[#allocation2 + $0x28] sm:$0xff] %vm680_vm6, %v4140_v31 }
  0x83   : > { %v1582_v33 = vld.sshfl [vmem:[#allocation1] sm:$0xff pattern:$0x73625140]  ;;  %687 = vst.msk [vmem:[#allocation2 + $0x30] sm:$0xff] %vm680_vm6, %v4140_v31 }
  0x84   : > { %v1583_v34 = vsel %vm1163_vm5, %v1582_v33, 0  ;;  %688 = vst.msk [vmem:[#allocation2 + $0x38] sm:$0xff] %vm680_vm6, %v4140_v31 }
  0x85   : > { %1592 = vmatpush.bf16.msrb.mxu2 %v1583_v34  ;;  %689 = vst.msk [vmem:[#allocation2 + $0x40] sm:$0xff] %vm680_vm6, %v4140_v31 }
  0x86   : > { %690 = vst.msk [vmem:[#allocation2 + $0x48] sm:$0xff] %vm680_vm6, %v4140_v31 }
  0x87   : > { %691 = vst.msk [vmem:[#allocation2 + $0x50] sm:$0xff] %vm680_vm6, %v4140_v31 }
  0x88   : > { %692 = vst.msk [vmem:[#allocation2 + $0x58] sm:$0xff] %vm680_vm6, %v4140_v31 }
  0x89   : > { %693 = vst.msk [vmem:[#allocation2 + $0x60] sm:$0xff] %vm680_vm6, %v4140_v31 }
  0x8a   : > { %1012 = vrot.lane.b32.xlu0 %v975_v28, %s4139_s19  ;;  %694 = vst.msk [vmem:[#allocation2 + $0x68] sm:$0xff] %vm680_vm6, %v4140_v31 }
  0x8b   : > { %695 = vst.msk [vmem:[#allocation2 + $0x70] sm:$0xff] %vm680_vm6, %v4140_v31 }
  0x8c   : > { %696 = vst.msk [vmem:[#allocation2 + $0x78] sm:$0xff] %vm680_vm6, %v4140_v31 }
  0x8d   : > { %698 = vst.msk [vmem:[#allocation2 + $0x88] sm:$0xff] %vm680_vm6, %v4140_v31 }
  0x8e   : > { %699 = vst.msk [vmem:[#allocation2 + $0x90] sm:$0xff] %vm680_vm6, %v4140_v31 }
  0x8f   : > { %v913_v39 = vpop.permute.xlu2 %912  ;;  %700 = vst.msk [vmem:[#allocation2 + $0x98] sm:$0xff] %vm680_vm6, %v4140_v31 }
  0x90   : > { %v1049_v53 = vsel %vm680_vm6, %v4255_v10, %v913_v39  ;;  %701 = vst.msk [vmem:[#allocation2 + $0xa0] sm:$0xff] %vm680_vm6, %v4140_v31 }
  0x91   : > { %702 = vst.msk [vmem:[#allocation2 + $0xa8] sm:$0xff] %vm680_vm6, %v4140_v31 }
  0x92   : > { %1331 = vrot.lane.b32.xlu0 %v1330_v40, %s4138_s18  ;;  %703 = vst.msk [vmem:[#allocation2 + $0xb0] sm:$0xff] %vm680_vm6, %v4140_v31 }
  0x93   : > { %704 = vst.msk [vmem:[#allocation2 + $0xb8] sm:$0xff] %vm680_vm6, %v4140_v31 }
  0x94   : > { %705 = vst.msk [vmem:[#allocation2 + $0xc0] sm:$0xff] %vm680_vm6, %v4140_v31 }
  0x95   : > { %v911_v43 = vpop.permute.xlu1 %910  ;;  %706 = vst.msk [vmem:[#allocation2 + $0xc8] sm:$0xff] %vm680_vm6, %v4140_v31 }
  0x96   : > { %v909_v50 = vpop.permute.xlu0 %908  ;;  %v1047_v44 = vsel %vm680_vm6, %v4203_v55, %v911_v43  ;;  %707 = vst.msk [vmem:[#allocation2 + $0xd0] sm:$0xff] %vm680_vm6, %v4140_v31 }
  0x97   : > { %v1019_v45 = vpop.permute.xlu2 %1018  ;;  %v1045_v17 = vsel %vm680_vm6, %v4209_v62, %v909_v50  ;;  %708 = vst.msk [vmem:[#allocation2 + $0xd8] sm:$0xff] %vm680_vm6, %v4140_v31 }
  0x98   : > { %v4520_v62 = vsel %vm1060_vm7, %v1049_v53, %v1019_v45  ;;  %709 = vst.msk [vmem:[#allocation2 + $0xe0] sm:$0xff] %vm680_vm6, %v4140_v31 }
  0x99   : > { %710 = vst.msk [vmem:[#allocation2 + $0xe8] sm:$0xff] %vm680_vm6, %v4140_v31 }
  0x9a   : > { %711 = vst.msk [vmem:[#allocation2 + $0xf0] sm:$0xff] %vm680_vm6, %v4140_v31 }
  0x9b   : > { %712 = vst.msk [vmem:[#allocation2 + $0xf8] sm:$0xff] %vm680_vm6, %v4140_v31 }
  0x9d   : > { %v1017_v47 = vpop.permute.xlu1 %1016 }
  0x9e   : > { %v1015_v48 = vpop.permute.xlu0 %1014  ;;  %v4508_v35 = vsel %vm1060_vm7, %v1047_v44, %v1017_v47  ;;  %v1108_v44 = vld [vmem:[#allocation2 + $0x88] sm:$0xff] }
  0x9f   : > { %v4511_v51 = vsel %vm1060_vm7, %v1045_v17, %v1015_v48  ;;  %4037 = vmatmul.msk.bf16.vlgmr.msra.gmra.mxu3 %vm1132_vm8, %v4508_v35 }
  0xa0   : > { %4021 = vmatmul.msk.bf16.vlgmr.msra.gmra.mxu2 %vm1132_vm8, %v4511_v51 }
  0xa2   : > { %v917_v55 = vpop.permute.xlu2 %916 }
  0xa3   : > { %v1053_v0 = vsel %vm680_vm6, %v4305_v37, %v917_v55 }
  0xa5   : > { %v1021_v52 = vpop.permute.xlu1 %1020 }
  0xaa   : > { %v1025_v54 = vpop.permute.xlu2 %1024 }
  0xad   : > { %v919_v59 = vpop.permute.xlu1 %918 }
  0xae   : > { %v1055_v37 = vsel %vm680_vm6, %v4244_v58, %v919_v59 }
  0xaf   : > { %4038 = vmatmul.msk.bf16.gmra.mxu3 %vm1132_vm8, %v4520_v62  ;;  %v4558_v18 = vsel %vm1060_vm7, %v1055_v37, %v1025_v54  ;;  %v1092_v37 = vld [vmem:[#allocation2 + $0x8] sm:$0xff] }
  0xb0   : > { %4022 = vmatmul.msk.bf16.gmra.mxu2 %vm1132_vm8, %v4508_v35  ;;  %v915_v1 = vpop.permute.xlu0 %914 }
  0xb1   : > { %v1051_v2 = vsel %vm680_vm6, %v4217_v6, %v915_v1 }
  0xb2   : > { %v923_v60 = vpop.permute.xlu2 %922  ;;  %v4529_v10 = vsel %vm1060_vm7, %v1051_v2, %v1021_v52 }
  0xb5   : > { %v1027_v61 = vpop.permute.xlu1 %1026 }
  0xba   : > { %v1001_v4 = vpop.permute.xlu2 %1000 }
  0xbc   : > { %v1023_v8 = vpop.permute.xlu0 %1022 }
  0xbd   : > { %v895_v5 = vpop.permute.xlu1 %894 }
  0xbe   : > { %v1031_v56 = vsel %vm680_vm6, %v4291_v11, %v895_v5  ;;  %v4545_v11 = vsel %vm1060_vm7, %v1053_v0, %v1023_v8 }
  0xbf   : > { %v4534_v36 = vsel %vm1060_vm7, %v1031_v56, %v1001_v4  ;;  %4039 = vmatmul.msk.bf16.gmra.mxu3 %vm1132_vm8, %v4529_v10  ;;  %v1110_v4 = vld [vmem:[#allocation2 + $0x98] sm:$0xff] }
  0xc0   : > { %4023 = vmatmul.msk.bf16.gmra.mxu2 %vm1132_vm8, %v4520_v62  ;;  %4013 = vmatmul.msk.bf16.vlgmr.msra.gmra.mxu0 %vm1132_vm8, %v4534_v36 }
  0xc4   : > { %v901_v6 = vpop.permute.xlu2 %900 }
  0xc5   : > { %v1005_v7 = vpop.permute.xlu1 %1004  ;;  %v1037_v39 = vsel %vm680_vm6, %v4404_v23, %v901_v6  ;;  %v1107_v23 = vld [vmem:[#allocation2 + $0x80] sm:$0xff] }
  0xc6   : > { %v1091_v6 = vld [vmem:[#allocation2] sm:$0xff] }
  0xcc   : > { %v1009_v24 = vpop.permute.xlu2 %1008 }
  0xcd   : > { %v903_v12 = vpop.permute.xlu1 %902 }
  0xce   : > { %v1039_v33 = vsel %vm680_vm6, %v4343_v49, %v903_v12 }
  0xcf   : > { %4040 = vmatmul.msk.bf16.gmra.mxu3 %vm1132_vm8, %v4545_v11 }
  0xd0   : > { %4024 = vmatmul.msk.bf16.gmra.mxu2 %vm1132_vm8, %v4529_v10 }
  0xd4   : > { %v4551_v3 = vpop.permute.xlu2 %906  ;;  %v921_v13 = vpop.permute.xlu0 %920 }
  0xd5   : > { %v4553_v41 = vpop.permute.xlu1 %1010  ;;  %v1057_v27 = vsel %vm680_vm6, %v4270_v32, %v921_v13  ;;  %v1059_v32 = vsel %vm680_vm6, %v4356_v57, %v923_v60  ;;  %v1043_v5 = vsel %vm680_vm6, %v4441_v16, %v4551_v3  ;;  %v1111_v16 = vld [vmem:[#allocation2 + $0xa0] sm:$0xff] }
  0xd6   : > { %v4572_v21 = vsel %vm1060_vm7, %v1057_v27, %v1027_v61 }
  0xdc   : > { %v1003_v26 = vpop.permute.xlu2 %1002  ;;  %v1029_v22 = vpop.permute.xlu0 %1028 }
  0xdd   : > { %v897_v19 = vpop.permute.xlu1 %896  ;;  %v4589_v30 = vsel %vm1060_vm7, %v1059_v32, %v1029_v22 }
  0xde   : > { %v1033_v20 = vsel %vm680_vm6, %v4389_v9, %v897_v19 }
  0xdf   : > { %v1064_v25 = vsel %vm1060_vm7, %v1033_v20, %v1003_v26  ;;  %4041 = vmatmul.msk.bf16.gmra.mxu3 %vm1132_vm8, %v4558_v18 }
  0xe0   : > { %4025 = vmatmul.msk.bf16.gmra.mxu2 %vm1132_vm8, %v4545_v11  ;;  %4029 = vmatmul.msk.bf16.vlgmr.msra.gmra.mxu1 %vm1132_vm8, %v1064_v25 }
  0xe1   : > { %4014 = vmatmul.msk.bf16.gmra.mxu0 %vm1132_vm8, %v1064_v25 }
  0xe4   : > { %v899_v58 = vpop.permute.xlu0 %898 }
  0xe5   : > { %v1035_v29 = vsel %vm680_vm6, %v4317_v63, %v899_v58  ;;  %v4613_v63 = vsel %vm1060_vm7, %v1039_v33, %v1009_v24  ;;  %v1112_v58 = vld [vmem:[#allocation2 + $0xa8] sm:$0xff]  ;;  %v1113_v33 = vld [vmem:[#allocation2 + $0xb0] sm:$0xff] }
  0xe6   : > { %v4596_v34 = vsel %vm1060_vm7, %v1035_v29, %v1005_v7 }
  0xec   : > { %v1007_v9 = vpop.permute.xlu0 %1006 }
  0xee   : > { %v1339_v14 = vpop.permute.xlu1 %1338 }
  0xef   : > { %4042 = vmatmul.msk.bf16.gmra.mxu3 %vm1132_vm8, %v4572_v21 }
  0xf0   : > { %4026 = vmatmul.msk.bf16.gmra.mxu2 %vm1132_vm8, %v4558_v18  ;;  %4030 = vmatmul.msk.bf16.gmra.mxu1 %vm1132_vm8, %v4534_v36 }
  0xf1   : > { %4015 = vmatmul.msk.bf16.gmra.mxu0 %vm1132_vm8, %v4534_v36 }
  0xf4   : > { %v4582_v28 = vpop.permute.xlu0 %904 }
  0xf5   : > { %v1041_v47 = vsel %vm680_vm6, %v4374_v46, %v4582_v28  ;;  %v1109_v46 = vld [vmem:[#allocation2 + $0x90] sm:$0xff] }
  0xf6   : > { %v4699_v53 = vsel %vm1060_vm7, %v1041_v47, %v4553_v41 }
  0xfc   : > { %v4600_v57 = vpop.permute.xlu0 %1012 }
  0xfd   : > { %v4716_v8 = vsel %vm1060_vm7, %v1043_v5, %v4600_v57 }
  0xff   : > { %4043 = vmatmul.msk.bf16.gmra.mxu3 %vm1132_vm8, %v4589_v30 }
 0x100   : > { %4027 = vmatmul.msk.bf16.gmra.mxu2 %vm1132_vm8, %v4572_v21  ;;  %4031 = vmatmul.msk.bf16.gmra.mxu1 %vm1132_vm8, %v4596_v34 }
 0x101   : > { %4016 = vmatmul.msk.bf16.gmra.mxu0 %vm1132_vm8, %v4596_v34 }
 0x104   : > { %v1332_v49 = vpop.permute.xlu0 %1331 }
 0x105   : > { %v1341_v38 = vsel %vm680_vm6, %v4486_v15, %v1332_v49  ;;  %v1068_v15 = vsel %vm1060_vm7, %v1037_v39, %v1007_v9  ;;  %v1114_v39 = vld [vmem:[#allocation2 + $0xb8] sm:$0xff] }
 0x106   : > { %v4646_v40 = vsel %vm1060_vm7, %v1341_v38, %v1339_v14 }
 0x10f   : > { %4044 = vmatmul.msk.bf16.gmra.mxu3 %vm1132_vm8, %v4646_v40 }
 0x110   : > { %4028 = vmatmul.msk.bf16.gmra.mxu2 %vm1132_vm8, %v4589_v30  ;;  %4032 = vmatmul.msk.bf16.gmra.mxu1 %vm1132_vm8, %v1068_v15 }
 0x111   : > { %4017 = vmatmul.msk.bf16.gmra.mxu0 %vm1132_vm8, %v1068_v15 }
 0x120   : > { %4045 = vmatmul.msk.bf16.vlgmr.msrb.gmra.mxu2 %vm1132_vm8, %v4534_v36  ;;  %4033 = vmatmul.msk.bf16.gmra.mxu1 %vm1132_vm8, %v4613_v63 }
 0x121   : > { %4018 = vmatmul.msk.bf16.gmra.mxu0 %vm1132_vm8, %v4613_v63 }
 0x122   : > { %v1438_v43 = vpop.f32.mrf.mxu3 }
 0x123   : > { %v1215_v50 = vpop.f32.mrf.mxu2 }
 0x124   : > { %v1271_v45 = vadd.f32 %v1215_v50, %v1107_v23 }
 0x126   : > { %1303 = vst.msk [vmem:[#allocation2 + $0x80] sm:$0xff] %vm680_vm6, %v1271_v45  ;;  %v1093_v45 = vld [vmem:[#allocation2 + $0x10] sm:$0xff] }
 0x12a   : > { %v1440_v17 = vpop.f32.mrf.mxu3 }
 0x12b   : > { %v1217_v48 = vpop.f32.mrf.mxu2 }
 0x12c   : > { %v1272_v55 = vadd.f32 %v1217_v48, %v1108_v44 }
 0x12d   : > { %v1360_v52 = vld [vmem:[#allocation2 + $0x80] sm:$0xff] }
 0x12e   : > { %v1494_v54 = vadd.f32 %v1438_v43, %v1360_v52  ;;  %1304 = vst.msk [vmem:[#allocation2 + $0x88] sm:$0xff] %vm680_vm6, %v1272_v55  ;;  %v1115_v52 = vld [vmem:[#allocation2 + $0xc0] sm:$0xff] }
 0x130   : > { %1526 = vst.msk [vmem:[#allocation2 + $0x80] sm:$0xff] %vm680_vm6, %v1494_v54  ;;  %4046 = vmatmul.msk.bf16.gmra.mxu2 %vm1132_vm8, %v4596_v34  ;;  %4034 = vmatmul.msk.bf16.gmra.mxu1 %vm1132_vm8, %v4699_v53 }
 0x131   : > { %4019 = vmatmul.msk.bf16.gmra.mxu0 %vm1132_vm8, %v4699_v53 }
 0x132   : > { %v1443_v59 = vpop.f32.mrf.mxu3 }
 0x133   : > { %v1220_v60 = vpop.f32.mrf.mxu2 }
 0x134   : > { %v1273_v61 = vadd.f32 %v1220_v60, %v1109_v46 }
 0x135   : > { %v1361_v1 = vld [vmem:[#allocation2 + $0x88] sm:$0xff] }
 0x136   : > { %v1495_v2 = vadd.f32 %v1440_v17, %v1361_v1  ;;  %1305 = vst.msk [vmem:[#allocation2 + $0x90] sm:$0xff] %vm680_vm6, %v1273_v61  ;;  %v1094_v61 = vld [vmem:[#allocation2 + $0x18] sm:$0xff] }
 0x138   : > { %1527 = vst.msk [vmem:[#allocation2 + $0x88] sm:$0xff] %vm680_vm6, %v1495_v2 }
 0x13a   : > { %v1445_v56 = vpop.f32.mrf.mxu3 }
 0x13b   : > { %v1222_v36 = vpop.f32.mrf.mxu2 }
 0x13c   : > { %v1274_v7 = vadd.f32 %v1222_v36, %v1110_v4 }
 0x13d   : > { %v1362_v0 = vld [vmem:[#allocation2 + $0x90] sm:$0xff]  ;;  %v1175_v24 = vpop.f32.mrf.mxu0 }
 0x13e   : > { %v1496_v12 = vadd.f32 %v1443_v59, %v1362_v0  ;;  %1306 = vst.msk [vmem:[#allocation2 + $0x98] sm:$0xff] %vm680_vm6, %v1274_v7  ;;  %v1255_v41 = vadd.f32 %v1175_v24, %v1091_v6 }
 0x140   : > { %1528 = vst.msk [vmem:[#allocation2 + $0x90] sm:$0xff] %vm680_vm6, %v1496_v12  ;;  %4047 = vmatmul.msk.bf16.gmra.mxu2 %vm1132_vm8, %v1068_v15  ;;  %4035 = vmatmul.msk.bf16.gmra.mxu1 %vm1132_vm8, %v4716_v8  ;;  %v1095_v12 = vld [vmem:[#allocation2 + $0x20] sm:$0xff] }
 0x141   : > { %4020 = vmatmul.msk.bf16.gmra.mxu0 %vm1132_vm8, %v4716_v8  ;;  %1287 = vst.msk [vmem:[#allocation2] sm:$0xff] %vm680_vm6, %v1255_v41 }
 0x142   : > { %v1448_v3 = vpop.f32.mrf.mxu3 }
 0x143   : > { %v1225_v13 = vpop.f32.mrf.mxu2 }
 0x144   : > { %v1275_v26 = vadd.f32 %v1225_v13, %v1111_v16 }
 0x145   : > { %v1363_v19 = vld [vmem:[#allocation2 + $0x98] sm:$0xff]  ;;  %v1177_v20 = vpop.f32.mrf.mxu0 }
 0x146   : > { %v1497_v22 = vadd.f32 %v1445_v56, %v1363_v19  ;;  %1307 = vst.msk [vmem:[#allocation2 + $0xa0] sm:$0xff] %vm680_vm6, %v1275_v26  ;;  %v1256_v25 = vadd.f32 %v1177_v20, %v1092_v37  ;;  %v1117_v19 = vld [vmem:[#allocation2 + $0xd0] sm:$0xff] }
 0x148   : > { %1529 = vst.msk [vmem:[#allocation2 + $0x98] sm:$0xff] %vm680_vm6, %v1497_v22  ;;  %v1344_v43 = vld [vmem:[#allocation2] sm:$0xff] }
 0x149   : > { %1288 = vst.msk [vmem:[#allocation2 + $0x8] sm:$0xff] %vm680_vm6, %v1256_v25 }
 0x14a   : > { %v1450_v27 = vpop.f32.mrf.mxu3 }
 0x14b   : > { %v1227_v9 = vpop.f32.mrf.mxu2 }
 0x14c   : > { %v1276_v28 = vadd.f32 %v1227_v9, %v1112_v58 }
 0x14d   : > { %v1364_v32 = vld [vmem:[#allocation2 + $0xa0] sm:$0xff] }
 0x14e   : > { %1308 = vst.msk [vmem:[#allocation2 + $0xa8] sm:$0xff] %vm680_vm6, %v1276_v28  ;;  %v1498_v29 = vadd.f32 %v1448_v3, %v1364_v32 }
 0x150   : > { %1530 = vst.msk [vmem:[#allocation2 + $0xa0] sm:$0xff] %vm680_vm6, %v1498_v29  ;;  %4048 = vmatmul.msk.bf16.gmra.mxu2 %vm1132_vm8, %v4613_v63  ;;  %4036 = vmatmul.msk.bf16.gmra.mxu1 %vm1132_vm8, %v4511_v51  ;;  %v1345_v59 = vld [vmem:[#allocation2 + $0x8] sm:$0xff] }
 0x152   : > { %v1453_v34 = vpop.f32.mrf.mxu3 }
 0x153   : > { %v1230_v57 = vpop.f32.mrf.mxu2 }
 0x154   : > { %v1277_v49 = vadd.f32 %v1230_v57, %v1113_v33 }
 0x155   : > { %v1365_v38 = vld [vmem:[#allocation2 + $0xa8] sm:$0xff] }
 0x156   : > { %1309 = vst.msk [vmem:[#allocation2 + $0xb0] sm:$0xff] %vm680_vm6, %v1277_v49  ;;  %v1499_v14 = vadd.f32 %v1450_v27, %v1365_v38  ;;  %v1096_v27 = vld [vmem:[#allocation2 + $0x28] sm:$0xff] }
 0x158   : > { %1531 = vst.msk [vmem:[#allocation2 + $0xa8] sm:$0xff] %vm680_vm6, %v1499_v14  ;;  %v1097_v14 = vld [vmem:[#allocation2 + $0x30] sm:$0xff] }
 0x15a   : > { %v1455_v15 = vpop.f32.mrf.mxu3 }
 0x15b   : > { %v1232_v23 = vpop.f32.mrf.mxu2 }
 0x15c   : > { %v1278_v50 = vadd.f32 %v1232_v23, %v1114_v39 }
 0x15d   : > { %v1366_v63 = vld [vmem:[#allocation2 + $0xb0] sm:$0xff]  ;;  %v1398_v44 = vpop.f32.mrf.mxu1 }
 0x15e   : > { %1310 = vst.msk [vmem:[#allocation2 + $0xb8] sm:$0xff] %vm680_vm6, %v1278_v50  ;;  %v1500_v47 = vadd.f32 %v1453_v34, %v1366_v63  ;;  %v1478_v17 = vadd.f32 %v1398_v44, %v1344_v43  ;;  %v1180_v48 = vpop.f32.mrf.mxu0  ;;  %v1119_v44 = vld [vmem:[#allocation2 + $0xe0] sm:$0xff] }
 0x15f   : > { %v1257_v55 = vadd.f32 %v1180_v48, %v1093_v45 }
 0x160   : > { %1532 = vst.msk [vmem:[#allocation2 + $0xb0] sm:$0xff] %vm680_vm6, %v1500_v47  ;;  %4049 = vmatmul.msk.bf16.gmra.mxu2 %vm1132_vm8, %v4699_v53  ;;  %v1116_v53 = vld [vmem:[#allocation2 + $0xc8] sm:$0xff] }
 0x161   : > { %1510 = vst.msk [vmem:[#allocation2] sm:$0xff] %vm680_vm6, %v1478_v17 }
 0x162   : > { %1289 = vst.msk [vmem:[#allocation2 + $0x10] sm:$0xff] %vm680_vm6, %v1257_v55  ;;  %v1458_v54 = vpop.f32.mrf.mxu3  ;;  %v1098_v55 = vld [vmem:[#allocation2 + $0x38] sm:$0xff] }
 0x163   : > { %v1235_v46 = vpop.f32.mrf.mxu2 }
 0x164   : > { %v1279_v60 = vadd.f32 %v1235_v46, %v1115_v52 }
 0x165   : > { %v1367_v1 = vld [vmem:[#allocation2 + $0xb8] sm:$0xff]  ;;  %v1400_v2 = vpop.f32.mrf.mxu1 }
 0x166   : > { %1311 = vst.msk [vmem:[#allocation2 + $0xc0] sm:$0xff] %vm680_vm6, %v1279_v60  ;;  %v1501_v4 = vadd.f32 %v1455_v15, %v1367_v1  ;;  %v1479_v5 = vadd.f32 %v1400_v2, %v1345_v59  ;;  %v1182_v56 = vpop.f32.mrf.mxu0 }
 0x167   : > { %v1258_v36 = vadd.f32 %v1182_v56, %v1094_v61  ;;  %v1099_v56 = vld [vmem:[#allocation2 + $0x40] sm:$0xff] }
 0x168   : > { %1533 = vst.msk [vmem:[#allocation2 + $0xb8] sm:$0xff] %vm680_vm6, %v1501_v4 }
 0x169   : > { %1511 = vst.msk [vmem:[#allocation2 + $0x8] sm:$0xff] %vm680_vm6, %v1479_v5  ;;  %v1346_v0 = vld [vmem:[#allocation2 + $0x10] sm:$0xff] }
 0x16a   : > { %1290 = vst.msk [vmem:[#allocation2 + $0x18] sm:$0xff] %vm680_vm6, %v1258_v36  ;;  %v1460_v6 = vpop.f32.mrf.mxu3 }
 0x16b   : > { %v1237_v7 = vpop.f32.mrf.mxu2 }
 0x16c   : > { %v1280_v24 = vadd.f32 %v1237_v7, %v1116_v53 }
 0x16d   : > { %v1368_v41 = vld [vmem:[#allocation2 + $0xc0] sm:$0xff]  ;;  %v1403_v16 = vpop.f32.mrf.mxu1 }
 0x16e   : > { %1312 = vst.msk [vmem:[#allocation2 + $0xc8] sm:$0xff] %vm680_vm6, %v1280_v24  ;;  %v1502_v3 = vadd.f32 %v1458_v54, %v1368_v41  ;;  %v1480_v13 = vadd.f32 %v1403_v16, %v1346_v0  ;;  %v1185_v37 = vpop.f32.mrf.mxu0 }
 0x16f   : > { %v1259_v26 = vadd.f32 %v1185_v37, %v1095_v12  ;;  %v1121_v12 = vld [vmem:[#allocation2 + $0xf0] sm:$0xff]  ;;  %v1100_v37 = vld [vmem:[#allocation2 + $0x48] sm:$0xff] }
 0x170   : > { %1534 = vst.msk [vmem:[#allocation2 + $0xc0] sm:$0xff] %vm680_vm6, %v1502_v3  ;;  %4050 = vmatmul.msk.bf16.gmra.mxu2 %vm1132_vm8, %v4716_v8  ;;  %v1118_v8 = vld [vmem:[#allocation2 + $0xd8] sm:$0xff] }
 0x171   : > { %1512 = vst.msk [vmem:[#allocation2 + $0x10] sm:$0xff] %vm680_vm6, %v1480_v13  ;;  %v1347_v22 = vld [vmem:[#allocation2 + $0x18] sm:$0xff] }
 0x172   : > { %1291 = vst.msk [vmem:[#allocation2 + $0x20] sm:$0xff] %vm680_vm6, %v1259_v26  ;;  %v1463_v25 = vpop.f32.mrf.mxu3 }
 0x173   : > { %v1240_v20 = vpop.f32.mrf.mxu2 }
 0x174   : > { %v1281_v58 = vadd.f32 %v1240_v20, %v1117_v19 }
 0x175   : > { %v1369_v9 = vld [vmem:[#allocation2 + $0xc8] sm:$0xff]  ;;  %v1405_v28 = vpop.f32.mrf.mxu1 }
 0x176   : > { %1313 = vst.msk [vmem:[#allocation2 + $0xd0] sm:$0xff] %vm680_vm6, %v1281_v58  ;;  %v1503_v32 = vadd.f32 %v1460_v6, %v1369_v9  ;;  %v1481_v29 = vadd.f32 %v1405_v28, %v1347_v22  ;;  %v1187_v33 = vpop.f32.mrf.mxu0 }
 0x177   : > { %v1260_v34 = vadd.f32 %v1187_v33, %v1096_v27 }
 0x178   : > { %1535 = vst.msk [vmem:[#allocation2 + $0xc8] sm:$0xff] %vm680_vm6, %v1503_v32 }
 0x179   : > { %1513 = vst.msk [vmem:[#allocation2 + $0x18] sm:$0xff] %vm680_vm6, %v1481_v29  ;;  %v1348_v49 = vld [vmem:[#allocation2 + $0x20] sm:$0xff]  ;;  %v1101_v29 = vld [vmem:[#allocation2 + $0x50] sm:$0xff] }
 0x17a   : > { %1292 = vst.msk [vmem:[#allocation2 + $0x28] sm:$0xff] %vm680_vm6, %v1260_v34  ;;  %v1465_v23 = vpop.f32.mrf.mxu3 }
 0x17b   : > { %v1242_v57 = vpop.f32.mrf.mxu2 }
 0x17c   : > { %v1282_v38 = vadd.f32 %v1242_v57, %v1118_v8 }
 0x17d   : > { %v1370_v39 = vld [vmem:[#allocation2 + $0xd0] sm:$0xff]  ;;  %v1408_v15 = vpop.f32.mrf.mxu1 }
 0x17e   : > { %1314 = vst.msk [vmem:[#allocation2 + $0xd8] sm:$0xff] %vm680_vm6, %v1282_v38  ;;  %v1504_v43 = vadd.f32 %v1463_v25, %v1370_v39  ;;  %v1482_v50 = vadd.f32 %v1408_v15, %v1348_v49  ;;  %v1190_v45 = vpop.f32.mrf.mxu0 }
 0x17f   : > { %v1261_v63 = vadd.f32 %v1190_v45, %v1097_v14  ;;  %v1542_v14 = vld [vmem:[#allocation2] sm:$0xff] }
 0x180   : > { %1536 = vst.msk [vmem:[#allocation2 + $0xd0] sm:$0xff] %vm680_vm6, %v1504_v43  ;;  %4051 = vmatmul.msk.bf16.gmra.mxu2 %vm1132_vm8, %v4511_v51  ;;  %v1120_v51 = vld [vmem:[#allocation2 + $0xe8] sm:$0xff] }
 0x181   : > { %1514 = vst.msk [vmem:[#allocation2 + $0x20] sm:$0xff] %vm680_vm6, %v1482_v50  ;;  %v1349_v17 = vld [vmem:[#allocation2 + $0x28] sm:$0xff]  ;;  %v1102_v50 = vld [vmem:[#allocation2 + $0x58] sm:$0xff] }
 0x182   : > { %1293 = vst.msk [vmem:[#allocation2 + $0x30] sm:$0xff] %vm680_vm6, %v1261_v63  ;;  %v1468_v61 = vpop.f32.mrf.mxu3 }
 0x183   : > { %v1245_v47 = vpop.f32.mrf.mxu2 }
 0x184   : > { %v1283_v48 = vadd.f32 %v1245_v47, %v1119_v44 }
 0x185   : > { %v1371_v52 = vld [vmem:[#allocation2 + $0xd8] sm:$0xff]  ;;  %v1410_v54 = vpop.f32.mrf.mxu1 }
 0x186   : > { %1315 = vst.msk [vmem:[#allocation2 + $0xe0] sm:$0xff] %vm680_vm6, %v1283_v48  ;;  %v1505_v46 = vadd.f32 %v1465_v23, %v1371_v52  ;;  %v1483_v59 = vadd.f32 %v1410_v54, %v1349_v17  ;;  %v1192_v60 = vpop.f32.mrf.mxu0 }
 0x187   : > { %v1262_v1 = vadd.f32 %v1192_v60, %v1098_v55 }
 0x188   : > { %1537 = vst.msk [vmem:[#allocation2 + $0xd8] sm:$0xff] %vm680_vm6, %v1505_v46  ;;  %v1103_v46 = vld [vmem:[#allocation2 + $0x60] sm:$0xff] }
 0x189   : > { %1515 = vst.msk [vmem:[#allocation2 + $0x28] sm:$0xff] %vm680_vm6, %v1483_v59  ;;  %v1350_v4 = vld [vmem:[#allocation2 + $0x30] sm:$0xff] }
 0x18a   : > { %1294 = vst.msk [vmem:[#allocation2 + $0x38] sm:$0xff] %vm680_vm6, %v1262_v1  ;;  %v1470_v41 = vpop.f32.mrf.mxu3 }
 0x18b   : > { %v1247_v2 = vpop.f32.mrf.mxu2 }
 0x18c   : > { %v1284_v5 = vadd.f32 %v1247_v2, %v1120_v51  ;;  %v1544_v2 = vld [vmem:[#allocation2 + $0x10] sm:$0xff] }
 0x18d   : > { %v1372_v36 = vld [vmem:[#allocation2 + $0xe0] sm:$0xff]  ;;  %v1413_v53 = vpop.f32.mrf.mxu1 }
 0x18e   : > { %1316 = vst.msk [vmem:[#allocation2 + $0xe8] sm:$0xff] %vm680_vm6, %v1284_v5  ;;  %v1506_v6 = vadd.f32 %v1468_v61, %v1372_v36  ;;  %v1484_v7 = vadd.f32 %v1413_v53, %v1350_v4  ;;  %v1195_v0 = vpop.f32.mrf.mxu0  ;;  %v1104_v36 = vld [vmem:[#allocation2 + $0x68] sm:$0xff] }
 0x18f   : > { %v1263_v24 = vadd.f32 %v1195_v0, %v1099_v56 }
 0x190   : > { %1538 = vst.msk [vmem:[#allocation2 + $0xe0] sm:$0xff] %vm680_vm6, %v1506_v6  ;;  %4052 = vmatmul.msk.bf16.gmra.mxu2 %vm1132_vm8, %v4508_v35  ;;  %v1122_v35 = vld [vmem:[#allocation2 + $0xf8] sm:$0xff] }
 0x191   : > { %1516 = vst.msk [vmem:[#allocation2 + $0x30] sm:$0xff] %vm680_vm6, %v1484_v7  ;;  %v1351_v3 = vld [vmem:[#allocation2 + $0x38] sm:$0xff] }
 0x192   : > { %1295 = vst.msk [vmem:[#allocation2 + $0x40] sm:$0xff] %vm680_vm6, %v1263_v24  ;;  %v1473_v27 = vpop.f32.mrf.mxu3 }
 0x193   : > { %v1250_v16 = vpop.f32.mrf.mxu2 }
 0x194   : > { %v1285_v13 = vadd.f32 %v1250_v16, %v1121_v12 }
 0x195   : > { %v1373_v26 = vld [vmem:[#allocation2 + $0xe8] sm:$0xff]  ;;  %v1415_v19 = vpop.f32.mrf.mxu1 }
 0x196   : > { %1317 = vst.msk [vmem:[#allocation2 + $0xf0] sm:$0xff] %vm680_vm6, %v1285_v13  ;;  %v1507_v20 = vadd.f32 %v1470_v41, %v1373_v26  ;;  %v1485_v22 = vadd.f32 %v1415_v19, %v1351_v3  ;;  %v1197_v25 = vpop.f32.mrf.mxu0  ;;  %v1105_v3 = vld [vmem:[#allocation2 + $0x70] sm:$0xff] }
 0x197   : > { %v1264_v58 = vadd.f32 %v1197_v25, %v1100_v37 }
 0x198   : > { %1539 = vst.msk [vmem:[#allocation2 + $0xe8] sm:$0xff] %vm680_vm6, %v1507_v20 }
 0x199   : > { %1517 = vst.msk [vmem:[#allocation2 + $0x38] sm:$0xff] %vm680_vm6, %v1485_v22  ;;  %v1352_v28 = vld [vmem:[#allocation2 + $0x40] sm:$0xff] }
 0x19a   : > { %1296 = vst.msk [vmem:[#allocation2 + $0x48] sm:$0xff] %vm680_vm6, %v1264_v58  ;;  %v1475_v15 = vpop.f32.mrf.mxu3  ;;  %v1546_v22 = vld [vmem:[#allocation2 + $0x20] sm:$0xff] }
 0x19b   : > { %v1252_v9 = vpop.f32.mrf.mxu2 }
 0x19c   : > { %v1286_v32 = vadd.f32 %v1252_v9, %v1122_v35 }
 0x19d   : > { %v1374_v33 = vld [vmem:[#allocation2 + $0xf0] sm:$0xff]  ;;  %v1418_v34 = vpop.f32.mrf.mxu1 }
 0x19e   : > { %1318 = vst.msk [vmem:[#allocation2 + $0xf8] sm:$0xff] %vm680_vm6, %v1286_v32  ;;  %v1508_v8 = vadd.f32 %v1473_v27, %v1374_v33  ;;  %v1486_v57 = vadd.f32 %v1418_v34, %v1352_v28  ;;  %v1200_v49 = vpop.f32.mrf.mxu0  ;;  %v1106_v27 = vld [vmem:[#allocation2 + $0x78] sm:$0xff] }
 0x19f   : > { %v1265_v38 = vadd.f32 %v1200_v49, %v1101_v29 }
 0x1a0   : > { %1540 = vst.msk [vmem:[#allocation2 + $0xf0] sm:$0xff] %vm680_vm6, %v1508_v8  ;;  %4053 = vmatmul.msk.bf16.gmra.mxu2 %vm1132_vm8, %v4520_v62  ;;  %v1543_v62 = vld [vmem:[#allocation2 + $0x8] sm:$0xff] }
 0x1a1   : > { %1518 = vst.msk [vmem:[#allocation2 + $0x40] sm:$0xff] %vm680_vm6, %v1486_v57  ;;  %v1353_v23 = vld [vmem:[#allocation2 + $0x48] sm:$0xff] }
 0x1a2   : > { %1297 = vst.msk [vmem:[#allocation2 + $0x50] sm:$0xff] %vm680_vm6, %v1265_v38 }
 0x1a3   : > { %v1594_v39 = vpop.f32.mrf.mxu2 }
 0x1a4   : > { %v1674_v43 = vadd.f32 %v1594_v39, %v1542_v14  ;;  %v1548_v39 = vld [vmem:[#allocation2 + $0x30] sm:$0xff] }
 0x1a5   : > { %v1375_v45 = vld [vmem:[#allocation2 + $0xf8] sm:$0xff]  ;;  %v1420_v63 = vpop.f32.mrf.mxu1 }
 0x1a6   : > { %1706 = vst.msk [vmem:[#allocation2] sm:$0xff] %vm680_vm6, %v1674_v43  ;;  %v1509_v44 = vadd.f32 %v1475_v15, %v1375_v45  ;;  %v1487_v47 = vadd.f32 %v1420_v63, %v1353_v23  ;;  %v1202_v17 = vpop.f32.mrf.mxu0 }
 0x1a7   : > { %v1266_v48 = vadd.f32 %v1202_v17, %v1102_v50 }
 0x1a8   : > { %1541 = vst.msk [vmem:[#allocation2 + $0xf8] sm:$0xff] %vm680_vm6, %v1509_v44  ;;  %v1549_v44 = vld [vmem:[#allocation2 + $0x38] sm:$0xff] }
 0x1a9   : > { %1519 = vst.msk [vmem:[#allocation2 + $0x48] sm:$0xff] %vm680_vm6, %v1487_v47  ;;  %v1354_v52 = vld [vmem:[#allocation2 + $0x50] sm:$0xff] }
 0x1aa   : > { %1298 = vst.msk [vmem:[#allocation2 + $0x58] sm:$0xff] %vm680_vm6, %v1266_v48  ;;  %v1550_v48 = vld [vmem:[#allocation2 + $0x40] sm:$0xff] }
 0x1ab   : > { %v1596_v55 = vpop.f32.mrf.mxu2 }
 0x1ac   : > { %v1675_v54 = vadd.f32 %v1596_v55, %v1543_v62 }
 0x1ad   : > { %v1423_v59 = vpop.f32.mrf.mxu1  ;;  %v4788_v1 = vld [vmem:[#allocation2] sm:$0xff] }
 0x1ae   : > { %1707 = vst.msk [vmem:[#allocation2 + $0x8] sm:$0xff] %vm680_vm6, %v1675_v54  ;;  %v1488_v60 = vadd.f32 %v1423_v59, %v1354_v52  ;;  %v1205_v61 = vpop.f32.mrf.mxu0 }
 0x1af   : > { %v1267_v51 = vadd.f32 %v1205_v61, %v1103_v46  ;;  %2522 = vst.msk [vmem:[#allocation2] sm:$0xff] %vm680_vm6, %v4140_v31 }
 0x1b0   : > { %1520 = vst.msk [vmem:[#allocation2 + $0x50] sm:$0xff] %vm680_vm6, %v1488_v60  ;;  %4054 = vmatmul.msk.bf16.gmra.mxu2 %vm1132_vm8, %v4529_v10  ;;  %v1545_v10 = vld [vmem:[#allocation2 + $0x18] sm:$0xff]  ;;  %v1551_v54 = vld [vmem:[#allocation2 + $0x48] sm:$0xff] }
 0x1b1   : > { %1299 = vst.msk [vmem:[#allocation2 + $0x60] sm:$0xff] %vm680_vm6, %v1267_v51  ;;  %v1355_v5 = vld [vmem:[#allocation2 + $0x58] sm:$0xff] }
 0x1b3   : > { %v1599_v4 = vpop.f32.mrf.mxu2 }
 0x1b4   : > { %v1676_v56 = vadd.f32 %v1599_v4, %v1544_v2 }
 0x1b5   : > { %v1425_v53 = vpop.f32.mrf.mxu1  ;;  %v4797_v0 = vld [vmem:[#allocation2 + $0x8] sm:$0xff] }
 0x1b6   : > { %1708 = vst.msk [vmem:[#allocation2 + $0x10] sm:$0xff] %vm680_vm6, %v1676_v56  ;;  %v1489_v6 = vadd.f32 %v1425_v53, %v1355_v5  ;;  %v1207_v7 = vpop.f32.mrf.mxu0 }
 0x1b7   : > { %v1268_v24 = vadd.f32 %v1207_v7, %v1104_v36  ;;  %2523 = vst.msk [vmem:[#allocation2 + $0x8] sm:$0xff] %vm680_vm6, %v4140_v31 }
 0x1b8   : > { %1521 = vst.msk [vmem:[#allocation2 + $0x58] sm:$0xff] %vm680_vm6, %v1489_v6  ;;  %v1356_v41 = vld [vmem:[#allocation2 + $0x60] sm:$0xff] }
 0x1b9   : > { %1300 = vst.msk [vmem:[#allocation2 + $0x68] sm:$0xff] %vm680_vm6, %v1268_v24 }
 0x1bb   : > { %v1601_v12 = vpop.f32.mrf.mxu2 }
 0x1bc   : > { %v1677_v16 = vadd.f32 %v1601_v12, %v1545_v10 }
 0x1bd   : > { %v1428_v13 = vpop.f32.mrf.mxu1  ;;  %v4804_v19 = vld [vmem:[#allocation2 + $0x10] sm:$0xff] }
 0x1be   : > { %1709 = vst.msk [vmem:[#allocation2 + $0x18] sm:$0xff] %vm680_vm6, %v1677_v16  ;;  %v1490_v37 = vadd.f32 %v1428_v13, %v1356_v41  ;;  %v1210_v26 = vpop.f32.mrf.mxu0 }
 0x1bf   : > { %v1269_v20 = vadd.f32 %v1210_v26, %v1105_v3  ;;  %2524 = vst.msk [vmem:[#allocation2 + $0x10] sm:$0xff] %vm680_vm6, %v4140_v31  ;;  %v1553_v4 = vld [vmem:[#allocation2 + $0x58] sm:$0xff] }
 0x1c0   : > { %1522 = vst.msk [vmem:[#allocation2 + $0x60] sm:$0xff] %vm680_vm6, %v1490_v37  ;;  %4055 = vmatmul.msk.bf16.gmra.mxu2 %vm1132_vm8, %v4545_v11  ;;  %v1357_v58 = vld [vmem:[#allocation2 + $0x68] sm:$0xff] }
 0x1c1   : > { %1301 = vst.msk [vmem:[#allocation2 + $0x70] sm:$0xff] %vm680_vm6, %v1269_v20  ;;  %v1547_v11 = vld [vmem:[#allocation2 + $0x28] sm:$0xff] }
 0x1c3   : > { %v1604_v25 = vpop.f32.mrf.mxu2 }
 0x1c4   : > { %v1678_v35 = vadd.f32 %v1604_v25, %v1546_v22 }
 0x1c5   : > { %v1430_v9 = vpop.f32.mrf.mxu1  ;;  %v4813_v29 = vld [vmem:[#allocation2 + $0x18] sm:$0xff] }
 0x1c6   : > { %1710 = vst.msk [vmem:[#allocation2 + $0x20] sm:$0xff] %vm680_vm6, %v1678_v35  ;;  %v1491_v28 = vadd.f32 %v1430_v9, %v1357_v58  ;;  %v1212_v32 = vpop.f32.mrf.mxu0  ;;  %v1559_v9 = vld [vmem:[#allocation2 + $0x88] sm:$0xff] }
 0x1c7   : > { %v1270_v33 = vadd.f32 %v1212_v32, %v1106_v27  ;;  %2525 = vst.msk [vmem:[#allocation2 + $0x18] sm:$0xff] %vm680_vm6, %v4140_v31  ;;  %v1554_v53 = vld [vmem:[#allocation2 + $0x60] sm:$0xff] }
 0x1c8   : > { %1523 = vst.msk [vmem:[#allocation2 + $0x68] sm:$0xff] %vm680_vm6, %v1491_v28  ;;  %v1358_v8 = vld [vmem:[#allocation2 + $0x70] sm:$0xff] }
 0x1c9   : > { %1302 = vst.msk [vmem:[#allocation2 + $0x78] sm:$0xff] %vm680_vm6, %v1270_v33 }
 0x1cb   : > { %v1606_v34 = vpop.f32.mrf.mxu2 }
 0x1cc   : > { %v1679_v57 = vadd.f32 %v1606_v34, %v1547_v11  ;;  %v1560_v11 = vld [vmem:[#allocation2 + $0x90] sm:$0xff] }
 0x1cd   : > { %v1433_v49 = vpop.f32.mrf.mxu1  ;;  %v4820_v14 = vld [vmem:[#allocation2 + $0x20] sm:$0xff] }
 0x1ce   : > { %1711 = vst.msk [vmem:[#allocation2 + $0x28] sm:$0xff] %vm680_vm6, %v1679_v57  ;;  %v1492_v38 = vadd.f32 %v1433_v49, %v1358_v8  ;;  %v1561_v49 = vld [vmem:[#allocation2 + $0x98] sm:$0xff] }
 0x1cf   : > { %2526 = vst.msk [vmem:[#allocation2 + $0x20] sm:$0xff] %vm680_vm6, %v4140_v31  ;;  %v1555_v10 = vld [vmem:[#allocation2 + $0x68] sm:$0xff] }
 0x1d0   : > { %1524 = vst.msk [vmem:[#allocation2 + $0x70] sm:$0xff] %vm680_vm6, %v1492_v38  ;;  %4056 = vmatmul.msk.bf16.gmra.mxu2 %vm1132_vm8, %v4558_v18  ;;  %v1359_v23 = vld [vmem:[#allocation2 + $0x78] sm:$0xff] }
 0x1d3   : > { %v1609_v15 = vpop.f32.mrf.mxu2 }
 0x1d4   : > { %v1680_v43 = vadd.f32 %v1609_v15, %v1548_v39 }
 0x1d5   : > { %v1435_v50 = vpop.f32.mrf.mxu1  ;;  %v4828_v63 = vld [vmem:[#allocation2 + $0x28] sm:$0xff] }
 0x1d6   : > { %1712 = vst.msk [vmem:[#allocation2 + $0x30] sm:$0xff] %vm680_vm6, %v1680_v43  ;;  %v1493_v45 = vadd.f32 %v1435_v50, %v1359_v23  ;;  %v1562_v23 = vld [vmem:[#allocation2 + $0xa0] sm:$0xff] }
 0x1d7   : > { %2527 = vst.msk [vmem:[#allocation2 + $0x28] sm:$0xff] %vm680_vm6, %v4140_v31 }
 0x1d8   : > { %1525 = vst.msk [vmem:[#allocation2 + $0x78] sm:$0xff] %vm680_vm6, %v1493_v45 }
 0x1db   : > { %v1611_v47 = vpop.f32.mrf.mxu2 }
 0x1dc   : > { %v1681_v17 = vadd.f32 %v1611_v47, %v1549_v44  ;;  %v1563_v44 = vld [vmem:[#allocation2 + $0xa8] sm:$0xff] }
 0x1dd   : > { %v4834_v18 = vld [vmem:[#allocation2 + $0x30] sm:$0xff] }
 0x1de   : > { %1713 = vst.msk [vmem:[#allocation2 + $0x38] sm:$0xff] %vm680_vm6, %v1681_v17 }
 0x1df   : > { %2528 = vst.msk [vmem:[#allocation2 + $0x30] sm:$0xff] %vm680_vm6, %v4140_v31  ;;  %v1557_v26 = vld [vmem:[#allocation2 + $0x78] sm:$0xff] }
 0x1e0   : > { %4057 = vmatmul.msk.bf16.gmra.mxu2 %vm1132_vm8, %v4572_v21  ;;  %v1552_v21 = vld [vmem:[#allocation2 + $0x50] sm:$0xff] }
 0x1e3   : > { %v1614_v62 = vpop.f32.mrf.mxu2 }
 0x1e4   : > { %v1682_v55 = vadd.f32 %v1614_v62, %v1550_v48  ;;  %v1564_v62 = vld [vmem:[#allocation2 + $0xb0] sm:$0xff] }
 0x1e5   : > { %v4841_v52 = vld [vmem:[#allocation2 + $0x38] sm:$0xff] }
 0x1e6   : > { %1714 = vst.msk [vmem:[#allocation2 + $0x40] sm:$0xff] %vm680_vm6, %v1682_v55 }
 0x1e7   : > { %2529 = vst.msk [vmem:[#allocation2 + $0x38] sm:$0xff] %vm680_vm6, %v4140_v31 }
 0x1eb   : > { %v1616_v46 = vpop.f32.mrf.mxu2 }
 0x1ec   : > { %v1683_v59 = vadd.f32 %v1616_v46, %v1551_v54 }
 0x1ed   : > { %v4846_v60 = vld [vmem:[#allocation2 + $0x40] sm:$0xff] }
 0x1ee   : > { %1715 = vst.msk [vmem:[#allocation2 + $0x48] sm:$0xff] %vm680_vm6, %v1683_v59  ;;  %v1565_v59 = vld [vmem:[#allocation2 + $0xb8] sm:$0xff] }
 0x1ef   : > { %2530 = vst.msk [vmem:[#allocation2 + $0x40] sm:$0xff] %vm680_vm6, %v4140_v31 }
 0x1f0   : > { %4058 = vmatmul.msk.bf16.gmra.mxu2 %vm1132_vm8, %v4589_v30 }
 0x1f3   : > { %v1619_v61 = vpop.f32.mrf.mxu2 }
 0x1f4   : > { %v1684_v51 = vadd.f32 %v1619_v61, %v1552_v21 }
 0x1f5   : > { %v4852_v2 = vld [vmem:[#allocation2 + $0x48] sm:$0xff] }
 0x1f6   : > { %2531 = vst.msk [vmem:[#allocation2 + $0x48] sm:$0xff] %vm680_vm6, %v4140_v31 }
 0x1f7   : > { %1716 = vst.msk [vmem:[#allocation2 + $0x50] sm:$0xff] %vm680_vm6, %v1684_v51 }
 0x1fb   : > { %v1621_v5 = vpop.f32.mrf.mxu2 }
 0x1fc   : > { %v1685_v56 = vadd.f32 %v1621_v5, %v1553_v4  ;;  %v1566_v4 = vld [vmem:[#allocation2 + $0xc0] sm:$0xff] }
 0x1fe   : > { %v4857_v36 = vld [vmem:[#allocation2 + $0x50] sm:$0xff]  ;;  %1717 = vst.msk [vmem:[#allocation2 + $0x58] sm:$0xff] %vm680_vm6, %v1685_v56 }
 0x1ff   : > { %2532 = vst.msk [vmem:[#allocation2 + $0x50] sm:$0xff] %vm680_vm6, %v4140_v31 }
 0x200   : > { %4059 = vmatmul.msk.bf16.gmra.mxu2 %vm1132_vm8, %v4646_v40  ;;  %v1556_v40 = vld [vmem:[#allocation2 + $0x70] sm:$0xff] }
 0x203   : > { %v1624_v6 = vpop.f32.mrf.mxu2 }
 0x204   : > { %v1686_v7 = vadd.f32 %v1624_v6, %v1554_v53  ;;  %v1771_v6 = vsel %vm680_vm6, %v4797_v0, 0.0 }
 0x205   : > { %v4864_v24 = vld [vmem:[#allocation2 + $0x58] sm:$0xff] }
 0x206   : > { %2533 = vst.msk [vmem:[#allocation2 + $0x58] sm:$0xff] %vm680_vm6, %v4140_v31 }
 0x207   : > { %1718 = vst.msk [vmem:[#allocation2 + $0x60] sm:$0xff] %vm680_vm6, %v1686_v7  ;;  %v1770_v7 = vsel %vm680_vm6, %v4788_v1, 0.0 }
 0x20b   : > { %v1626_v12 = vpop.f32.mrf.mxu2 }
 0x20c   : > { %v1687_v41 = vadd.f32 %v1626_v12, %v1555_v10  ;;  %v1773_v10 = vsel %vm680_vm6, %v4804_v19, 0.0  ;;  %v1567_v12 = vld [vmem:[#allocation2 + $0xc8] sm:$0xff] }
 0x20e   : > { %v4869_v16 = vld [vmem:[#allocation2 + $0x60] sm:$0xff]  ;;  %1719 = vst.msk [vmem:[#allocation2 + $0x68] sm:$0xff] %vm680_vm6, %v1687_v41 }
 0x20f   : > { %2534 = vst.msk [vmem:[#allocation2 + $0x60] sm:$0xff] %vm680_vm6, %v4140_v31 }
 0x210   : > { %4060 = vmatmul.msk.bf16.gmra.mxu2 %vm1132_vm8, %v4589_v30  ;;  %v1558_v30 = vld [vmem:[#allocation2 + $0x80] sm:$0xff] }
 0x213   : > { %v1629_v3 = vpop.f32.mrf.mxu2 }
 0x214   : > { %v1688_v13 = vadd.f32 %v1629_v3, %v1556_v40  ;;  %v1772_v40 = vadd.f32 %v1771_v6, %v1770_v7  ;;  %v1570_v7 = vld [vmem:[#allocation2 + $0xe0] sm:$0xff] }
 0x215   : > { %v4876_v37 = vld [vmem:[#allocation2 + $0x68] sm:$0xff] }
 0x216   : > { %2535 = vst.msk [vmem:[#allocation2 + $0x68] sm:$0xff] %vm680_vm6, %v4140_v31 }
 0x217   : > { %1720 = vst.msk [vmem:[#allocation2 + $0x70] sm:$0xff] %vm680_vm6, %v1688_v13  ;;  %v1775_v13 = vsel %vm680_vm6, %v4813_v29, 0.0 }
 0x21b   : > { %v1631_v20 = vpop.f32.mrf.mxu2 }
 0x21c   : > { %v1689_v22 = vadd.f32 %v1631_v20, %v1557_v26  ;;  %v1774_v26 = vadd.f32 %v1773_v10, %v1772_v40 }
 0x21e   : > { %v4881_v25 = vld [vmem:[#allocation2 + $0x70] sm:$0xff]  ;;  %1721 = vst.msk [vmem:[#allocation2 + $0x78] sm:$0xff] %vm680_vm6, %v1689_v22  ;;  %v1777_v22 = vsel %vm680_vm6, %v4820_v14, 0.0 }
 0x21f   : > { %2536 = vst.msk [vmem:[#allocation2 + $0x70] sm:$0xff] %vm680_vm6, %v4140_v31  ;;  %v1797_v6 = vsel %vm680_vm6, %v4881_v25, 0.0 }
 0x223   : > { %v1634_v58 = vpop.f32.mrf.mxu2 }
 0x224   : > { %v1690_v35 = vadd.f32 %v1634_v58, %v1558_v30  ;;  %v1776_v30 = vadd.f32 %v1775_v13, %v1774_v26  ;;  %v1779_v58 = vsel %vm680_vm6, %v4828_v63, 0.0 }
 0x225   : > { %v4886_v27 = vld [vmem:[#allocation2 + $0x78] sm:$0xff] }
 0x226   : > { %2537 = vst.msk [vmem:[#allocation2 + $0x78] sm:$0xff] %vm680_vm6, %v4140_v31 }
 0x227   : > { %1722 = vst.msk [vmem:[#allocation2 + $0x80] sm:$0xff] %vm680_vm6, %v1690_v35  ;;  %v1778_v35 = vadd.f32 %v1777_v22, %v1776_v30 }
 0x22b   : > { %v1636_v28 = vpop.f32.mrf.mxu2 }
 0x22c   : > { %v1691_v32 = vadd.f32 %v1636_v28, %v1559_v9  ;;  %v1781_v9 = vsel %vm680_vm6, %v4834_v18, 0.0  ;;  %v1568_v28 = vld [vmem:[#allocation2 + $0xd0] sm:$0xff] }
 0x22e   : > { %v4891_v33 = vld [vmem:[#allocation2 + $0x80] sm:$0xff]  ;;  %1723 = vst.msk [vmem:[#allocation2 + $0x88] sm:$0xff] %vm680_vm6, %v1691_v32 }
 0x22f   : > { %2538 = vst.msk [vmem:[#allocation2 + $0x80] sm:$0xff] %vm680_vm6, %v4140_v31  ;;  %v1801_v26 = vsel %vm680_vm6, %v4891_v33, 0.0 }
 0x233   : > { %v1639_v34 = vpop.f32.mrf.mxu2 }
 0x234   : > { %v1692_v8 = vadd.f32 %v1639_v34, %v1560_v11  ;;  %v1780_v11 = vadd.f32 %v1779_v58, %v1778_v35 }
 0x235   : > { %v4896_v57 = vld [vmem:[#allocation2 + $0x88] sm:$0xff] }
 0x236   : > { %2539 = vst.msk [vmem:[#allocation2 + $0x88] sm:$0xff] %vm680_vm6, %v4140_v31  ;;  %v1803_v30 = vsel %vm680_vm6, %v4896_v57, 0.0 }
 0x237   : > { %1724 = vst.msk [vmem:[#allocation2 + $0x90] sm:$0xff] %vm680_vm6, %v1692_v8  ;;  %v1783_v8 = vsel %vm680_vm6, %v4841_v52, 0.0 }
 0x23b   : > { %v1641_v38 = vpop.f32.mrf.mxu2 }
 0x23c   : > { %v1693_v39 = vadd.f32 %v1641_v38, %v1561_v49  ;;  %v1782_v38 = vadd.f32 %v1781_v9, %v1780_v11  ;;  %v1571_v9 = vld [vmem:[#allocation2 + $0xe8] sm:$0xff] }
 0x23e   : > { %v4901_v15 = vld [vmem:[#allocation2 + $0x90] sm:$0xff]  ;;  %1725 = vst.msk [vmem:[#allocation2 + $0x98] sm:$0xff] %vm680_vm6, %v1693_v39  ;;  %v1785_v39 = vsel %vm680_vm6, %v4846_v60, 0.0 }
 0x23f   : > { %2540 = vst.msk [vmem:[#allocation2 + $0x90] sm:$0xff] %vm680_vm6, %v4140_v31  ;;  %v1805_v35 = vsel %vm680_vm6, %v4901_v15, 0.0 }
 0x243   : > { %v1644_v43 = vpop.f32.mrf.mxu2 }
 0x244   : > { %v1694_v50 = vadd.f32 %v1644_v43, %v1562_v23  ;;  %v1784_v23 = vadd.f32 %v1783_v8, %v1782_v38  ;;  %v1787_v43 = vsel %vm680_vm6, %v4852_v2, 0.0 }
 0x245   : > { %v4906_v45 = vld [vmem:[#allocation2 + $0x98] sm:$0xff] }
 0x246   : > { %2541 = vst.msk [vmem:[#allocation2 + $0x98] sm:$0xff] %vm680_vm6, %v4140_v31  ;;  %v1807_v11 = vsel %vm680_vm6, %v4906_v45, 0.0 }
 0x247   : > { %1726 = vst.msk [vmem:[#allocation2 + $0xa0] sm:$0xff] %vm680_vm6, %v1694_v50  ;;  %v1786_v50 = vadd.f32 %v1785_v39, %v1784_v23 }
 0x24b   : > { %v1646_v47 = vpop.f32.mrf.mxu2 }
 0x24c   : > { %v1695_v17 = vadd.f32 %v1646_v47, %v1563_v44  ;;  %v1789_v44 = vsel %vm680_vm6, %v4857_v36, 0.0  ;;  %v1569_v47 = vld [vmem:[#allocation2 + $0xd8] sm:$0xff] }
 0x24e   : > { %v4911_v48 = vld [vmem:[#allocation2 + $0xa0] sm:$0xff]  ;;  %1727 = vst.msk [vmem:[#allocation2 + $0xa8] sm:$0xff] %vm680_vm6, %v1695_v17 }
 0x24f   : > { %2542 = vst.msk [vmem:[#allocation2 + $0xa0] sm:$0xff] %vm680_vm6, %v4140_v31  ;;  %v1809_v38 = vsel %vm680_vm6, %v4911_v48, 0.0 }
 0x253   : > { %v1649_v55 = vpop.f32.mrf.mxu2 }
 0x254   : > { %v1696_v54 = vadd.f32 %v1649_v55, %v1564_v62  ;;  %v1788_v62 = vadd.f32 %v1787_v43, %v1786_v50  ;;  %v1791_v55 = vsel %vm680_vm6, %v4864_v24, 0.0 }
 0x255   : > { %v4916_v46 = vld [vmem:[#allocation2 + $0xa8] sm:$0xff] }
 0x256   : > { %2543 = vst.msk [vmem:[#allocation2 + $0xa8] sm:$0xff] %vm680_vm6, %v4140_v31  ;;  %v1811_v43 = vsel %vm680_vm6, %v4916_v46, 0.0 }
 0x257   : > { %1728 = vst.msk [vmem:[#allocation2 + $0xb0] sm:$0xff] %vm680_vm6, %v1696_v54 }
 0x25b   : > { %v1651_v21 = vpop.f32.mrf.mxu2 }
 0x25c   : > { %v1697_v61 = vadd.f32 %v1651_v21, %v1565_v59  ;;  %v1790_v59 = vadd.f32 %v1789_v44, %v1788_v62  ;;  %v1793_v21 = vsel %vm680_vm6, %v4869_v16, 0.0 }
 0x25e   : > { %v4921_v51 = vld [vmem:[#allocation2 + $0xb0] sm:$0xff]  ;;  %1729 = vst.msk [vmem:[#allocation2 + $0xb8] sm:$0xff] %vm680_vm6, %v1697_v61 }
 0x25f   : > { %2544 = vst.msk [vmem:[#allocation2 + $0xb0] sm:$0xff] %vm680_vm6, %v4140_v31  ;;  %v1813_v44 = vsel %vm680_vm6, %v4921_v51, 0.0 }
 0x263   : > { %v1654_v5 = vpop.f32.mrf.mxu2 }
 0x264   : > { %v1698_v56 = vadd.f32 %v1654_v5, %v1566_v4  ;;  %v1792_v4 = vadd.f32 %v1791_v55, %v1790_v59  ;;  %v1795_v5 = vsel %vm680_vm6, %v4876_v37, 0.0 }
 0x265   : > { %v4926_v53 = vld [vmem:[#allocation2 + $0xb8] sm:$0xff] }
 0x266   : > { %2545 = vst.msk [vmem:[#allocation2 + $0xb8] sm:$0xff] %vm680_vm6, %v4140_v31  ;;  %v1815_v55 = vsel %vm680_vm6, %v4926_v53, 0.0 }
 0x267   : > { %1730 = vst.msk [vmem:[#allocation2 + $0xc0] sm:$0xff] %vm680_vm6, %v1698_v56  ;;  %v1794_v56 = vadd.f32 %v1793_v21, %v1792_v4 }
 0x26b   : > { %v1656_v41 = vpop.f32.mrf.mxu2 }
 0x26c   : > { %v1699_v3 = vadd.f32 %v1656_v41, %v1567_v12  ;;  %v1796_v12 = vadd.f32 %v1795_v5, %v1794_v56  ;;  %v1799_v41 = vsel %vm680_vm6, %v4886_v27, 0.0 }
 0x26e   : > { %v4939_v20 = vld [vmem:[#allocation2 + $0xc0] sm:$0xff]  ;;  %1731 = vst.msk [vmem:[#allocation2 + $0xc8] sm:$0xff] %vm680_vm6, %v1699_v3  ;;  %v1798_v13 = vadd.f32 %v1797_v6, %v1796_v12 }
 0x26f   : > { %2546 = vst.msk [vmem:[#allocation2 + $0xc0] sm:$0xff] %vm680_vm6, %v4140_v31  ;;  %v1817_v4 = vsel %vm680_vm6, %v4939_v20, 0.0 }
 0x270   : > { %v1800_v22 = vadd.f32 %v1799_v41, %v1798_v13 }
 0x272   : > { %v1802_v58 = vadd.f32 %v1801_v26, %v1800_v22 }
 0x273   : > { %v1659_v32 = vpop.f32.mrf.mxu2 }
 0x274   : > { %v1700_v34 = vadd.f32 %v1659_v32, %v1568_v28  ;;  %v1804_v32 = vadd.f32 %v1803_v30, %v1802_v58 }
 0x275   : > { %v4952_v49 = vld [vmem:[#allocation2 + $0xc8] sm:$0xff] }
 0x276   : > { %2547 = vst.msk [vmem:[#allocation2 + $0xc8] sm:$0xff] %vm680_vm6, %v4140_v31  ;;  %v1806_v8 = vadd.f32 %v1805_v35, %v1804_v32  ;;  %v1819_v56 = vsel %vm680_vm6, %v4952_v49, 0.0 }
 0x277   : > { %1732 = vst.msk [vmem:[#allocation2 + $0xd0] sm:$0xff] %vm680_vm6, %v1700_v34 }
 0x278   : > { %v1808_v23 = vadd.f32 %v1807_v11, %v1806_v8 }
 0x27a   : > { %v1810_v50 = vadd.f32 %v1809_v38, %v1808_v23  ;;  %v2513_v38 = vld [vmem:[%s6318_s2] sm:$0x3]  ;;  %v2514_v23 = vld [vmem:[%s6318_s2 + $0x2] sm:$0x3] }
 0x27b   : > { %v1661_v17 = vpop.f32.mrf.mxu2  ;;  %2962 = vst [vmem:[#allocation1] ss:$4 sm:$0xff] %v2513_v38 }
 0x27c   : > { %v1701_v54 = vadd.f32 %v1661_v17, %v1569_v47  ;;  %v1572_v47 = vld [vmem:[#allocation2 + $0xf0] sm:$0xff]  ;;  %v1812_v62 = vadd.f32 %v1811_v43, %v1810_v50  ;;  %v2515_v50 = vld [vmem:[%s6318_s2 + $0x4] sm:$0x3]  ;;  %2965 = vst [vmem:[#allocation1 + $0x1] ss:$4 sm:$0xff] %v2514_v23 }
 0x27d   : > { %2968 = vst [vmem:[#allocation1 + $0x2] ss:$4 sm:$0xff] %v2515_v50 }
 0x27e   : > { %v4967_v61 = vld [vmem:[#allocation2 + $0xd0] sm:$0xff]  ;;  %1733 = vst.msk [vmem:[#allocation2 + $0xd8] sm:$0xff] %vm680_vm6, %v1701_v54  ;;  %v1814_v21 = vadd.f32 %v1813_v44, %v1812_v62  ;;  %v2518_v62 = vld [vmem:[%s6318_s2 + $0xa] sm:$0x3] }
 0x27f   : > { %2548 = vst.msk [vmem:[#allocation2 + $0xd0] sm:$0xff] %vm680_vm6, %v4140_v31 }
 0x280   : > { %v1816_v5 = vadd.f32 %v1815_v55, %v1814_v21 }
 0x282   : > { %v1818_v6 = vadd.f32 %v1817_v4, %v1816_v5 }
 0x283   : > { %v1664_v10 = vpop.f32.mrf.mxu2 }
 0x284   : > { %v1702_v40 = vadd.f32 %v1664_v10, %v1570_v7  ;;  %v1821_v7 = vsel %vm680_vm6, %v4967_v61, 0.0  ;;  %v1573_v10 = vld [vmem:[#allocation2 + $0xf8] sm:$0xff]  ;;  %v1820_v41 = vadd.f32 %v1819_v56, %v1818_v6 }
 0x285   : > { %v4978_v3 = vld [vmem:[#allocation2 + $0xd8] sm:$0xff] }
 0x286   : > { %2549 = vst.msk [vmem:[#allocation2 + $0xd8] sm:$0xff] %vm680_vm6, %v4140_v31  ;;  %v1822_v26 = vadd.f32 %v1821_v7, %v1820_v41  ;;  %v2969_v55 = vld.sshfl [vmem:[#allocation1] sm:$0xff pattern:$0x73625140] }
 0x287   : > { %1734 = vst.msk [vmem:[#allocation2 + $0xe0] sm:$0xff] %vm680_vm6, %v1702_v40  ;;  %v1823_v40 = vsel %vm680_vm6, %v4978_v3, 0.0  ;;  %v3000_v21 = vsel %vm1163_vm5, %v2969_v55, 0 }
 0x288   : > { %v1824_v58 = vadd.f32 %v1823_v40, %v1822_v26  ;;  %3009 = vmatpush.bf16.msrb.mxu3 %v3000_v21  ;;  %3219 = vst [vmem:[#allocation1 + $0x2] ss:$4 sm:$0xff] %v2518_v62 }
 0x28b   : > { %v1666_v28 = vpop.f32.mrf.mxu2 }
 0x28c   : > { %v1703_v34 = vadd.f32 %v1666_v28, %v1571_v9 }
 0x28e   : > { %v4993_v39 = vld [vmem:[#allocation2 + $0xe0] sm:$0xff]  ;;  %1735 = vst.msk [vmem:[#allocation2 + $0xe8] sm:$0xff] %vm680_vm6, %v1703_v34 }
 0x28f   : > { %2550 = vst.msk [vmem:[#allocation2 + $0xe0] sm:$0xff] %vm680_vm6, %v4140_v31  ;;  %v1825_v22 = vsel %vm680_vm6, %v4993_v39, 0.0 }
 0x290   : > { %v1826_v9 = vadd.f32 %v1825_v22, %v1824_v58 }
 0x293   : > { %v1669_v17 = vpop.f32.mrf.mxu2 }
 0x294   : > { %v1704_v54 = vadd.f32 %v1669_v17, %v1572_v47  ;;  %v2517_v17 = vld [vmem:[%s6318_s2 + $0x8] sm:$0x3] }
 0x295   : > { %v5004_v59 = vld [vmem:[#allocation2 + $0xe8] sm:$0xff]  ;;  %3216 = vst [vmem:[#allocation1 + $0x1] ss:$4 sm:$0xff] %v2517_v17 }
 0x296   : > { %2551 = vst.msk [vmem:[#allocation2 + $0xe8] sm:$0xff] %vm680_vm6, %v4140_v31  ;;  %v1827_v35 = vsel %vm680_vm6, %v5004_v59, 0.0 }
 0x297   : > { %1736 = vst.msk [vmem:[#allocation2 + $0xf0] sm:$0xff] %vm680_vm6, %v1704_v54  ;;  %v1828_v32 = vadd.f32 %v1827_v35, %v1826_v9 }
 0x29b   : > { %v1671_v12 = vpop.f32.mrf.mxu2 }
 0x29c   : > { %v1705_v13 = vadd.f32 %v1671_v12, %v1573_v10 }
 0x29e   : > { %v5019_v30 = vld [vmem:[#allocation2 + $0xf0] sm:$0xff]  ;;  %1737 = vst.msk [vmem:[#allocation2 + $0xf8] sm:$0xff] %vm680_vm6, %v1705_v13 }
 0x29f   : > { %2552 = vst.msk [vmem:[#allocation2 + $0xf0] sm:$0xff] %vm680_vm6, %v4140_v31  ;;  %v1829_v28 = vsel %vm680_vm6, %v5019_v30, 0.0 }
 0x2a0   : > { %v1830_v34 = vadd.f32 %v1829_v28, %v1828_v32 }
 0x2a5   : > { %v5028_v11 = vld [vmem:[#allocation2 + $0xf8] sm:$0xff] }
 0x2a6   : > { %v1831_v8 = vsel %vm680_vm6, %v5028_v11, 0.0  ;;  %2553 = vst.msk [vmem:[#allocation2 + $0xf8] sm:$0xff] %vm680_vm6, %v4140_v31  ;;  %v2516_v31 = vld [vmem:[%s6318_s2 + $0x6] sm:$0x3] }
 0x2a7   : > { %v1832_v43 = vadd.f32 %v1831_v8, %v1830_v34  ;;  %3213 = vst [vmem:[#allocation1] ss:$4 sm:$0xff] %v2516_v31 }
 0x2a9   : > { %v1833_v44 = vrot.slane %v1832_v43, 4 }
 0x2ab   : > { %v1834_v47 = vadd.f32 %v1833_v44, %v1832_v43 }
 0x2ad   : > { %v1835_v54 = vrot.slane %v1834_v47, 2 }
 0x2af   : > { %v1836_v4 = vadd.f32 %v1835_v54, %v1834_v47 }
 0x2b1   : > { %v1837_v5 = vrot.slane %v1836_v4, 1 }
 0x2b3   : > { %v1838_v56 = vadd.f32 %v1837_v5, %v1836_v4 }
 0x2b5   : > { %v5053_v6 = vmul.f32 0.00390625, %v1838_v56 }
 0x2b7   : > { %v5057_v7 = vsub.f32 %v4788_v1, %v5053_v6  ;;  %v5061_v10 = vsub.f32 %v4797_v0, %v5053_v6  ;;  %v5065_v12 = vsub.f32 %v4804_v19, %v5053_v6  ;;  %v5069_v41 = vsub.f32 %v4813_v29, %v5053_v6 }
 0x2b8   : > { %v5077_v1 = vsub.f32 %v4820_v14, %v5053_v6  ;;  %v5084_v26 = vsub.f32 %v4828_v63, %v5053_v6  ;;  %v5091_v35 = vsub.f32 %v4834_v18, %v5053_v6  ;;  %v5098_v63 = vsub.f32 %v4841_v52, %v5053_v6 }
 0x2b9   : > { %v1872_v40 = vmul.f32 %v5057_v7, %v5057_v7  ;;  %v1873_v13 = vmul.f32 %v5061_v10, %v5061_v10  ;;  %v1874_v0 = vmul.f32 %v5065_v12, %v5065_v12  ;;  %v1875_v29 = vmul.f32 %v5069_v41, %v5069_v41 }
 0x2ba   : > { %v1876_v14 = vmul.f32 %v5077_v1, %v5077_v1  ;;  %v1877_v32 = vmul.f32 %v5084_v26, %v5084_v26  ;;  %v5105_v18 = vsub.f32 %v4846_v60, %v5053_v6  ;;  %v1878_v38 = vmul.f32 %v5091_v35, %v5091_v35 }
 0x2bb   : > { %v1904_v19 = vsel %vm680_vm6, %v1872_v40, 0.0  ;;  %v1905_v22 = vsel %vm680_vm6, %v1873_v13, 0.0  ;;  %v1907_v9 = vsel %vm680_vm6, %v1874_v0, 0.0  ;;  %v1909_v34 = vsel %vm680_vm6, %v1875_v29, 0.0 }
 0x2bc   : > { %v1906_v58 = vadd.f32 %v1905_v22, %v1904_v19  ;;  %v1911_v23 = vsel %vm680_vm6, %v1876_v14, 0.0  ;;  %v5112_v52 = vsub.f32 %v4852_v2, %v5053_v6  ;;  %v1879_v50 = vmul.f32 %v5098_v63, %v5098_v63 }
 0x2bd   : > { %v1913_v44 = vsel %vm680_vm6, %v1877_v32, 0.0  ;;  %v5119_v60 = vsub.f32 %v4857_v36, %v5053_v6  ;;  %v1880_v31 = vmul.f32 %v5105_v18, %v5105_v18  ;;  %v1915_v17 = vsel %vm680_vm6, %v1878_v38, 0.0 }
 0x2be   : > { %v1908_v28 = vadd.f32 %v1907_v9, %v1906_v58  ;;  %v5126_v2 = vsub.f32 %v4864_v24, %v5053_v6  ;;  %v1881_v55 = vmul.f32 %v5112_v52, %v5112_v52  ;;  %v1917_v54 = vsel %vm680_vm6, %v1879_v50, 0.0 }
 0x2bf   : > { %v5133_v36 = vsub.f32 %v4869_v16, %v5053_v6  ;;  %v1882_v4 = vmul.f32 %v5119_v60, %v5119_v60  ;;  %v1919_v5 = vsel %vm680_vm6, %v1880_v31, 0.0  ;;  %v5140_v24 = vsub.f32 %v4876_v37, %v5053_v6 }
 0x2c0   : > { %v1910_v8 = vadd.f32 %v1909_v34, %v1908_v28  ;;  %v1883_v40 = vmul.f32 %v5126_v2, %v5126_v2  ;;  %v1921_v13 = vsel %vm680_vm6, %v1881_v55, 0.0  ;;  %v5147_v16 = vsub.f32 %v4881_v25, %v5053_v6 }
 0x2c1   : > { %v1884_v19 = vmul.f32 %v5133_v36, %v5133_v36  ;;  %v1923_v29 = vsel %vm680_vm6, %v1882_v4, 0.0  ;;  %v5154_v37 = vsub.f32 %v4886_v27, %v5053_v6  ;;  %v1885_v58 = vmul.f32 %v5140_v24, %v5140_v24 }
 0x2c2   : > { %v1912_v43 = vadd.f32 %v1911_v23, %v1910_v8  ;;  %v1925_v14 = vsel %vm680_vm6, %v1883_v40, 0.0  ;;  %v5161_v25 = vsub.f32 %v4891_v33, %v5053_v6  ;;  %v1886_v28 = vmul.f32 %v5147_v16, %v5147_v16 }
 0x2c3   : > { %v1927_v32 = vsel %vm680_vm6, %v1884_v19, 0.0  ;;  %v5168_v27 = vsub.f32 %v4896_v57, %v5053_v6  ;;  %v1887_v8 = vmul.f32 %v5154_v37, %v5154_v37  ;;  %v1929_v38 = vsel %vm680_vm6, %v1885_v58, 0.0 }
 0x2c4   : > { %v1914_v47 = vadd.f32 %v1913_v44, %v1912_v43  ;;  %v5175_v33 = vsub.f32 %v4901_v15, %v5053_v6  ;;  %v1888_v43 = vmul.f32 %v5161_v25, %v5161_v25  ;;  %v1931_v50 = vsel %vm680_vm6, %v1886_v28, 0.0 }
 0x2c5   : > { %v5182_v57 = vsub.f32 %v4906_v45, %v5053_v6  ;;  %v1933_v31 = vsel %vm680_vm6, %v1887_v8, 0.0  ;;  %v5189_v15 = vsub.f32 %v4911_v48, %v5053_v6  ;;  %v5196_v45 = vsub.f32 %v4916_v46, %v5053_v6 }
 0x2c6   : > { %v1916_v62 = vadd.f32 %v1915_v17, %v1914_v47  ;;  %v1889_v47 = vmul.f32 %v5168_v27, %v5168_v27  ;;  %v1935_v55 = vsel %vm680_vm6, %v1888_v43, 0.0  ;;  %v5203_v48 = vsub.f32 %v4921_v51, %v5053_v6 }
 0x2c7   : > { %v5210_v46 = vsub.f32 %v4926_v53, %v5053_v6  ;;  %v5217_v51 = vsub.f32 %v4939_v20, %v5053_v6  ;;  %v5224_v53 = vsub.f32 %v4952_v49, %v5053_v6  ;;  %v5231_v20 = vsub.f32 %v4967_v61, %v5053_v6 }
 0x2c8   : > { %v1918_v21 = vadd.f32 %v1917_v54, %v1916_v62  ;;  %v1890_v62 = vmul.f32 %v5175_v33, %v5175_v33  ;;  %v1937_v4 = vsel %vm680_vm6, %v1889_v47, 0.0  ;;  %v5238_v49 = vsub.f32 %v4978_v3, %v5053_v6 }
 0x2c9   : > { %v5245_v61 = vsub.f32 %v4993_v39, %v5053_v6  ;;  %v5252_v3 = vsub.f32 %v5004_v59, %v5053_v6  ;;  %v5259_v39 = vsub.f32 %v5019_v30, %v5053_v6  ;;  %v5266_v59 = vsub.f32 %v5028_v11, %v5053_v6 }
 0x2ca   : > { %v1920_v56 = vadd.f32 %v1919_v5, %v1918_v21  ;;  %v1891_v21 = vmul.f32 %v5182_v57, %v5182_v57  ;;  %v1939_v40 = vsel %vm680_vm6, %v1890_v62, 0.0 }
 0x2cb   : > { %v1902_v30 = vmul.f32 %v5259_v39, %v5259_v39 }
 0x2cc   : > { %v1922_v0 = vadd.f32 %v1921_v13, %v1920_v56  ;;  %v1892_v56 = vmul.f32 %v5189_v15, %v5189_v15  ;;  %v1941_v19 = vsel %vm680_vm6, %v1891_v21, 0.0 }
 0x2cd   : > { %v1963_v11 = vsel %vm680_vm6, %v1902_v30, 0.0 }
 0x2ce   : > { %v1924_v22 = vadd.f32 %v1923_v29, %v1922_v0  ;;  %v1893_v0 = vmul.f32 %v5196_v45, %v5196_v45  ;;  %v1943_v58 = vsel %vm680_vm6, %v1892_v56, 0.0 }
 0x2d0   : > { %v1926_v9 = vadd.f32 %v1925_v14, %v1924_v22  ;;  %v1894_v22 = vmul.f32 %v5203_v48, %v5203_v48  ;;  %v1945_v28 = vsel %vm680_vm6, %v1893_v0, 0.0 }
 0x2d2   : > { %v1928_v34 = vadd.f32 %v1927_v32, %v1926_v9  ;;  %v1895_v9 = vmul.f32 %v5210_v46, %v5210_v46  ;;  %v1947_v8 = vsel %vm680_vm6, %v1894_v22, 0.0 }
 0x2d4   : > { %v1930_v23 = vadd.f32 %v1929_v38, %v1928_v34  ;;  %v1896_v34 = vmul.f32 %v5217_v51, %v5217_v51  ;;  %v1949_v43 = vsel %vm680_vm6, %v1895_v9, 0.0 }
 0x2d6   : > { %v1932_v44 = vadd.f32 %v1931_v50, %v1930_v23  ;;  %v1897_v23 = vmul.f32 %v5224_v53, %v5224_v53  ;;  %v1951_v47 = vsel %vm680_vm6, %v1896_v34, 0.0 }
 0x2d8   : > { %v1934_v17 = vadd.f32 %v1933_v31, %v1932_v44  ;;  %v1898_v44 = vmul.f32 %v5231_v20, %v5231_v20  ;;  %v1953_v62 = vsel %vm680_vm6, %v1897_v23, 0.0 }
 0x2da   : > { %v1936_v54 = vadd.f32 %v1935_v55, %v1934_v17  ;;  %v1899_v17 = vmul.f32 %v5238_v49, %v5238_v49  ;;  %v1955_v21 = vsel %vm680_vm6, %v1898_v44, 0.0  ;;  %v2519_v44 = vld [vmem:[%s6318_s2 + $0xc] sm:$0x3] }
 0x2dc   : > { %v1938_v5 = vadd.f32 %v1937_v4, %v1936_v54  ;;  %v1900_v54 = vmul.f32 %v5245_v61, %v5245_v61  ;;  %v1957_v56 = vsel %vm680_vm6, %v1899_v17, 0.0  ;;  %v2521_v17 = vld [vmem:[%s6318_s2 + $0x10] sm:$0x3] }
 0x2de   : > { %v1940_v13 = vadd.f32 %v1939_v40, %v1938_v5  ;;  %v1901_v5 = vmul.f32 %v5252_v3, %v5252_v3 }
 0x2e0   : > { %v1942_v29 = vadd.f32 %v1941_v19, %v1940_v13  ;;  %v1959_v13 = vsel %vm680_vm6, %v1900_v54, 0.0  ;;  %v1903_v19 = vmul.f32 %v5266_v59, %v5266_v59 }
 0x2e2   : > { %v1944_v14 = vadd.f32 %v1943_v58, %v1942_v29  ;;  %v1961_v29 = vsel %vm680_vm6, %v1901_v5, 0.0  ;;  %v1965_v58 = vsel %vm680_vm6, %v1903_v19, 0.0 }
 0x2e4   : > { %v1946_v32 = vadd.f32 %v1945_v28, %v1944_v14 }
 0x2e6   : > { %v1948_v38 = vadd.f32 %v1947_v8, %v1946_v32 }
 0x2e8   : > { %v1950_v50 = vadd.f32 %v1949_v43, %v1948_v38 }
 0x2ea   : > { %v1952_v31 = vadd.f32 %v1951_v47, %v1950_v50  ;;  %v2520_v47 = vld [vmem:[%s6318_s2 + $0xe] sm:$0x3] }
 0x2ec   : > { %v1954_v55 = vadd.f32 %v1953_v62, %v1952_v31  ;;  %v3220_v62 = vld.sshfl [vmem:[#allocation1] sm:$0xff pattern:$0x73625140] }
 0x2ed   : > { %3411 = vst [vmem:[#allocation1] ss:$4 sm:$0xff] %v2519_v44 }
 0x2ee   : > { %v1956_v4 = vadd.f32 %v1955_v21, %v1954_v55  ;;  %v3223_v55 = vsel %vm1163_vm5, %v3220_v62, 0  ;;  %3414 = vst [vmem:[#allocation1 + $0x1] ss:$4 sm:$0xff] %v2520_v47 }
 0x2ef   : > { %3232 = vmatpush.bf16.msrb.mxu0 %v3223_v55  ;;  %3417 = vst [vmem:[#allocation1 + $0x2] ss:$4 sm:$0xff] %v2521_v17 }
 0x2f0   : > { %v1958_v40 = vadd.f32 %v1957_v56, %v1956_v4 }
 0x2f2   : > { %v1960_v0 = vadd.f32 %v1959_v13, %v1958_v40 }
 0x2f4   : > { %v1962_v22 = vadd.f32 %v1961_v29, %v1960_v0 }
 0x2f6   : > { %v1964_v6 = vadd.f32 %v1963_v11, %v1962_v22 }
 0x2f8   : > { %v1966_v14 = vadd.f32 %v1965_v58, %v1964_v6 }
 0x2fa   : > { %v1967_v9 = vrot.slane %v1966_v14, 4 }
 0x2fc   : > { %v1968_v28 = vadd.f32 %v1967_v9, %v1966_v14  ;;  %v3418_v9 = vld.sshfl [vmem:[#allocation1] sm:$0xff pattern:$0x73625140] }
 0x2fe   : > { %v1969_v32 = vrot.slane %v1968_v28, 2 }
 0x300   : > { %v1970_v34 = vadd.f32 %v1969_v32, %v1968_v28 }
 0x302   : > { %v1971_v8 = vrot.slane %v1970_v34, 1 }
 0x304   : > { %v1972_v38 = vadd.f32 %v1971_v8, %v1970_v34 }
 0x306   : > { %v1973_v23 = vmul.f32 0.00390625, %v1972_v38  ;;  %v3419_v38 = vsel %vm1163_vm5, %v3418_v9, 0 }
 0x307   : > { %3428 = vmatpush.bf16.msrb.mxu1 %v3419_v38 }
 0x308   : > { %v1974_v43 = vadd.f32 1e-05, %v1973_v23 }
 0x30a   : > { %4126 = vrsqrt.f32 %v1974_v43  ;;  %vm1981_vm10 = vweird.f32 %v1974_v43 }
 0x310   : > { %v4127_v50 = vpop.eup %4126 }
 0x311   : > { %v1976_v31 = vmul.f32 %v4127_v50, %v1974_v43  ;;  %vm1982_vm9 = vweird.f32 %v4127_v50 }
 0x312   : > { %vm1983_vm11 = vmor %vm1981_vm10, %vm1982_vm9 }
 0x313   : > { %v1977_v54 = vmul.f32 %v4127_v50, %v1976_v31 }
 0x315   : > { %v1978_v21 = vmul.f32 0.5, %v1977_v54 }
 0x317   : > { %v1979_v4 = vsub.f32 1.5, %v1978_v21 }
 0x319   : > { %v1980_v5 = vmul.f32 %v4127_v50, %v1979_v4 }
 0x31b   : > { %v5289_v56 = vsel %vm1983_vm11, %v4127_v50, %v1980_v5 }
 0x31c   : > { %v1987_v40 = vmul.f32 %v5289_v56, %v5065_v12  ;;  %v1988_v30 = vmul.f32 %v5289_v56, %v5069_v41  ;;  %v1985_v13 = vmul.f32 %v5289_v56, %v5057_v7  ;;  %v1986_v0 = vmul.f32 %v5289_v56, %v5061_v10 }
 0x31d   : > { %v1989_v19 = vmul.f32 %v5289_v56, %v5077_v1  ;;  %v1990_v29 = vmul.f32 %v5289_v56, %v5084_v26  ;;  %v1991_v22 = vmul.f32 %v5289_v56, %v5091_v35  ;;  %v1992_v12 = vmul.f32 %v5289_v56, %v5098_v63 }
 0x31e   : > { %v2019_v11 = vmax.f32 %v1987_v40, 0.0  ;;  %v2020_v41 = vmax.f32 %v1988_v30, 0.0  ;;  %v2017_v6 = vmax.f32 %v1985_v13, 0.0  ;;  %v2018_v58 = vmax.f32 %v1986_v0, 0.0 }
 0x31f   : > { %v2021_v7 = vmax.f32 %v1989_v19, 0.0  ;;  %v2022_v14 = vmax.f32 %v1990_v29, 0.0  ;;  %v2023_v10 = vmax.f32 %v1991_v22, 0.0  ;;  %v2024_v35 = vmax.f32 %v1992_v12, 0.0 }
 0x320   : > { %v2051_v28 = vpack.c.bf16 %v2019_v11, %v2019_v11  ;;  %v2052_v32 = vpack.c.bf16 %v2020_v41, %v2020_v41  ;;  %v2049_v1 = vpack.c.bf16 %v2017_v6, %v2017_v6  ;;  %v2050_v34 = vpack.c.bf16 %v2018_v58, %v2018_v58 }
 0x321   : > { %v2053_v8 = vpack.c.bf16 %v2021_v7, %v2021_v7  ;;  %v2054_v26 = vpack.c.bf16 %v2022_v14, %v2022_v14  ;;  %v2055_v31 = vpack.c.bf16 %v2023_v10, %v2023_v10  ;;  %v5310_v17 = vmul.f32 %v5289_v56, %v5105_v18 }
 0x322   : > { %v2097_v23 = vunpack.c.l.b16 %v2051_v28  ;;  %v2209_v43 = vunpack.c.l.b16 %v2052_v32  ;;  %v2098_v63 = vunpack.c.l.b16 %v2049_v1  ;;  %v2210_v50 = vunpack.c.l.b16 %v2050_v34 }
 0x323   : > { %v2099_v44 = vunpack.c.l.b16 %v2053_v8  ;;  %v2211_v47 = vunpack.c.l.b16 %v2054_v26  ;;  %v2056_v29 = vpack.c.bf16 %v2024_v35, %v2024_v35 }
 0x324   : > { %v2113_v62 = vpack.c.b16 %v2097_v23, %v2097_v23  ;;  %v2225_v55 = vpack.c.b16 %v2209_v43, %v2097_v23  ;;  %v2385_v54 = vpack.c.b16 %v2209_v43, %v2209_v43  ;;  %v2114_v21 = vpack.c.b16 %v2098_v63, %v2098_v63 }
 0x325   : > { %v2226_v4 = vpack.c.b16 %v2210_v50, %v2098_v63  ;;  %v2386_v5 = vpack.c.b16 %v2210_v50, %v2210_v50  ;;  %v2115_v40 = vpack.c.b16 %v2099_v44, %v2099_v44  ;;  %v2227_v30 = vpack.c.b16 %v2211_v47, %v2099_v44 }
 0x326   : > { %v2130_v13 = vshrl.u32 %v2113_v62, 16  ;;  %v2242_v0 = vshrl.u32 %v2225_v55, 16  ;;  %v2402_v19 = vshll.u32 %v2385_v54, 16  ;;  %v2245_v22 = vshll.u32 %v2225_v55, 16 }
 0x327   : > { %v2133_v12 = vshrl.u32 %v2114_v21, 16  ;;  %v2249_v11 = vshrl.u32 %v2226_v4, 16  ;;  %v2406_v41 = vshll.u32 %v2386_v5, 16  ;;  %v2252_v18 = vshll.u32 %v2226_v4, 16 }
 0x328   : > { %v2244_v6 = vrot.slane %v2242_v0, 7  ;;  %v2404_v58 = vrot.slane %v2402_v19, 3  ;;  %v2256_v7 = vshrl.u32 %v2227_v30, 16  ;;  %v2136_v10 = vshrl.u32 %v2115_v40, 16 }
 0x329   : > { %v2251_v14 = vrot.slane %v2249_v11, 7  ;;  %v2408_v9 = vrot.slane %v2406_v41, 3  ;;  %v2387_v28 = vpack.c.b16 %v2211_v47, %v2211_v47  ;;  %v2259_v8 = vshll.u32 %v2227_v30, 16 }
 0x32a   : > { %v2247_v32 = vor.u32 %v2245_v22, %v2244_v6  ;;  %v2497_v1 = vsel %vm4193_vm4, %v2244_v6, %v2404_v58  ;;  %v2258_v34 = vrot.slane %v2256_v7, 7  ;;  %v5316_v23 = vunpack.c.l.b16 %v2055_v31 }
 0x32b   : > { %v2562_v26 = vshll.u32 %v2497_v1, 16  ;;  %v2254_v38 = vor.u32 %v2252_v18, %v2251_v14  ;;  %v2498_v35 = vsel %vm4193_vm4, %v2251_v14, %v2408_v9  ;;  %v2410_v44 = vshll.u32 %v2387_v28, 16 }
 0x32c   : > { %v5320_v43 = vsel %vm4193_vm4, %v2130_v13, %v2247_v32  ;;  %v2574_v63 = vshll.u32 %v2498_v35, 16  ;;  %v2261_v50 = vor.u32 %v2259_v8, %v2258_v34  ;;  %v2795_v62 = vrot.slane %v2497_v1, 1 }
 0x32d   : > { %v2794_v47 = vrot.slane %v5320_v43, 1  ;;  %v2555_v55 = vshrl.u32 %v5320_v43, 16  ;;  %v2557_v54 = vshll.u32 %v5320_v43, 16  ;;  %v2564_v21 = vrot.slane %v2562_v26, 1 }
 0x32e   : > { %v5327_v4 = vsel %vm4193_vm4, %v2133_v12, %v2254_v38  ;;  %v2412_v31 = vrot.slane %v2410_v44, 3  ;;  %v5331_v5 = vsel %vm4193_vm4, %v2136_v10, %v2261_v50  ;;  %v2576_v0 = vrot.slane %v2574_v63, 1 }
 0x32f   : > { %v2796_v40 = vsel %vm954_vm2, %v2794_v47, %v2795_v62  ;;  %v2559_v30 = vrot.slane %v2557_v54, 1  ;;  %v2569_v13 = vshll.u32 %v5327_v4, 16  ;;  %v2567_v19 = vshrl.u32 %v5327_v4, 16 }
 0x330   : > { %2839 = vrot.lane.b32.xlu0 %v2796_v40, %s4139_s19  ;;  %v2499_v22 = vsel %vm4193_vm4, %v2258_v34, %v2412_v31  ;;  %v2581_v12 = vshll.u32 %v5331_v5, 16  ;;  %v2797_v11 = vrot.slane %v5327_v4, 1  ;;  %v2579_v58 = vshrl.u32 %v5331_v5, 16 }
 0x331   : > { %v2560_v41 = vor.u32 %v2559_v30, %v2555_v55  ;;  %v2571_v6 = vrot.slane %v2569_v13, 1  ;;  %v2586_v18 = vshll.u32 %v2499_v22, 16  ;;  %v2798_v14 = vrot.slane %v2498_v35, 1 }
 0x332   : > { %v2583_v7 = vrot.slane %v2581_v12, 1  ;;  %v2800_v9 = vrot.slane %v5331_v5, 1  ;;  %v2801_v10 = vrot.slane %v2499_v22, 1  ;;  %v2116_v34 = vpack.c.b16 %v5316_v23, %v5316_v23 }
 0x333   : > { %v2565_v28 = vsel %vm713_vm3, %v2560_v41, %v2564_v21  ;;  %v2572_v32 = vor.u32 %v2571_v6, %v2567_v19  ;;  %v2588_v1 = vrot.slane %v2586_v18, 1  ;;  %v2799_v26 = vsel %vm954_vm2, %v2797_v11, %v2798_v14 }
 0x334   : > { %2734 = vrot.lane.b32.xlu2 %v2565_v28, %s4138_s18  ;;  %v2584_v8 = vor.u32 %v2583_v7, %v2579_v58  ;;  %v2802_v38 = vsel %vm954_vm2, %v2800_v9, %v2801_v10  ;;  %v2212_v63 = vunpack.c.l.b16 %v2056_v29  ;;  %v1994_v50 = vmul.f32 %v5289_v56, %v5112_v52 }
 0x335   : > { %v2577_v35 = vsel %vm713_vm3, %v2572_v32, %v2576_v0  ;;  %v2025_v44 = vmax.f32 %v5310_v17, 0.0  ;;  %v1995_v47 = vmul.f32 %v5289_v56, %v5119_v60  ;;  %v1996_v29 = vmul.f32 %v5289_v56, %v5126_v2 }
 0x336   : > { %2736 = vrot.lane.b32.xlu1 %v2577_v35, %s4138_s18  ;;  %v2589_v62 = vsel %vm713_vm3, %v2584_v8, %v2588_v1  ;;  %v2228_v55 = vpack.c.b16 %v2212_v63, %v5316_v23  ;;  %v2388_v54 = vpack.c.b16 %v2212_v63, %v2212_v63  ;;  %v2026_v21 = vmax.f32 %v1994_v50, 0.0 }
 0x337   : > { %v2057_v31 = vpack.c.bf16 %v2025_v44, %v2025_v44  ;;  %v2027_v40 = vmax.f32 %v1995_v47, 0.0  ;;  %v1997_v52 = vmul.f32 %v5289_v56, %v5133_v36  ;;  %v2028_v13 = vmax.f32 %v1996_v29, 0.0 }
 0x338   : > { %2738 = vrot.lane.b32.xlu0 %v2589_v62, %s4138_s18  ;;  %v2263_v17 = vshrl.u32 %v2228_v55, 16  ;;  %v2266_v60 = vshll.u32 %v2228_v55, 16  ;;  %v2414_v30 = vshll.u32 %v2388_v54, 16  ;;  %v2058_v0 = vpack.c.bf16 %v2026_v21, %v2026_v21 }
 0x339   : > { %v2101_v19 = vunpack.c.l.b16 %v2057_v31  ;;  %v2059_v22 = vpack.c.bf16 %v2027_v40, %v2027_v40  ;;  %v1998_v23 = vmul.f32 %v5289_v56, %v5140_v24  ;;  %v2060_v11 = vpack.c.bf16 %v2028_v13, %v2028_v13 }
 0x33a   : > { %v2265_v12 = vrot.slane %v2263_v17, 7  ;;  %v2416_v2 = vrot.slane %v2414_v30, 3  ;;  %v2029_v41 = vmax.f32 %v1997_v52, 0.0  ;;  %v2139_v6 = vshrl.u32 %v2116_v34, 16 }
 0x33b   : > { %v2117_v58 = vpack.c.b16 %v2101_v19, %v2101_v19  ;;  %v2213_v18 = vunpack.c.l.b16 %v2058_v0  ;;  %v2102_v36 = vunpack.c.l.b16 %v2059_v22  ;;  %v2214_v9 = vunpack.c.l.b16 %v2060_v11 }
 0x33c   : > { %2841 = vrot.lane.b32.xlu2 %v2799_v26, %s4139_s19  ;;  %v2268_v7 = vor.u32 %v2266_v60, %v2265_v12  ;;  %v2500_v14 = vsel %vm4193_vm4, %v2265_v12, %v2416_v2  ;;  %v2030_v10 = vmax.f32 %v1998_v23, 0.0  ;;  %v2061_v24 = vpack.c.bf16 %v2029_v41, %v2029_v41 }
 0x33d   : > { %v2804_v28 = vrot.slane %v2500_v14, 1  ;;  %v2598_v32 = vshll.u32 %v2500_v14, 16  ;;  %v2229_v1 = vpack.c.b16 %v2213_v18, %v2101_v19  ;;  %v2389_v8 = vpack.c.b16 %v2213_v18, %v2213_v18 }
 0x33e   : > { %2843 = vrot.lane.b32.xlu1 %v2802_v38, %s4139_s19  ;;  %v5371_v34 = vsel %vm4193_vm4, %v2139_v6, %v2268_v7  ;;  %v2118_v63 = vpack.c.b16 %v2102_v36, %v2102_v36  ;;  %v2230_v35 = vpack.c.b16 %v2214_v9, %v2102_v36  ;;  %v2142_v47 = vshrl.u32 %v2117_v58, 16 }
 0x33f   : > { %v2803_v26 = vrot.slane %v5371_v34, 1  ;;  %v2591_v50 = vshrl.u32 %v5371_v34, 16  ;;  %v2593_v44 = vshll.u32 %v5371_v34, 16  ;;  %v2600_v62 = vrot.slane %v2598_v32, 1 }
 0x340   : > { %v2270_v55 = vshrl.u32 %v2229_v1, 16  ;;  %v2273_v54 = vshll.u32 %v2229_v1, 16  ;;  %v2418_v29 = vshll.u32 %v2389_v8, 16  ;;  %v2145_v31 = vshrl.u32 %v2118_v63, 16 }
 0x341   : > { %v2805_v38 = vsel %vm954_vm2, %v2803_v26, %v2804_v28  ;;  %v2595_v21 = vrot.slane %v2593_v44, 1  ;;  %v2277_v40 = vshrl.u32 %v2230_v35, 16  ;;  %v2390_v60 = vpack.c.b16 %v2214_v9, %v2214_v9 }
 0x342   : > { %2845 = vrot.lane.b32.xlu0 %v2805_v38, %s4139_s19  ;;  %v2272_v52 = vrot.slane %v2270_v55, 7  ;;  %v2420_v17 = vrot.slane %v2418_v29, 3  ;;  %v2062_v30 = vpack.c.bf16 %v2030_v10, %v2030_v10  ;;  %v2280_v19 = vshll.u32 %v2230_v35, 16 }
 0x343   : > { %v2596_v13 = vor.u32 %v2595_v21, %v2591_v50  ;;  %v2279_v0 = vrot.slane %v2277_v40, 7  ;;  %v2103_v22 = vunpack.c.l.b16 %v2061_v24  ;;  %v2422_v2 = vshll.u32 %v2390_v60, 16 }
 0x344   : > { %v2275_v23 = vor.u32 %v2273_v54, %v2272_v52  ;;  %v2501_v12 = vsel %vm4193_vm4, %v2272_v52, %v2420_v17  ;;  %v2215_v11 = vunpack.c.l.b16 %v2062_v30  ;;  %v1999_v18 = vmul.f32 %v5289_v56, %v5147_v16 }
 0x345   : > { %v2601_v41 = vsel %vm713_vm3, %v2596_v13, %v2600_v62  ;;  %v2610_v6 = vshll.u32 %v2501_v12, 16  ;;  %v2282_v58 = vor.u32 %v2280_v19, %v2279_v0  ;;  %v2424_v7 = vrot.slane %v2422_v2, 3 }
 0x346   : > { %2740 = vrot.lane.b32.xlu2 %v2601_v41, %s4138_s18  ;;  %v5386_v36 = vsel %vm4193_vm4, %v2142_v47, %v2275_v23  ;;  %v2807_v14 = vrot.slane %v2501_v12, 1  ;;  %v2231_v9 = vpack.c.b16 %v2215_v11, %v2103_v22  ;;  %v2119_v1 = vpack.c.b16 %v2103_v22, %v2103_v22 }
 0x347   : > { %v2603_v10 = vshrl.u32 %v5386_v36, 16  ;;  %v2605_v28 = vshll.u32 %v5386_v36, 16  ;;  %v5392_v32 = vsel %vm4193_vm4, %v2145_v31, %v2282_v58  ;;  %v2612_v24 = vrot.slane %v2610_v6, 1 }
 0x348   : > { %v2502_v16 = vsel %vm4193_vm4, %v2279_v0, %v2424_v7  ;;  %v2617_v8 = vshll.u32 %v5392_v32, 16  ;;  %v2806_v63 = vrot.slane %v5386_v36, 1  ;;  %v2615_v26 = vshrl.u32 %v5392_v32, 16 }
 0x349   : > { %v2607_v35 = vrot.slane %v2605_v28, 1  ;;  %v2622_v50 = vshll.u32 %v2502_v16, 16  ;;  %v2809_v44 = vrot.slane %v5392_v32, 1  ;;  %v2810_v55 = vrot.slane %v2502_v16, 1 }
 0x34a   : > { %v2619_v47 = vrot.slane %v2617_v8, 1  ;;  %v2808_v62 = vsel %vm954_vm2, %v2806_v63, %v2807_v14  ;;  %v2284_v54 = vshrl.u32 %v2231_v9, 16  ;;  %v2148_v21 = vshrl.u32 %v2119_v1, 16 }
 0x34b   : > { %v2608_v29 = vor.u32 %v2607_v35, %v2603_v10  ;;  %v2624_v38 = vrot.slane %v2622_v50, 1  ;;  %v2287_v31 = vshll.u32 %v2231_v9, 16  ;;  %v2391_v17 = vpack.c.b16 %v2215_v11, %v2215_v11 }
 0x34c   : > { %v2620_v40 = vor.u32 %v2619_v47, %v2615_v26  ;;  %v2286_v52 = vrot.slane %v2284_v54, 7  ;;  %v2000_v60 = vmul.f32 %v5289_v56, %v5154_v37  ;;  %v2031_v13 = vmax.f32 %v1999_v18, 0.0 }
 0x34d   : > { %v2613_v30 = vsel %vm713_vm3, %v2608_v29, %v2612_v24  ;;  %v2001_v0 = vmul.f32 %v5289_v56, %v5161_v25  ;;  %v2002_v19 = vmul.f32 %v5289_v56, %v5168_v27  ;;  %v2426_v12 = vshll.u32 %v2391_v17, 16 }
 0x34e   : > { %2742 = vrot.lane.b32.xlu1 %v2613_v30, %s4138_s18  ;;  %v2625_v22 = vsel %vm713_vm3, %v2620_v40, %v2624_v38  ;;  %2847 = vrot.lane.b32.xlu2 %v2808_v62, %s4139_s19  ;;  %v2289_v23 = vor.u32 %v2287_v31, %v2286_v52  ;;  %v2032_v2 = vmax.f32 %v2000_v60, 0.0  ;;  %v2063_v37 = vpack.c.bf16 %v2031_v13, %v2031_v13 }
 0x34f   : > { %2744 = vrot.lane.b32.xlu0 %v2625_v22, %s4138_s18  ;;  %v2033_v11 = vmax.f32 %v2001_v0, 0.0  ;;  %v2034_v41 = vmax.f32 %v2002_v19, 0.0  ;;  %v2003_v25 = vmul.f32 %v5289_v56, %v5175_v33  ;;  %v2428_v6 = vrot.slane %v2426_v12, 3 }
 0x350   : > { %v5416_v27 = vsel %vm4193_vm4, %v2148_v21, %v2289_v23  ;;  %v2064_v58 = vpack.c.bf16 %v2032_v2, %v2032_v2  ;;  %v2004_v18 = vmul.f32 %v5289_v56, %v5182_v57  ;;  %v2104_v10 = vunpack.c.l.b16 %v2063_v37 }
 0x351   : > { %v2812_v7 = vrot.slane %v5416_v27, 1  ;;  %v2627_v14 = vshrl.u32 %v5416_v27, 16  ;;  %v2629_v9 = vshll.u32 %v5416_v27, 16  ;;  %v2503_v28 = vsel %vm4193_vm4, %v2286_v52, %v2428_v6 }
 0x352   : > { %v2216_v33 = vunpack.c.l.b16 %v2064_v58  ;;  %v2065_v1 = vpack.c.bf16 %v2033_v11, %v2033_v11  ;;  %v2066_v24 = vpack.c.bf16 %v2034_v41, %v2034_v41  ;;  %v2813_v16 = vrot.slane %v2503_v28, 1 }
 0x353   : > { %v2631_v8 = vrot.slane %v2629_v9, 1  ;;  %v2634_v63 = vshll.u32 %v2503_v28, 16  ;;  %v2120_v35 = vpack.c.b16 %v2104_v10, %v2104_v10  ;;  %v2811_v62 = vsel %vm954_vm2, %v2809_v44, %v2810_v55 }
 0x354   : > { %v2232_v26 = vpack.c.b16 %v2216_v33, %v2104_v10  ;;  %v2392_v50 = vpack.c.b16 %v2216_v33, %v2216_v33  ;;  %v2105_v57 = vunpack.c.l.b16 %v2065_v1  ;;  %v2217_v47 = vunpack.c.l.b16 %v2066_v24 }
 0x355   : > { %v2814_v54 = vsel %vm954_vm2, %v2812_v7, %v2813_v16  ;;  %v2632_v29 = vor.u32 %v2631_v8, %v2627_v14  ;;  %v2636_v38 = vrot.slane %v2634_v63, 1  ;;  %v2151_v21 = vshrl.u32 %v2120_v35, 16 }
 0x356   : > { %2849 = vrot.lane.b32.xlu1 %v2811_v62, %s4139_s19  ;;  %v2291_v31 = vshrl.u32 %v2232_v26, 16  ;;  %v2430_v40 = vshll.u32 %v2392_v50, 16  ;;  %v2121_v52 = vpack.c.b16 %v2105_v57, %v2105_v57  ;;  %v2233_v60 = vpack.c.b16 %v2217_v47, %v2105_v57 }
 0x357   : > { %2851 = vrot.lane.b32.xlu0 %v2814_v54, %s4139_s19  ;;  %v2637_v17 = vsel %vm713_vm3, %v2632_v29, %v2636_v38  ;;  %v2393_v30 = vpack.c.b16 %v2217_v47, %v2217_v47  ;;  %v2035_v13 = vmax.f32 %v2003_v25, 0.0  ;;  %v2294_v55 = vshll.u32 %v2232_v26, 16 }
 0x358   : > { %2746 = vrot.lane.b32.xlu2 %v2637_v17, %s4138_s18  ;;  %v2293_v44 = vrot.slane %v2291_v31, 7  ;;  %v2432_v0 = vrot.slane %v2430_v40, 3  ;;  %v2036_v19 = vmax.f32 %v2004_v18, 0.0  ;;  %v2154_v22 = vshrl.u32 %v2121_v52, 16 }
 0x359   : > { %v2298_v23 = vshrl.u32 %v2233_v60, 16  ;;  %v2434_v12 = vshll.u32 %v2393_v30, 16  ;;  %v2067_v2 = vpack.c.bf16 %v2035_v13, %v2035_v13  ;;  %v2301_v41 = vshll.u32 %v2233_v60, 16 }
 0x35a   : > { %v2296_v37 = vor.u32 %v2294_v55, %v2293_v44  ;;  %v2504_v11 = vsel %vm4193_vm4, %v2293_v44, %v2432_v0  ;;  %v2068_v6 = vpack.c.bf16 %v2036_v19, %v2036_v19  ;;  %v2005_v25 = vmul.f32 %v5289_v56, %v5189_v15 }
 0x35b   : > { %v2646_v58 = vshll.u32 %v2504_v11, 16  ;;  %v2300_v7 = vrot.slane %v2298_v23, 7  ;;  %v2436_v14 = vrot.slane %v2434_v12, 3  ;;  %v2816_v18 = vrot.slane %v2504_v11, 1 }
 0x35c   : > { %v5437_v9 = vsel %vm4193_vm4, %v2151_v21, %v2296_v37  ;;  %v2106_v10 = vunpack.c.l.b16 %v2067_v2  ;;  %v2218_v28 = vunpack.c.l.b16 %v2068_v6  ;;  %v2006_v16 = vmul.f32 %v5289_v56, %v5196_v45 }
 0x35d   : > { %v2639_v33 = vshrl.u32 %v5437_v9, 16  ;;  %v2641_v1 = vshll.u32 %v5437_v9, 16  ;;  %v2303_v24 = vor.u32 %v2301_v41, %v2300_v7  ;;  %v2505_v8 = vsel %vm4193_vm4, %v2300_v7, %v2436_v14 }
 0x35e   : > { %v2815_v15 = vrot.slane %v5437_v9, 1  ;;  %v2122_v63 = vpack.c.b16 %v2106_v10, %v2106_v10  ;;  %v2234_v35 = vpack.c.b16 %v2218_v28, %v2106_v10  ;;  %v2648_v50 = vrot.slane %v2646_v58, 1 }
 0x35f   : > { %v2643_v26 = vrot.slane %v2641_v1, 1  ;;  %v5448_v57 = vsel %vm4193_vm4, %v2154_v22, %v2303_v24  ;;  %v2658_v47 = vshll.u32 %v2505_v8, 16  ;;  %v2819_v29 = vrot.slane %v2505_v8, 1 }
 0x360   : > { %v2651_v62 = vshrl.u32 %v5448_v57, 16  ;;  %v2653_v54 = vshll.u32 %v5448_v57, 16  ;;  %v2817_v45 = vsel %vm954_vm2, %v2815_v15, %v2816_v18  ;;  %v2818_v31 = vrot.slane %v5448_v57, 1 }
 0x361   : > { %v2644_v38 = vor.u32 %v2643_v26, %v2639_v33  ;;  %v2660_v21 = vrot.slane %v2658_v47, 1  ;;  %2853 = vrot.lane.b32.xlu2 %v2817_v45, %s4139_s19  ;;  %v2305_v40 = vshrl.u32 %v2234_v35, 16  ;;  %v2157_v17 = vshrl.u32 %v2122_v63, 16 }
 0x362   : > { %v2655_v52 = vrot.slane %v2653_v54, 1  ;;  %v2308_v60 = vshll.u32 %v2234_v35, 16  ;;  %v2394_v30 = vpack.c.b16 %v2218_v28, %v2218_v28  ;;  %v2037_v55 = vmax.f32 %v2005_v25, 0.0 }
 0x363   : > { %v2649_v13 = vsel %vm713_vm3, %v2644_v38, %v2648_v50  ;;  %v2307_v44 = vrot.slane %v2305_v40, 7  ;;  %v2038_v0 = vmax.f32 %v2006_v16, 0.0  ;;  %v2007_v23 = vmul.f32 %v5289_v56, %v5203_v48 }
 0x364   : > { %2748 = vrot.lane.b32.xlu1 %v2649_v13, %s4138_s18  ;;  %v2656_v19 = vor.u32 %v2655_v52, %v2651_v62  ;;  %v2438_v22 = vshll.u32 %v2394_v30, 16  ;;  %v2008_v12 = vmul.f32 %v5289_v56, %v5210_v46  ;;  %v2820_v2 = vsel %vm954_vm2, %v2818_v31, %v2819_v29 }
 0x365   : > { %v2310_v37 = vor.u32 %v2308_v60, %v2307_v44  ;;  %v2069_v11 = vpack.c.bf16 %v2037_v55, %v2037_v55  ;;  %v2070_v41 = vpack.c.bf16 %v2038_v0, %v2038_v0  ;;  %v2039_v7 = vmax.f32 %v2007_v23, 0.0 }
 0x366   : > { %v2661_v6 = vsel %vm713_vm3, %v2656_v19, %v2660_v21  ;;  %v2440_v58 = vrot.slane %v2438_v22, 3  ;;  %v2040_v14 = vmax.f32 %v2008_v12, 0.0  ;;  %v2009_v46 = vmul.f32 %v5289_v56, %v5217_v51 }
 0x367   : > { %2750 = vrot.lane.b32.xlu0 %v2661_v6, %s4138_s18  ;;  %v5466_v25 = vsel %vm4193_vm4, %v2157_v17, %v2310_v37  ;;  %v2107_v48 = vunpack.c.l.b16 %v2069_v11  ;;  %v2219_v18 = vunpack.c.l.b16 %v2070_v41  ;;  %v2010_v1 = vmul.f32 %v5289_v56, %v5224_v53 }
 0x368   : > { %v2506_v10 = vsel %vm4193_vm4, %v2307_v44, %v2440_v58  ;;  %v2821_v28 = vrot.slane %v5466_v25, 1  ;;  %v2665_v33 = vshll.u32 %v5466_v25, 16  ;;  %v2663_v16 = vshrl.u32 %v5466_v25, 16 }
 0x369   : > { %v2822_v24 = vrot.slane %v2506_v10, 1  ;;  %v2670_v8 = vshll.u32 %v2506_v10, 16  ;;  %v2235_v15 = vpack.c.b16 %v2219_v18, %v2107_v48  ;;  %v2395_v35 = vpack.c.b16 %v2219_v18, %v2219_v18 }
 0x36a   : > { %v2667_v63 = vrot.slane %v2665_v33, 1  ;;  %v2071_v26 = vpack.c.bf16 %v2039_v7, %v2039_v7  ;;  %v2072_v50 = vpack.c.bf16 %v2040_v14, %v2040_v14  ;;  %v2123_v62 = vpack.c.b16 %v2107_v48, %v2107_v48 }
 0x36b   : > { %v2823_v51 = vsel %vm954_vm2, %v2821_v28, %v2822_v24  ;;  %v2672_v47 = vrot.slane %v2670_v8, 1  ;;  %v2312_v54 = vshrl.u32 %v2235_v15, 16  ;;  %v2315_v29 = vshll.u32 %v2235_v15, 16 }
 0x36c   : > { %2855 = vrot.lane.b32.xlu1 %v2820_v2, %s4139_s19  ;;  %v2668_v45 = vor.u32 %v2667_v63, %v2663_v16  ;;  %v2442_v38 = vshll.u32 %v2395_v35, 16  ;;  %v2108_v53 = vunpack.c.l.b16 %v2071_v26  ;;  %v2220_v31 = vunpack.c.l.b16 %v2072_v50 }
 0x36d   : > { %v2314_v21 = vrot.slane %v2312_v54, 7  ;;  %v2041_v40 = vmax.f32 %v2009_v46, 0.0  ;;  %v2042_v52 = vmax.f32 %v2010_v1, 0.0  ;;  %v2011_v13 = vmul.f32 %v5289_v56, %v5231_v20 }
 0x36e   : > { %v2673_v17 = vsel %vm713_vm3, %v2668_v45, %v2672_v47  ;;  %v2444_v60 = vrot.slane %v2442_v38, 3  ;;  %v2124_v30 = vpack.c.b16 %v2108_v53, %v2108_v53  ;;  %v2160_v44 = vshrl.u32 %v2123_v62, 16 }
 0x36f   : > { %2857 = vrot.lane.b32.xlu0 %v2823_v51, %s4139_s19  ;;  %2752 = vrot.lane.b32.xlu2 %v2673_v17, %s4138_s18  ;;  %v2317_v55 = vor.u32 %v2315_v29, %v2314_v21  ;;  %v2236_v0 = vpack.c.b16 %v2220_v31, %v2108_v53  ;;  %v2396_v19 = vpack.c.b16 %v2220_v31, %v2220_v31  ;;  %v2043_v63 = vmax.f32 %v2011_v13, 0.0 }
 0x370   : > { %v2507_v22 = vsel %vm4193_vm4, %v2314_v21, %v2444_v60  ;;  %v2163_v23 = vshrl.u32 %v2124_v30, 16  ;;  %v2073_v12 = vpack.c.bf16 %v2041_v40, %v2041_v40  ;;  %v2074_v2 = vpack.c.bf16 %v2042_v52, %v2042_v52 }
 0x371   : > { %v5488_v37 = vsel %vm4193_vm4, %v2160_v44, %v2317_v55  ;;  %v2682_v11 = vshll.u32 %v2507_v22, 16  ;;  %v2319_v20 = vshrl.u32 %v2236_v0, 16  ;;  %v2322_v41 = vshll.u32 %v2236_v0, 16 }
 0x372   : > { %v2675_v6 = vshrl.u32 %v5488_v37, 16  ;;  %v2677_v58 = vshll.u32 %v5488_v37, 16  ;;  %v2446_v7 = vshll.u32 %v2396_v19, 16  ;;  %v2824_v14 = vrot.slane %v5488_v37, 1 }
 0x373   : > { %v2684_v48 = vrot.slane %v2682_v11, 1  ;;  %v2321_v18 = vrot.slane %v2319_v20, 7  ;;  %v2825_v46 = vrot.slane %v2507_v22, 1  ;;  %v2109_v10 = vunpack.c.l.b16 %v2073_v12 }
 0x374   : > { %v2679_v28 = vrot.slane %v2677_v58, 1  ;;  %v2448_v33 = vrot.slane %v2446_v7, 3  ;;  %v2221_v1 = vunpack.c.l.b16 %v2074_v2  ;;  %v2012_v24 = vmul.f32 %v5289_v56, %v5238_v49 }
 0x375   : > { %v2324_v16 = vor.u32 %v2322_v41, %v2321_v18  ;;  %v2826_v8 = vsel %vm954_vm2, %v2824_v14, %v2825_v46  ;;  %v2125_v15 = vpack.c.b16 %v2109_v10, %v2109_v10  ;;  %v2075_v60 = vpack.c.bf16 %v2043_v63, %v2043_v63 }
 0x376   : > { %v2680_v35 = vor.u32 %v2679_v28, %v2675_v6  ;;  %v2508_v26 = vsel %vm4193_vm4, %v2321_v18, %v2448_v33  ;;  %v2237_v50 = vpack.c.b16 %v2221_v1, %v2109_v10  ;;  %v2397_v51 = vpack.c.b16 %v2221_v1, %v2221_v1 }
 0x377   : > { %v5500_v47 = vsel %vm4193_vm4, %v2163_v23, %v2324_v16  ;;  %v2694_v62 = vshll.u32 %v2508_v26, 16  ;;  %2859 = vrot.lane.b32.xlu2 %v2826_v8, %s4139_s19  ;;  %v2828_v45 = vrot.slane %v2508_v26, 1  ;;  %v2166_v29 = vshrl.u32 %v2125_v15, 16 }
 0x378   : > { %v2685_v49 = vsel %vm713_vm3, %v2680_v35, %v2684_v48  ;;  %v2689_v54 = vshll.u32 %v5500_v47, 16  ;;  %v2687_v38 = vshrl.u32 %v5500_v47, 16  ;;  %v2827_v53 = vrot.slane %v5500_v47, 1 }
 0x379   : > { %2754 = vrot.lane.b32.xlu1 %v2685_v49, %s4138_s18  ;;  %v2326_v21 = vshrl.u32 %v2237_v50, 16  ;;  %v2450_v31 = vshll.u32 %v2397_v51, 16  ;;  %v2329_v52 = vshll.u32 %v2237_v50, 16  ;;  %v2044_v17 = vmax.f32 %v2012_v24, 0.0 }
 0x37a   : > { %v2691_v40 = vrot.slane %v2689_v54, 1  ;;  %v2013_v44 = vmul.f32 %v5289_v56, %v5245_v61  ;;  %v2014_v55 = vmul.f32 %v5289_v56, %v5252_v3  ;;  %v2696_v19 = vrot.slane %v2694_v62, 1 }
 0x37b   : > { %v2328_v30 = vrot.slane %v2326_v21, 7  ;;  %v2452_v13 = vrot.slane %v2450_v31, 3  ;;  %v2076_v22 = vpack.c.bf16 %v2044_v17, %v2044_v17  ;;  %v2110_v23 = vunpack.c.l.b16 %v2075_v60 }
 0x37c   : > { %v2692_v0 = vor.u32 %v2691_v40, %v2687_v38  ;;  %v2045_v11 = vmax.f32 %v2013_v44, 0.0  ;;  %v2046_v20 = vmax.f32 %v2014_v55, 0.0  ;;  %v2829_v6 = vsel %vm954_vm2, %v2827_v53, %v2828_v45 }
 0x37d   : > { %v2331_v12 = vor.u32 %v2329_v52, %v2328_v30  ;;  %v2509_v2 = vsel %vm4193_vm4, %v2328_v30, %v2452_v13  ;;  %v2222_v3 = vunpack.c.l.b16 %v2076_v22  ;;  %v2126_v46 = vpack.c.b16 %v2110_v23, %v2110_v23 }
 0x37e   : > { %v2697_v41 = vsel %vm713_vm3, %v2692_v0, %v2696_v19  ;;  %v2706_v58 = vshll.u32 %v2509_v2, 16  ;;  %v2077_v7 = vpack.c.bf16 %v2045_v11, %v2045_v11  ;;  %v2078_v14 = vpack.c.bf16 %v2046_v20, %v2046_v20 }
 0x37f   : > { %2756 = vrot.lane.b32.xlu0 %v2697_v41, %s4138_s18  ;;  %v5519_v61 = vsel %vm4193_vm4, %v2166_v29, %v2331_v12  ;;  %v2831_v48 = vrot.slane %v2509_v2, 1  ;;  %v2015_v10 = vmul.f32 %v5289_v56, %v5259_v39  ;;  %v2238_v33 = vpack.c.b16 %v2222_v3, %v2110_v23 }
 0x380   : > { %v2701_v18 = vshll.u32 %v5519_v61, 16  ;;  %v2830_v28 = vrot.slane %v5519_v61, 1  ;;  %v2398_v1 = vpack.c.b16 %v2222_v3, %v2222_v3  ;;  %v2111_v24 = vunpack.c.l.b16 %v2077_v7 }
 0x381   : > { %2861 = vrot.lane.b32.xlu1 %v2829_v6, %s4139_s19  ;;  %v2699_v16 = vshrl.u32 %v5519_v61, 16  ;;  %v2223_v15 = vunpack.c.l.b16 %v2078_v14  ;;  %v2016_v63 = vmul.f32 %v5289_v56, %v5266_v59  ;;  %v2708_v35 = vrot.slane %v2706_v58, 1 }
 0x382   : > { %v2703_v8 = vrot.slane %v2701_v18, 1  ;;  %v2333_v26 = vshrl.u32 %v2238_v33, 16  ;;  %v2336_v50 = vshll.u32 %v2238_v33, 16  ;;  %v2454_v51 = vshll.u32 %v2398_v1, 16 }
 0x383   : > { %v2239_v39 = vpack.c.b16 %v2223_v15, %v2111_v24  ;;  %v2399_v49 = vpack.c.b16 %v2223_v15, %v2223_v15  ;;  %v2047_v54 = vmax.f32 %v2015_v10, 0.0  ;;  %v2127_v38 = vpack.c.b16 %v2111_v24, %v2111_v24 }
 0x384   : > { %v2704_v62 = vor.u32 %v2703_v8, %v2699_v16  ;;  %v2335_v45 = vrot.slane %v2333_v26, 7  ;;  %v2456_v29 = vrot.slane %v2454_v51, 3  ;;  %v2048_v53 = vmax.f32 %v2016_v63, 0.0 }
 0x385   : > { %v2832_v21 = vsel %vm954_vm2, %v2830_v28, %v2831_v48  ;;  %v2340_v40 = vshrl.u32 %v2239_v39, 16  ;;  %v2458_v52 = vshll.u32 %v2399_v49, 16  ;;  %v2169_v59 = vshrl.u32 %v2126_v46, 16 }
 0x386   : > { %v2709_v31 = vsel %vm713_vm3, %v2704_v62, %v2708_v35  ;;  %v2338_v56 = vor.u32 %v2336_v50, %v2335_v45  ;;  %v2510_v17 = vsel %vm4193_vm4, %v2335_v45, %v2456_v29  ;;  %v2079_v60 = vpack.c.bf16 %v2047_v54, %v2047_v54 }
 0x387   : > { %2863 = vrot.lane.b32.xlu0 %v2832_v21, %s4139_s19  ;;  %2758 = vrot.lane.b32.xlu2 %v2709_v31, %s4138_s18  ;;  %v2342_v30 = vrot.slane %v2340_v40, 7  ;;  %v2343_v13 = vshll.u32 %v2239_v39, 16  ;;  %v2460_v44 = vrot.slane %v2458_v52, 3  ;;  %v2172_v0 = vshrl.u32 %v2127_v38, 16 }
 0x388   : > { %v5537_v55 = vsel %vm4193_vm4, %v2169_v59, %v2338_v56  ;;  %v2080_v19 = vpack.c.bf16 %v2048_v53, %v2048_v53  ;;  %v2718_v23 = vshll.u32 %v2510_v17, 16  ;;  %v2112_v2 = vunpack.c.l.b16 %v2079_v60 }
 0x389   : > { %v2713_v22 = vshll.u32 %v5537_v55, 16  ;;  %v2345_v12 = vor.u32 %v2343_v13, %v2342_v30  ;;  %v2511_v11 = vsel %vm4193_vm4, %v2342_v30, %v2460_v44  ;;  %v2833_v20 = vrot.slane %v5537_v55, 1 }
 0x38a   : > { %v2224_v41 = vunpack.c.l.b16 %v2080_v19  ;;  %v2711_v6 = vshrl.u32 %v5537_v55, 16  ;;  %v2834_v7 = vrot.slane %v2510_v17, 1  ;;  %v2730_v48 = vshll.u32 %v2511_v11, 16 }
 0x38b   : > { %v2715_v58 = vrot.slane %v2713_v22, 1  ;;  %v5546_v3 = vsel %vm4193_vm4, %v2172_v0, %v2345_v12  ;;  %v2720_v46 = vrot.slane %v2718_v23, 1  ;;  %v2128_v8 = vpack.c.b16 %v2112_v2, %v2112_v2 }
 0x38c   : > { %v2725_v14 = vshll.u32 %v5546_v3, 16  ;;  %v2835_v10 = vsel %vm954_vm2, %v2833_v20, %v2834_v7  ;;  %v2240_v28 = vpack.c.b16 %v2224_v41, %v2112_v2  ;;  %v2723_v33 = vshrl.u32 %v5546_v3, 16 }
 0x38d   : > { %v2716_v18 = vor.u32 %v2715_v58, %v2711_v6  ;;  %v2400_v24 = vpack.c.b16 %v2224_v41, %v2224_v41  ;;  %v2732_v35 = vrot.slane %v2730_v48, 1  ;;  %v2836_v49 = vrot.slane %v5546_v3, 1 }
 0x38e   : > { %v2727_v1 = vrot.slane %v2725_v14, 1  ;;  %v2347_v15 = vshrl.u32 %v2240_v28, 16  ;;  %v2350_v51 = vshll.u32 %v2240_v28, 16  ;;  %v2175_v54 = vshrl.u32 %v2128_v8, 16  ;;  %v2735_v44 = vpop.permute.xlu2 %2734 }
 0x38f   : > { %2865 = vrot.lane.b32.xlu2 %v2835_v10, %s4139_s19  ;;  %v2721_v16 = vsel %vm713_vm3, %v2716_v18, %v2720_v46  ;;  %v2462_v26 = vshll.u32 %v2400_v24, 16  ;;  %v2837_v38 = vrot.slane %v2511_v11, 1  ;;  %v2870_v0 = vsel %vm680_vm6, %v5320_v43, %v2735_v44 }
 0x390   : > { %2760 = vrot.lane.b32.xlu1 %v2721_v16, %s4138_s18  ;;  %v2728_v63 = vor.u32 %v2727_v1, %v2723_v33  ;;  %v2349_v50 = vrot.slane %v2347_v15, 7 }
 0x391   : > { %v2464_v39 = vrot.slane %v2462_v26, 3  ;;  %v2838_v52 = vsel %vm954_vm2, %v2836_v49, %v2837_v38 }
 0x392   : > { %v2733_v62 = vsel %vm713_vm3, %v2728_v63, %v2732_v35  ;;  %v2352_v45 = vor.u32 %v2350_v51, %v2349_v50 }
 0x393   : > { %2762 = vrot.lane.b32.xlu0 %v2733_v62, %s4138_s18  ;;  %v2512_v29 = vsel %vm4193_vm4, %v2349_v50, %v2464_v39 }
 0x394   : > { %v5561_v53 = vsel %vm4193_vm4, %v2175_v54, %v2352_v45  ;;  %v3163_v40 = vshll.u32 %v2512_v29, 16  ;;  %v3172_v59 = vrot.slane %v2512_v29, 1 }
 0x395   : > { %v3171_v21 = vrot.slane %v5561_v53, 1  ;;  %v3158_v31 = vshll.u32 %v5561_v53, 16  ;;  %v3156_v56 = vshrl.u32 %v5561_v53, 16 }
 0x396   : > { %v3165_v13 = vrot.slane %v3163_v40, 1  ;;  %v2842_v12 = vpop.permute.xlu2 %2841 }
 0x397   : > { %v3160_v17 = vrot.slane %v3158_v31, 1  ;;  %v3173_v60 = vsel %vm954_vm2, %v3171_v21, %v3172_v59  ;;  %v2930_v31 = vld [vmem:[#allocation2 + $0x8] sm:$0xff] }
 0x398   : > { %2867 = vrot.lane.b32.xlu1 %v2838_v52, %s4139_s19 }
 0x399   : > { %v3161_v30 = vor.u32 %v3160_v17, %v3156_v56 }
 0x39b   : > { %3174 = vrot.lane.b32.xlu0 %v3173_v60, %s4139_s19  ;;  %v3166_v42 = vsel %vm713_vm3, %v3161_v30, %v3165_v13 }
 0x39c   : > { %3167 = vrot.lane.b32.xlu2 %v3166_v42, %s4138_s18  ;;  %v2931_v42 = vld [vmem:[#allocation2 + $0x10] sm:$0xff] }
 0x3a0   : > { %v2741_v58 = vpop.permute.xlu2 %2740 }
 0x3a2   : > { %v2840_v19 = vpop.permute.xlu0 %2839 }
 0x3a3   : > { %v2900_v22 = vsel %vm1060_vm7, %v2870_v0, %v2840_v19 }
 0x3a4   : > { %4061 = vmatmul.msk.bf16.vlgmr.msrb.gmra.mxu3 %vm1132_vm8, %v2900_v22  ;;  %4093 = vmatmul.msk.bf16.vlgmr.msrb.gmra.mxu1 %vm1132_vm8, %v2900_v22 }
 0x3a8   : > { %v2737_v23 = vpop.permute.xlu1 %2736  ;;  %v2848_v18 = vpop.permute.xlu2 %2847 }
 0x3a9   : > { %v2872_v2 = vsel %vm680_vm6, %v5327_v4, %v2737_v23  ;;  %v2876_v4 = vsel %vm680_vm6, %v5371_v34, %v2741_v58 }
 0x3aa   : > { %v2902_v11 = vsel %vm1060_vm7, %v2872_v2, %v2842_v12  ;;  %v2739_v20 = vpop.permute.xlu0 %2738 }
 0x3ab   : > { %4077 = vmatmul.msk.bf16.vlgmr.msrb.gmra.mxu0 %vm1132_vm8, %v2902_v11  ;;  %v2874_v43 = vsel %vm680_vm6, %v5331_v5, %v2739_v20 }
 0x3b0   : > { %v2844_v41 = vpop.permute.xlu1 %2843 }
 0x3b1   : > { %v2904_v6 = vsel %vm1060_vm7, %v2874_v43, %v2844_v41 }
 0x3b4   : > { %4062 = vmatmul.msk.bf16.gmra.mxu3 %vm1132_vm8, %v2902_v11  ;;  %4094 = vmatmul.msk.bf16.gmra.mxu1 %vm1132_vm8, %v2904_v6  ;;  %v2846_v7 = vpop.permute.xlu0 %2845  ;;  %v2932_v11 = vld [vmem:[#allocation2 + $0x18] sm:$0xff] }
 0x3b5   : > { %v2906_v14 = vsel %vm1060_vm7, %v2876_v4, %v2846_v7 }
 0x3bb   : > { %4078 = vmatmul.msk.bf16.gmra.mxu0 %vm1132_vm8, %v2900_v22 }
 0x3c0   : > { %v2743_v5 = vpop.permute.xlu1 %2742 }
 0x3c1   : > { %v2878_v48 = vsel %vm680_vm6, %v5386_v36, %v2743_v5  ;;  %v2745_v34 = vpop.permute.xlu0 %2744  ;;  %v2747_v36 = vpop.permute.xlu2 %2746 }
 0x3c2   : > { %v2908_v46 = vsel %vm1060_vm7, %v2878_v48, %v2848_v18  ;;  %v2880_v28 = vsel %vm680_vm6, %v5392_v32, %v2745_v34  ;;  %v2882_v24 = vsel %vm680_vm6, %v5416_v27, %v2747_v36  ;;  %v2933_v34 = vld [vmem:[#allocation2 + $0x20] sm:$0xff] }
 0x3c4   : > { %4063 = vmatmul.msk.bf16.gmra.mxu3 %vm1132_vm8, %v2900_v22  ;;  %4095 = vmatmul.msk.bf16.gmra.mxu1 %vm1132_vm8, %v2906_v14 }
 0x3c8   : > { %v2850_v10 = vpop.permute.xlu1 %2849 }
 0x3c9   : > { %v2910_v33 = vsel %vm1060_vm7, %v2880_v28, %v2850_v10  ;;  %v2852_v1 = vpop.permute.xlu0 %2851  ;;  %v2854_v15 = vpop.permute.xlu2 %2853 }
 0x3ca   : > { %v2912_v16 = vsel %vm1060_vm7, %v2882_v24, %v2852_v1 }
 0x3cb   : > { %4079 = vmatmul.msk.bf16.gmra.mxu0 %vm1132_vm8, %v2904_v6 }
 0x3d4   : > { %4064 = vmatmul.msk.bf16.gmra.mxu3 %vm1132_vm8, %v2904_v6  ;;  %4096 = vmatmul.msk.bf16.gmra.mxu1 %vm1132_vm8, %v2908_v46 }
 0x3d6   : > { %v2749_v32 = vpop.permute.xlu1 %2748 }
 0x3d7   : > { %v2884_v8 = vsel %vm680_vm6, %v5437_v9, %v2749_v32  ;;  %v2753_v9 = vpop.permute.xlu2 %2752  ;;  %v2934_v32 = vld [vmem:[#allocation2 + $0x28] sm:$0xff] }
 0x3d8   : > { %v2914_v63 = vsel %vm1060_vm7, %v2884_v8, %v2854_v15  ;;  %v2888_v39 = vsel %vm680_vm6, %v5466_v25, %v2753_v9 }
 0x3d9   : > { %v2751_v27 = vpop.permute.xlu0 %2750 }
 0x3da   : > { %v2886_v26 = vsel %vm680_vm6, %v5448_v57, %v2751_v27  ;;  %v2929_v57 = vld [vmem:[#allocation2] sm:$0xff] }
 0x3db   : > { %4080 = vmatmul.msk.bf16.gmra.mxu0 %vm1132_vm8, %v2906_v14 }
 0x3de   : > { %v2856_v35 = vpop.permute.xlu1 %2855 }
 0x3df   : > { %v2916_v50 = vsel %vm1060_vm7, %v2886_v26, %v2856_v35  ;;  %v2860_v60 = vpop.permute.xlu2 %2859 }
 0x3e1   : > { %v2858_v51 = vpop.permute.xlu0 %2857 }
 0x3e2   : > { %v2918_v49 = vsel %vm1060_vm7, %v2888_v39, %v2858_v51 }
 0x3e4   : > { %4065 = vmatmul.msk.bf16.gmra.mxu3 %vm1132_vm8, %v2906_v14  ;;  %4097 = vmatmul.msk.bf16.gmra.mxu1 %vm1132_vm8, %v2910_v33 }
 0x3e7   : > { %v2759_v8 = vpop.permute.xlu2 %2758 }
 0x3e8   : > { %v2894_v9 = vsel %vm680_vm6, %v5519_v61, %v2759_v8 }
 0x3eb   : > { %4081 = vmatmul.msk.bf16.gmra.mxu0 %vm1132_vm8, %v2908_v46  ;;  %v2755_v21 = vpop.permute.xlu1 %2754 }
 0x3ec   : > { %v2890_v25 = vsel %vm680_vm6, %v5488_v37, %v2755_v21 }
 0x3ed   : > { %v5634_v13 = vsel %vm1060_vm7, %v2890_v25, %v2860_v60 }
 0x3f1   : > { %v2757_v20 = vpop.permute.xlu0 %2756 }
 0x3f2   : > { %v2892_v14 = vsel %vm680_vm6, %v5500_v47, %v2757_v20 }
 0x3f3   : > { %v2862_v43 = vpop.permute.xlu1 %2861 }
 0x3f4   : > { %4066 = vmatmul.msk.bf16.gmra.mxu3 %vm1132_vm8, %v2908_v46  ;;  %4098 = vmatmul.msk.bf16.gmra.mxu1 %vm1132_vm8, %v2912_v16  ;;  %v5648_v48 = vsel %vm1060_vm7, %v2892_v14, %v2862_v43 }
 0x3fb   : > { %4082 = vmatmul.msk.bf16.gmra.mxu0 %vm1132_vm8, %v2910_v33 }
 0x402   : > { %v2761_v25 = vpop.permute.xlu1 %2760 }
 0x404   : > { %4067 = vmatmul.msk.bf16.gmra.mxu3 %vm1132_vm8, %v2910_v33  ;;  %4099 = vmatmul.msk.bf16.gmra.mxu1 %vm1132_vm8, %v2914_v63 }
 0x40b   : > { %4083 = vmatmul.msk.bf16.gmra.mxu0 %vm1132_vm8, %v2912_v16 }
 0x414   : > { %4068 = vmatmul.msk.bf16.gmra.mxu3 %vm1132_vm8, %v2912_v16  ;;  %4100 = vmatmul.msk.bf16.gmra.mxu1 %vm1132_vm8, %v2916_v50 }
 0x41b   : > { %4084 = vmatmul.msk.bf16.gmra.mxu0 %vm1132_vm8, %v2914_v63 }
 0x421   : > { %v3430_v62 = vpop.f32.mrf.mxu1 }
 0x424   : > { %4069 = vmatmul.msk.bf16.gmra.mxu3 %vm1132_vm8, %v2914_v63  ;;  %4101 = vmatmul.msk.bf16.gmra.mxu1 %vm1132_vm8, %v2918_v49  ;;  %v2864_v63 = vpop.permute.xlu0 %2863 }
 0x427   : > { %v3011_v54 = vpop.f32.mrf.mxu3 }
 0x428   : > { %v3234_v45 = vpop.f32.mrf.mxu0  ;;  %v3091_v29 = vadd.f32 %v3011_v54, %v2929_v57  ;;  %v2935_v57 = vld [vmem:[#allocation2 + $0x30] sm:$0xff] }
 0x429   : > { %v3432_v38 = vpop.f32.mrf.mxu1 }
 0x42a   : > { %3123 = vst.msk [vmem:[#allocation2] sm:$0xff] %vm680_vm6, %v3091_v29 }
 0x42b   : > { %4085 = vmatmul.msk.bf16.gmra.mxu0 %vm1132_vm8, %v2916_v50 }
 0x42f   : > { %v3013_v40 = vpop.f32.mrf.mxu3 }
 0x430   : > { %v3236_v52 = vpop.f32.mrf.mxu0  ;;  %v3092_v59 = vadd.f32 %v3013_v40, %v2930_v31 }
 0x431   : > { %v3180_v56 = vld [vmem:[#allocation2] sm:$0xff]  ;;  %v3435_v17 = vpop.f32.mrf.mxu1 }
 0x432   : > { %v3314_v30 = vadd.f32 %v3234_v45, %v3180_v56  ;;  %3124 = vst.msk [vmem:[#allocation2 + $0x8] sm:$0xff] %vm680_vm6, %v3092_v59  ;;  %v2896_v56 = vsel %vm680_vm6, %v5537_v55, %v2761_v25  ;;  %v2937_v55 = vld [vmem:[#allocation2 + $0x40] sm:$0xff] }
 0x434   : > { %3346 = vst.msk [vmem:[#allocation2] sm:$0xff] %vm680_vm6, %v3314_v30  ;;  %4070 = vmatmul.msk.bf16.gmra.mxu3 %vm1132_vm8, %v2916_v50  ;;  %4102 = vmatmul.msk.bf16.gmra.mxu1 %vm1132_vm8, %v5634_v13 }
 0x437   : > { %v3016_v37 = vpop.f32.mrf.mxu3 }
 0x438   : > { %v3239_v44 = vpop.f32.mrf.mxu0  ;;  %v3093_v0 = vadd.f32 %v3016_v37, %v2931_v42  ;;  %v2866_v42 = vpop.permute.xlu2 %2865 }
 0x439   : > { %v3181_v19 = vld [vmem:[#allocation2 + $0x8] sm:$0xff]  ;;  %v3437_v22 = vpop.f32.mrf.mxu1 }
 0x43a   : > { %v3315_v23 = vadd.f32 %v3236_v52, %v3181_v19  ;;  %3125 = vst.msk [vmem:[#allocation2 + $0x10] sm:$0xff] %vm680_vm6, %v3093_v0  ;;  %v2936_v52 = vld [vmem:[#allocation2 + $0x38] sm:$0xff]  ;;  %v5681_v0 = vsel %vm1060_vm7, %v2896_v56, %v2866_v42 }
 0x43b   : > { %v3378_v12 = vld [vmem:[#allocation2] sm:$0xff]  ;;  %4086 = vmatmul.msk.bf16.gmra.mxu0 %vm1132_vm8, %v2918_v49 }
 0x43c   : > { %v3510_v2 = vadd.f32 %v3430_v62, %v3378_v12  ;;  %3347 = vst.msk [vmem:[#allocation2 + $0x8] sm:$0xff] %vm680_vm6, %v3315_v23  ;;  %v5664_v62 = vsel %vm1060_vm7, %v2894_v9, %v2864_v63  ;;  %v2940_v63 = vld [vmem:[#allocation2 + $0x58] sm:$0xff] }
 0x43e   : > { %3542 = vst.msk [vmem:[#allocation2] sm:$0xff] %vm680_vm6, %v3510_v2 }
 0x43f   : > { %v3018_v41 = vpop.f32.mrf.mxu3 }
 0x440   : > { %v3241_v6 = vpop.f32.mrf.mxu0  ;;  %v3094_v58 = vadd.f32 %v3018_v41, %v2932_v11 }
 0x441   : > { %v3182_v7 = vld [vmem:[#allocation2 + $0x10] sm:$0xff]  ;;  %v3440_v4 = vpop.f32.mrf.mxu1 }
 0x442   : > { %v3316_v5 = vadd.f32 %v3239_v44, %v3182_v7  ;;  %3126 = vst.msk [vmem:[#allocation2 + $0x18] sm:$0xff] %vm680_vm6, %v3094_v58  ;;  %v2763_v58 = vpop.permute.xlu0 %2762 }
 0x443   : > { %v3379_v18 = vld [vmem:[#allocation2 + $0x8] sm:$0xff] }
 0x444   : > { %v3511_v46 = vadd.f32 %v3432_v38, %v3379_v18  ;;  %3348 = vst.msk [vmem:[#allocation2 + $0x10] sm:$0xff] %vm680_vm6, %v3316_v5  ;;  %4071 = vmatmul.msk.bf16.gmra.mxu3 %vm1132_vm8, %v2918_v49  ;;  %4103 = vmatmul.msk.bf16.gmra.mxu1 %vm1132_vm8, %v5648_v48 }
 0x446   : > { %3543 = vst.msk [vmem:[#allocation2 + $0x8] sm:$0xff] %vm680_vm6, %v3511_v46  ;;  %v2898_v46 = vsel %vm680_vm6, %v5546_v3, %v2763_v58 }
 0x447   : > { %v3021_v10 = vpop.f32.mrf.mxu3 }
 0x448   : > { %v3244_v47 = vpop.f32.mrf.mxu0  ;;  %v3095_v28 = vadd.f32 %v3021_v10, %v2933_v34 }
 0x449   : > { %v3183_v33 = vld [vmem:[#allocation2 + $0x18] sm:$0xff]  ;;  %v3442_v36 = vpop.f32.mrf.mxu1 }
 0x44a   : > { %v3317_v1 = vadd.f32 %v3241_v6, %v3183_v33  ;;  %3127 = vst.msk [vmem:[#allocation2 + $0x20] sm:$0xff] %vm680_vm6, %v3095_v28  ;;  %v2938_v6 = vld [vmem:[#allocation2 + $0x48] sm:$0xff]  ;;  %v2939_v33 = vld [vmem:[#allocation2 + $0x50] sm:$0xff] }
 0x44b   : > { %v3380_v24 = vld [vmem:[#allocation2 + $0x10] sm:$0xff]  ;;  %4087 = vmatmul.msk.bf16.gmra.mxu0 %vm1132_vm8, %v5634_v13 }
 0x44c   : > { %v3512_v16 = vadd.f32 %v3435_v17, %v3380_v24  ;;  %3349 = vst.msk [vmem:[#allocation2 + $0x18] sm:$0xff] %vm680_vm6, %v3317_v1 }
 0x44e   : > { %3544 = vst.msk [vmem:[#allocation2 + $0x10] sm:$0xff] %vm680_vm6, %v3512_v16 }
 0x44f   : > { %v3023_v15 = vpop.f32.mrf.mxu3 }
 0x450   : > { %v3246_v27 = vpop.f32.mrf.mxu0  ;;  %v3096_v35 = vadd.f32 %v3023_v15, %v2934_v32 }
 0x451   : > { %v3184_v26 = vld [vmem:[#allocation2 + $0x20] sm:$0xff]  ;;  %v3445_v50 = vpop.f32.mrf.mxu1 }
 0x452   : > { %v3318_v51 = vadd.f32 %v3244_v47, %v3184_v26  ;;  %3128 = vst.msk [vmem:[#allocation2 + $0x28] sm:$0xff] %vm680_vm6, %v3096_v35  ;;  %v3175_v26 = vpop.permute.xlu0 %3174 }
 0x453   : > { %v3381_v39 = vld [vmem:[#allocation2 + $0x18] sm:$0xff] }
 0x454   : > { %v3513_v49 = vadd.f32 %v3437_v22, %v3381_v39  ;;  %3350 = vst.msk [vmem:[#allocation2 + $0x20] sm:$0xff] %vm680_vm6, %v3318_v51  ;;  %4072 = vmatmul.msk.bf16.gmra.mxu3 %vm1132_vm8, %v5634_v13  ;;  %4104 = vmatmul.msk.bf16.gmra.mxu1 %vm1132_vm8, %v5664_v62 }
 0x456   : > { %3545 = vst.msk [vmem:[#allocation2 + $0x18] sm:$0xff] %vm680_vm6, %v3513_v49 }
 0x457   : > { %v3026_v61 = vpop.f32.mrf.mxu3 }
 0x458   : > { %v3249_v54 = vpop.f32.mrf.mxu0  ;;  %v3097_v45 = vadd.f32 %v3026_v61, %v2935_v57 }
 0x459   : > { %v3185_v29 = vld [vmem:[#allocation2 + $0x28] sm:$0xff]  ;;  %v3447_v38 = vpop.f32.mrf.mxu1 }
 0x45a   : > { %v3319_v21 = vadd.f32 %v3246_v27, %v3185_v29  ;;  %3129 = vst.msk [vmem:[#allocation2 + $0x30] sm:$0xff] %vm680_vm6, %v3097_v45  ;;  %v3168_v27 = vpop.permute.xlu2 %3167  ;;  %v2941_v45 = vld [vmem:[#allocation2 + $0x60] sm:$0xff] }
 0x45b   : > { %v3382_v31 = vld [vmem:[#allocation2 + $0x20] sm:$0xff]  ;;  %4088 = vmatmul.msk.bf16.gmra.mxu0 %vm1132_vm8, %v5648_v48  ;;  %v3177_v39 = vsel %vm680_vm6, %v5561_v53, %v3168_v27 }
 0x45c   : > { %v3514_v40 = vadd.f32 %v3440_v4, %v3382_v31  ;;  %3351 = vst.msk [vmem:[#allocation2 + $0x28] sm:$0xff] %vm680_vm6, %v3319_v21  ;;  %v2868_v4 = vpop.permute.xlu1 %2867  ;;  %v3179_v57 = vsel %vm1060_vm7, %v3177_v39, %v3175_v26  ;;  %v2947_v26 = vld [vmem:[#allocation2 + $0x90] sm:$0xff] }
 0x45d   : > { %v5698_v10 = vsel %vm1060_vm7, %v2898_v46, %v2868_v4 }
 0x45e   : > { %3546 = vst.msk [vmem:[#allocation2 + $0x20] sm:$0xff] %vm680_vm6, %v3514_v40 }
 0x45f   : > { %v3028_v59 = vpop.f32.mrf.mxu3 }
 0x460   : > { %v3251_v17 = vpop.f32.mrf.mxu0  ;;  %v3098_v60 = vadd.f32 %v3028_v59, %v2936_v52  ;;  %v2942_v59 = vld [vmem:[#allocation2 + $0x68] sm:$0xff] }
 0x461   : > { %v3186_v30 = vld [vmem:[#allocation2 + $0x30] sm:$0xff]  ;;  %v3450_v13 = vpop.f32.mrf.mxu1 }
 0x462   : > { %v3320_v37 = vadd.f32 %v3249_v54, %v3186_v30  ;;  %3130 = vst.msk [vmem:[#allocation2 + $0x38] sm:$0xff] %vm680_vm6, %v3098_v60 }
 0x463   : > { %v3383_v44 = vld [vmem:[#allocation2 + $0x28] sm:$0xff] }
 0x464   : > { %v3515_v19 = vadd.f32 %v3442_v36, %v3383_v44  ;;  %3352 = vst.msk [vmem:[#allocation2 + $0x30] sm:$0xff] %vm680_vm6, %v3320_v37  ;;  %4073 = vmatmul.msk.bf16.gmra.mxu3 %vm1132_vm8, %v5648_v48  ;;  %4105 = vmatmul.msk.bf16.gmra.mxu1 %vm1132_vm8, %v5681_v0 }
 0x466   : > { %3547 = vst.msk [vmem:[#allocation2 + $0x28] sm:$0xff] %vm680_vm6, %v3515_v19 }
 0x467   : > { %v3031_v22 = vpop.f32.mrf.mxu3 }
 0x468   : > { %v3254_v23 = vpop.f32.mrf.mxu0  ;;  %v3099_v12 = vadd.f32 %v3031_v22, %v2937_v55 }
 0x469   : > { %v3187_v2 = vld [vmem:[#allocation2 + $0x38] sm:$0xff]  ;;  %v3452_v11 = vpop.f32.mrf.mxu1 }
 0x46a   : > { %v3321_v20 = vadd.f32 %v3251_v17, %v3187_v2  ;;  %3131 = vst.msk [vmem:[#allocation2 + $0x40] sm:$0xff] %vm680_vm6, %v3099_v12 }
 0x46b   : > { %v3384_v41 = vld [vmem:[#allocation2 + $0x30] sm:$0xff]  ;;  %4089 = vmatmul.msk.bf16.gmra.mxu0 %vm1132_vm8, %v5664_v62 }
 0x46c   : > { %v3516_v43 = vadd.f32 %v3445_v50, %v3384_v41  ;;  %3353 = vst.msk [vmem:[#allocation2 + $0x38] sm:$0xff] %vm680_vm6, %v3321_v20  ;;  %v2944_v41 = vld [vmem:[#allocation2 + $0x78] sm:$0xff] }
 0x46e   : > { %3548 = vst.msk [vmem:[#allocation2 + $0x30] sm:$0xff] %vm680_vm6, %v3516_v43 }
 0x46f   : > { %v3033_v7 = vpop.f32.mrf.mxu3 }
 0x470   : > { %v3256_v14 = vpop.f32.mrf.mxu0  ;;  %v3100_v5 = vadd.f32 %v3033_v7, %v2938_v6 }
 0x471   : > { %v3188_v48 = vld [vmem:[#allocation2 + $0x40] sm:$0xff]  ;;  %v3455_v18 = vpop.f32.mrf.mxu1 }
 0x472   : > { %v3322_v34 = vadd.f32 %v3254_v23, %v3188_v48  ;;  %3132 = vst.msk [vmem:[#allocation2 + $0x48] sm:$0xff] %vm680_vm6, %v3100_v5 }
 0x473   : > { %v3385_v47 = vld [vmem:[#allocation2 + $0x38] sm:$0xff] }
 0x474   : > { %v3517_v28 = vadd.f32 %v3447_v38, %v3385_v47  ;;  %3354 = vst.msk [vmem:[#allocation2 + $0x40] sm:$0xff] %vm680_vm6, %v3322_v34  ;;  %4074 = vmatmul.msk.bf16.gmra.mxu3 %vm1132_vm8, %v5664_v62  ;;  %4106 = vmatmul.msk.bf16.gmra.mxu1 %vm1132_vm8, %v5698_v10 }
 0x476   : > { %3549 = vst.msk [vmem:[#allocation2 + $0x38] sm:$0xff] %vm680_vm6, %v3517_v28 }
 0x477   : > { %v3036_v3 = vpop.f32.mrf.mxu3 }
 0x478   : > { %v3259_v36 = vpop.f32.mrf.mxu0  ;;  %v3101_v1 = vadd.f32 %v3036_v3, %v2939_v33 }
 0x479   : > { %v3189_v24 = vld [vmem:[#allocation2 + $0x48] sm:$0xff]  ;;  %v3457_v16 = vpop.f32.mrf.mxu1 }
 0x47a   : > { %v3323_v32 = vadd.f32 %v3256_v14, %v3189_v24  ;;  %3133 = vst.msk [vmem:[#allocation2 + $0x50] sm:$0xff] %vm680_vm6, %v3101_v1  ;;  %v2946_v1 = vld [vmem:[#allocation2 + $0x88] sm:$0xff] }
 0x47b   : > { %v3386_v8 = vld [vmem:[#allocation2 + $0x40] sm:$0xff]  ;;  %4090 = vmatmul.msk.bf16.gmra.mxu0 %vm1132_vm8, %v5681_v0 }
 0x47c   : > { %v3518_v15 = vadd.f32 %v3450_v13, %v3386_v8  ;;  %3355 = vst.msk [vmem:[#allocation2 + $0x48] sm:$0xff] %vm680_vm6, %v3323_v32 }
 0x47e   : > { %3550 = vst.msk [vmem:[#allocation2 + $0x40] sm:$0xff] %vm680_vm6, %v3518_v15 }
 0x47f   : > { %v3038_v35 = vpop.f32.mrf.mxu3 }
 0x480   : > { %v3261_v50 = vpop.f32.mrf.mxu0  ;;  %v3102_v9 = vadd.f32 %v3038_v35, %v2940_v63 }
 0x481   : > { %v3190_v51 = vld [vmem:[#allocation2 + $0x50] sm:$0xff]  ;;  %v3460_v62 = vpop.f32.mrf.mxu1 }
 0x482   : > { %v3324_v49 = vadd.f32 %v3259_v36, %v3190_v51  ;;  %3134 = vst.msk [vmem:[#allocation2 + $0x58] sm:$0xff] %vm680_vm6, %v3102_v9 }
 0x483   : > { %v3387_v61 = vld [vmem:[#allocation2 + $0x48] sm:$0xff] }
 0x484   : > { %v3519_v54 = vadd.f32 %v3452_v11, %v3387_v61  ;;  %3356 = vst.msk [vmem:[#allocation2 + $0x50] sm:$0xff] %vm680_vm6, %v3324_v49  ;;  %4075 = vmatmul.msk.bf16.gmra.mxu3 %vm1132_vm8, %v5681_v0  ;;  %4107 = vmatmul.msk.bf16.gmra.mxu1 %vm1132_vm8, %v3179_v57  ;;  %v2943_v0 = vld [vmem:[#allocation2 + $0x70] sm:$0xff] }
 0x486   : > { %3551 = vst.msk [vmem:[#allocation2 + $0x48] sm:$0xff] %vm680_vm6, %v3519_v54  ;;  %v2948_v54 = vld [vmem:[#allocation2 + $0x98] sm:$0xff] }
 0x487   : > { %v3041_v29 = vpop.f32.mrf.mxu3 }
 0x488   : > { %v3264_v38 = vpop.f32.mrf.mxu0  ;;  %v3103_v53 = vadd.f32 %v3041_v29, %v2941_v45 }
 0x489   : > { %v3191_v21 = vld [vmem:[#allocation2 + $0x58] sm:$0xff]  ;;  %v3462_v31 = vpop.f32.mrf.mxu1 }
 0x48a   : > { %v3325_v40 = vadd.f32 %v3261_v50, %v3191_v21  ;;  %3135 = vst.msk [vmem:[#allocation2 + $0x60] sm:$0xff] %vm680_vm6, %v3103_v53 }
 0x48b   : > { %v3388_v25 = vld [vmem:[#allocation2 + $0x50] sm:$0xff]  ;;  %4091 = vmatmul.msk.bf16.gmra.mxu0 %vm1132_vm8, %v5698_v10 }
 0x48c   : > { %v3520_v52 = vadd.f32 %v3455_v18, %v3388_v25  ;;  %3357 = vst.msk [vmem:[#allocation2 + $0x58] sm:$0xff] %vm680_vm6, %v3325_v40  ;;  %v2945_v18 = vld [vmem:[#allocation2 + $0x80] sm:$0xff] }
 0x48e   : > { %3552 = vst.msk [vmem:[#allocation2 + $0x50] sm:$0xff] %vm680_vm6, %v3520_v52  ;;  %v2949_v52 = vld [vmem:[#allocation2 + $0xa0] sm:$0xff] }
 0x48f   : > { %v3043_v56 = vpop.f32.mrf.mxu3 }
 0x490   : > { %v3266_v17 = vpop.f32.mrf.mxu0  ;;  %v3104_v60 = vadd.f32 %v3043_v56, %v2942_v59 }
 0x491   : > { %v3192_v30 = vld [vmem:[#allocation2 + $0x60] sm:$0xff]  ;;  %v3465_v13 = vpop.f32.mrf.mxu1 }
 0x492   : > { %v3326_v42 = vadd.f32 %v3264_v38, %v3192_v30  ;;  %3136 = vst.msk [vmem:[#allocation2 + $0x68] sm:$0xff] %vm680_vm6, %v3104_v60 }
 0x493   : > { %v3389_v37 = vld [vmem:[#allocation2 + $0x58] sm:$0xff] }
 0x494   : > { %v3521_v44 = vadd.f32 %v3457_v16, %v3389_v37  ;;  %3358 = vst.msk [vmem:[#allocation2 + $0x60] sm:$0xff] %vm680_vm6, %v3326_v42  ;;  %4076 = vmatmul.msk.bf16.gmra.mxu3 %vm1132_vm8, %v5698_v10  ;;  %4108 = vmatmul.msk.bf16.gmra.mxu1 %vm1132_vm8, %v5698_v10  ;;  %v2950_v37 = vld [vmem:[#allocation2 + $0xa8] sm:$0xff] }
 0x496   : > { %3553 = vst.msk [vmem:[#allocation2 + $0x58] sm:$0xff] %vm680_vm6, %v3521_v44 }
 0x497   : > { %v3046_v19 = vpop.f32.mrf.mxu3 }
 0x498   : > { %v3269_v55 = vpop.f32.mrf.mxu0  ;;  %v3105_v22 = vadd.f32 %v3046_v19, %v2943_v0 }
 0x499   : > { %v3193_v23 = vld [vmem:[#allocation2 + $0x68] sm:$0xff]  ;;  %v3467_v12 = vpop.f32.mrf.mxu1 }
 0x49a   : > { %v3327_v2 = vadd.f32 %v3266_v17, %v3193_v23  ;;  %3137 = vst.msk [vmem:[#allocation2 + $0x70] sm:$0xff] %vm680_vm6, %v3105_v22 }
 0x49b   : > { %v3390_v11 = vld [vmem:[#allocation2 + $0x60] sm:$0xff]  ;;  %4092 = vmatmul.msk.bf16.gmra.mxu0 %vm1132_vm8, %v3179_v57 }
 0x49c   : > { %v3522_v20 = vadd.f32 %v3460_v62, %v3390_v11  ;;  %3359 = vst.msk [vmem:[#allocation2 + $0x68] sm:$0xff] %vm680_vm6, %v3327_v2  ;;  %v2951_v11 = vld [vmem:[#allocation2 + $0xb0] sm:$0xff] }
 0x49e   : > { %3554 = vst.msk [vmem:[#allocation2 + $0x60] sm:$0xff] %vm680_vm6, %v3522_v20 }
 0x49f   : > { %v3048_v43 = vpop.f32.mrf.mxu3 }
 0x4a0   : > { %v3271_v6 = vpop.f32.mrf.mxu0  ;;  %v3106_v58 = vadd.f32 %v3048_v43, %v2944_v41 }
 0x4a1   : > { %v3194_v7 = vld [vmem:[#allocation2 + $0x70] sm:$0xff]  ;;  %v3470_v4 = vpop.f32.mrf.mxu1 }
 0x4a2   : > { %v3328_v14 = vadd.f32 %v3269_v55, %v3194_v7  ;;  %3138 = vst.msk [vmem:[#allocation2 + $0x78] sm:$0xff] %vm680_vm6, %v3106_v58 }
 0x4a3   : > { %v3391_v5 = vld [vmem:[#allocation2 + $0x68] sm:$0xff] }
 0x4a4   : > { %v3523_v48 = vadd.f32 %v3462_v31, %v3391_v5  ;;  %3360 = vst.msk [vmem:[#allocation2 + $0x70] sm:$0xff] %vm680_vm6, %v3328_v14  ;;  %v2952_v5 = vld [vmem:[#allocation2 + $0xb8] sm:$0xff] }
 0x4a6   : > { %3555 = vst.msk [vmem:[#allocation2 + $0x68] sm:$0xff] %vm680_vm6, %v3523_v48 }
 0x4a7   : > { %v3051_v46 = vpop.f32.mrf.mxu3 }
 0x4a8   : > { %v3274_v34 = vpop.f32.mrf.mxu0  ;;  %v3107_v10 = vadd.f32 %v3051_v46, %v2945_v18 }
 0x4a9   : > { %v3195_v47 = vld [vmem:[#allocation2 + $0x78] sm:$0xff]  ;;  %v3472_v28 = vpop.f32.mrf.mxu1 }
 0x4aa   : > { %v3329_v33 = vadd.f32 %v3271_v6, %v3195_v47  ;;  %3139 = vst.msk [vmem:[#allocation2 + $0x80] sm:$0xff] %vm680_vm6, %v3107_v10 }
 0x4ab   : > { %v3392_v3 = vld [vmem:[#allocation2 + $0x70] sm:$0xff] }
 0x4ac   : > { %v3524_v36 = vadd.f32 %v3465_v13, %v3392_v3  ;;  %3361 = vst.msk [vmem:[#allocation2 + $0x78] sm:$0xff] %vm680_vm6, %v3329_v33  ;;  %v2953_v3 = vld [vmem:[#allocation2 + $0xc0] sm:$0xff] }
 0x4ae   : > { %3556 = vst.msk [vmem:[#allocation2 + $0x70] sm:$0xff] %vm680_vm6, %v3524_v36 }
 0x4af   : > { %v3053_v24 = vpop.f32.mrf.mxu3 }
 0x4b0   : > { %v3276_v16 = vpop.f32.mrf.mxu0  ;;  %v3108_v32 = vadd.f32 %v3053_v24, %v2946_v1 }
 0x4b1   : > { %v3196_v8 = vld [vmem:[#allocation2 + $0x80] sm:$0xff]  ;;  %v3475_v15 = vpop.f32.mrf.mxu1 }
 0x4b2   : > { %v3330_v63 = vadd.f32 %v3274_v34, %v3196_v8  ;;  %3140 = vst.msk [vmem:[#allocation2 + $0x88] sm:$0xff] %vm680_vm6, %v3108_v32 }
 0x4b3   : > { %v3393_v27 = vld [vmem:[#allocation2 + $0x78] sm:$0xff] }
 0x4b4   : > { %v3525_v35 = vadd.f32 %v3467_v12, %v3393_v27  ;;  %3362 = vst.msk [vmem:[#allocation2 + $0x80] sm:$0xff] %vm680_vm6, %v3330_v63  ;;  %v2954_v27 = vld [vmem:[#allocation2 + $0xc8] sm:$0xff] }
 0x4b6   : > { %3557 = vst.msk [vmem:[#allocation2 + $0x78] sm:$0xff] %vm680_vm6, %v3525_v35 }
 0x4b7   : > { %v3056_v50 = vpop.f32.mrf.mxu3 }
 0x4b8   : > { %v3279_v9 = vpop.f32.mrf.mxu0  ;;  %v3109_v51 = vadd.f32 %v3056_v50, %v2947_v26 }
 0x4b9   : > { %v3197_v62 = vld [vmem:[#allocation2 + $0x88] sm:$0xff]  ;;  %v3477_v49 = vpop.f32.mrf.mxu1 }
 0x4ba   : > { %v3331_v39 = vadd.f32 %v3276_v16, %v3197_v62  ;;  %3141 = vst.msk [vmem:[#allocation2 + $0x90] sm:$0xff] %vm680_vm6, %v3109_v51 }
 0x4bb   : > { %v3394_v57 = vld [vmem:[#allocation2 + $0x80] sm:$0xff] }
 0x4bc   : > { %v3526_v61 = vadd.f32 %v3470_v4, %v3394_v57  ;;  %3363 = vst.msk [vmem:[#allocation2 + $0x88] sm:$0xff] %vm680_vm6, %v3331_v39 }
 0x4be   : > { %3558 = vst.msk [vmem:[#allocation2 + $0x80] sm:$0xff] %vm680_vm6, %v3526_v61 }
 0x4bf   : > { %v3058_v45 = vpop.f32.mrf.mxu3 }
 0x4c0   : > { %v3281_v29 = vpop.f32.mrf.mxu0  ;;  %v3110_v38 = vadd.f32 %v3058_v45, %v2948_v54 }
 0x4c1   : > { %v3198_v53 = vld [vmem:[#allocation2 + $0x90] sm:$0xff]  ;;  %v3480_v25 = vpop.f32.mrf.mxu1 }
 0x4c2   : > { %v3332_v21 = vadd.f32 %v3279_v9, %v3198_v53  ;;  %3142 = vst.msk [vmem:[#allocation2 + $0x98] sm:$0xff] %vm680_vm6, %v3110_v38 }
 0x4c3   : > { %v3395_v31 = vld [vmem:[#allocation2 + $0x88] sm:$0xff] }
 0x4c4   : > { %v3527_v40 = vadd.f32 %v3472_v28, %v3395_v31  ;;  %3364 = vst.msk [vmem:[#allocation2 + $0x90] sm:$0xff] %vm680_vm6, %v3332_v21  ;;  %v5771_v31 = vld [vmem:[#allocation2 + $0x8] sm:$0xff] }
 0x4c6   : > { %3559 = vst.msk [vmem:[#allocation2 + $0x88] sm:$0xff] %vm680_vm6, %v3527_v40  ;;  %v2956_v40 = vld [vmem:[#allocation2 + $0xd8] sm:$0xff] }
 0x4c7   : > { %v3061_v59 = vpop.f32.mrf.mxu3 }
 0x4c8   : > { %v3284_v56 = vpop.f32.mrf.mxu0  ;;  %v3111_v17 = vadd.f32 %v3061_v59, %v2949_v52  ;;  %v5776_v52 = vld [vmem:[#allocation2 + $0x10] sm:$0xff] }
 0x4c9   : > { %v3199_v60 = vld [vmem:[#allocation2 + $0x98] sm:$0xff]  ;;  %v3482_v44 = vpop.f32.mrf.mxu1 }
 0x4ca   : > { %v3333_v30 = vadd.f32 %v3281_v29, %v3199_v60  ;;  %3143 = vst.msk [vmem:[#allocation2 + $0xa0] sm:$0xff] %vm680_vm6, %v3111_v17 }
 0x4cb   : > { %v3396_v13 = vld [vmem:[#allocation2 + $0x90] sm:$0xff] }
 0x4cc   : > { %v3528_v42 = vadd.f32 %v3475_v15, %v3396_v13  ;;  %3365 = vst.msk [vmem:[#allocation2 + $0x98] sm:$0xff] %vm680_vm6, %v3333_v30  ;;  %v5780_v30 = vld [vmem:[#allocation2 + $0x18] sm:$0xff] }
 0x4ce   : > { %3560 = vst.msk [vmem:[#allocation2 + $0x90] sm:$0xff] %vm680_vm6, %v3528_v42 }
 0x4cf   : > { %v3063_v0 = vpop.f32.mrf.mxu3 }
 0x4d0   : > { %v3286_v19 = vpop.f32.mrf.mxu0  ;;  %v3112_v55 = vadd.f32 %v3063_v0, %v2950_v37 }
 0x4d1   : > { %v3200_v22 = vld [vmem:[#allocation2 + $0xa0] sm:$0xff]  ;;  %v3485_v41 = vpop.f32.mrf.mxu1 }
 0x4d2   : > { %v3334_v23 = vadd.f32 %v3284_v56, %v3200_v22  ;;  %3144 = vst.msk [vmem:[#allocation2 + $0xa8] sm:$0xff] %vm680_vm6, %v3112_v55  ;;  %v3607_v56 = vsel %vm680_vm6, %v5771_v31, 0.0  ;;  %v5787_v55 = vld [vmem:[#allocation2 + $0x20] sm:$0xff] }
 0x4d3   : > { %v3397_v12 = vld [vmem:[#allocation2 + $0x98] sm:$0xff] }
 0x4d4   : > { %v3529_v2 = vadd.f32 %v3477_v49, %v3397_v12  ;;  %3366 = vst.msk [vmem:[#allocation2 + $0xa0] sm:$0xff] %vm680_vm6, %v3334_v23  ;;  %v2955_v49 = vld [vmem:[#allocation2 + $0xd0] sm:$0xff]  ;;  %v3611_v23 = vsel %vm680_vm6, %v5780_v30, 0.0 }
 0x4d6   : > { %3561 = vst.msk [vmem:[#allocation2 + $0x98] sm:$0xff] %vm680_vm6, %v3529_v2 }
 0x4d7   : > { %v3066_v20 = vpop.f32.mrf.mxu3 }
 0x4d8   : > { %v3289_v43 = vpop.f32.mrf.mxu0  ;;  %v3113_v6 = vadd.f32 %v3066_v20, %v2951_v11  ;;  %v5792_v11 = vld [vmem:[#allocation2 + $0x28] sm:$0xff]  ;;  %v2957_v20 = vld [vmem:[#allocation2 + $0xe0] sm:$0xff] }
 0x4d9   : > { %v3201_v58 = vld [vmem:[#allocation2 + $0xa8] sm:$0xff]  ;;  %v3487_v47 = vpop.f32.mrf.mxu1 }
 0x4da   : > { %v3335_v7 = vadd.f32 %v3286_v19, %v3201_v58  ;;  %3145 = vst.msk [vmem:[#allocation2 + $0xb0] sm:$0xff] %vm680_vm6, %v3113_v6  ;;  %v5797_v6 = vld [vmem:[#allocation2 + $0x30] sm:$0xff] }
 0x4db   : > { %v3398_v4 = vld [vmem:[#allocation2 + $0xa0] sm:$0xff] }
 0x4dc   : > { %v3530_v14 = vadd.f32 %v3480_v25, %v3398_v4  ;;  %3367 = vst.msk [vmem:[#allocation2 + $0xa8] sm:$0xff] %vm680_vm6, %v3335_v7  ;;  %v5774_v25 = vld [vmem:[#allocation2] sm:$0xff]  ;;  %v3615_v7 = vsel %vm680_vm6, %v5792_v11, 0.0 }
 0x4dd   : > { %v3606_v37 = vsel %vm680_vm6, %v5774_v25, 0.0 }
 0x4de   : > { %3562 = vst.msk [vmem:[#allocation2 + $0xa0] sm:$0xff] %vm680_vm6, %v3530_v14  ;;  %v3608_v19 = vadd.f32 %v3607_v56, %v3606_v37  ;;  %v5835_v56 = vld [vmem:[#allocation2 + $0x70] sm:$0xff]  ;;  %v5839_v37 = vld [vmem:[#allocation2 + $0x78] sm:$0xff] }
 0x4df   : > { %v3068_v48 = vpop.f32.mrf.mxu3 }
 0x4e0   : > { %v3291_v18 = vpop.f32.mrf.mxu0  ;;  %v3114_v46 = vadd.f32 %v3068_v48, %v2952_v5  ;;  %v5801_v5 = vld [vmem:[#allocation2 + $0x38] sm:$0xff] }
 0x4e1   : > { %v3202_v34 = vld [vmem:[#allocation2 + $0xb0] sm:$0xff]  ;;  %v3490_v63 = vpop.f32.mrf.mxu1 }
 0x4e2   : > { %v3336_v10 = vadd.f32 %v3289_v43, %v3202_v34  ;;  %3146 = vst.msk [vmem:[#allocation2 + $0xb8] sm:$0xff] %vm680_vm6, %v3114_v46 }
 0x4e3   : > { %v3399_v28 = vld [vmem:[#allocation2 + $0xa8] sm:$0xff] }
 0x4e4   : > { %v3531_v33 = vadd.f32 %v3482_v44, %v3399_v28  ;;  %3368 = vst.msk [vmem:[#allocation2 + $0xb0] sm:$0xff] %vm680_vm6, %v3336_v10  ;;  %v3609_v44 = vsel %vm680_vm6, %v5776_v52, 0.0 }
 0x4e5   : > { %v3610_v2 = vadd.f32 %v3609_v44, %v3608_v19 }
 0x4e6   : > { %3563 = vst.msk [vmem:[#allocation2 + $0xa8] sm:$0xff] %vm680_vm6, %v3531_v33 }
 0x4e7   : > { %v3071_v36 = vpop.f32.mrf.mxu3  ;;  %v3612_v43 = vadd.f32 %v3611_v23, %v3610_v2  ;;  %v5844_v23 = vld [vmem:[#allocation2 + $0x80] sm:$0xff]  ;;  %v3635_v2 = vsel %vm680_vm6, %v5839_v37, 0.0 }
 0x4e8   : > { %v3294_v1 = vpop.f32.mrf.mxu0  ;;  %v3115_v24 = vadd.f32 %v3071_v36, %v2953_v3  ;;  %v3619_v3 = vsel %vm680_vm6, %v5801_v5, 0.0 }
 0x4e9   : > { %v3203_v16 = vld [vmem:[#allocation2 + $0xb8] sm:$0xff]  ;;  %v3492_v57 = vpop.f32.mrf.mxu1 }
 0x4ea   : > { %v3337_v32 = vadd.f32 %v3291_v18, %v3203_v16  ;;  %3147 = vst.msk [vmem:[#allocation2 + $0xc0] sm:$0xff] %vm680_vm6, %v3115_v24  ;;  %v3617_v18 = vsel %vm680_vm6, %v5797_v6, 0.0  ;;  %v5811_v24 = vld [vmem:[#allocation2 + $0x48] sm:$0xff] }
 0x4eb   : > { %v3400_v8 = vld [vmem:[#allocation2 + $0xb0] sm:$0xff]  ;;  %v2958_v16 = vld [vmem:[#allocation2 + $0xe8] sm:$0xff] }
 0x4ec   : > { %v3532_v15 = vadd.f32 %v3485_v41, %v3400_v8  ;;  %3369 = vst.msk [vmem:[#allocation2 + $0xb8] sm:$0xff] %vm680_vm6, %v3337_v32  ;;  %v3613_v41 = vsel %vm680_vm6, %v5787_v55, 0.0 }
 0x4ed   : > { %v3614_v14 = vadd.f32 %v3613_v41, %v3612_v43  ;;  %v5849_v43 = vld [vmem:[#allocation2 + $0x88] sm:$0xff] }
 0x4ee   : > { %3564 = vst.msk [vmem:[#allocation2 + $0xb0] sm:$0xff] %vm680_vm6, %v3532_v15  ;;  %v5816_v15 = vld [vmem:[#allocation2 + $0x50] sm:$0xff] }
 0x4ef   : > { %v3073_v35 = vpop.f32.mrf.mxu3  ;;  %v3616_v10 = vadd.f32 %v3615_v7, %v3614_v14  ;;  %v3637_v7 = vsel %vm680_vm6, %v5844_v23, 0.0 }
 0x4f0   : > { %v3296_v26 = vpop.f32.mrf.mxu0  ;;  %v3116_v50 = vadd.f32 %v3073_v35, %v2954_v27  ;;  %v3623_v27 = vsel %vm680_vm6, %v5811_v24, 0.0 }
 0x4f1   : > { %v3204_v9 = vld [vmem:[#allocation2 + $0xc0] sm:$0xff]  ;;  %v3495_v17 = vpop.f32.mrf.mxu1 }
 0x4f2   : > { %v3338_v51 = vadd.f32 %v3294_v1, %v3204_v9  ;;  %3148 = vst.msk [vmem:[#allocation2 + $0xc8] sm:$0xff] %vm680_vm6, %v3116_v50  ;;  %v3618_v1 = vadd.f32 %v3617_v18, %v3616_v10  ;;  %v5820_v50 = vld [vmem:[#allocation2 + $0x58] sm:$0xff] }
 0x4f3   : > { %v3401_v62 = vld [vmem:[#allocation2 + $0xb8] sm:$0xff] }
 0x4f4   : > { %v3533_v39 = vadd.f32 %v3487_v47, %v3401_v62  ;;  %3370 = vst.msk [vmem:[#allocation2 + $0xc0] sm:$0xff] %vm680_vm6, %v3338_v51  ;;  %v5806_v47 = vld [vmem:[#allocation2 + $0x40] sm:$0xff]  ;;  %v3620_v8 = vadd.f32 %v3619_v3, %v3618_v1  ;;  %v3625_v51 = vsel %vm680_vm6, %v5816_v15, 0.0 }
 0x4f5   : > { %v3621_v32 = vsel %vm680_vm6, %v5806_v47, 0.0 }
 0x4f6   : > { %3565 = vst.msk [vmem:[#allocation2 + $0xb8] sm:$0xff] %vm680_vm6, %v3533_v39 }
 0x4f7   : > { %v3076_v61 = vpop.f32.mrf.mxu3 }
 0x4f8   : > { %v3299_v54 = vpop.f32.mrf.mxu0  ;;  %v3117_v45 = vadd.f32 %v3076_v61, %v2955_v49  ;;  %v5825_v49 = vld [vmem:[#allocation2 + $0x60] sm:$0xff]  ;;  %v3627_v61 = vsel %vm680_vm6, %v5820_v50, 0.0 }
 0x4f9   : > { %v3205_v29 = vld [vmem:[#allocation2 + $0xc8] sm:$0xff]  ;;  %v3497_v46 = vpop.f32.mrf.mxu1 }
 0x4fa   : > { %v3339_v38 = vadd.f32 %v3296_v26, %v3205_v29  ;;  %3149 = vst.msk [vmem:[#allocation2 + $0xd0] sm:$0xff] %vm680_vm6, %v3117_v45  ;;  %v3622_v26 = vadd.f32 %v3621_v32, %v3620_v8  ;;  %v5863_v32 = vld [vmem:[#allocation2 + $0xa0] sm:$0xff] }
 0x4fb   : > { %v3402_v53 = vld [vmem:[#allocation2 + $0xc0] sm:$0xff] }
 0x4fc   : > { %v3534_v21 = vadd.f32 %v3490_v63, %v3402_v53  ;;  %3371 = vst.msk [vmem:[#allocation2 + $0xc8] sm:$0xff] %vm680_vm6, %v3339_v38  ;;  %v3624_v39 = vadd.f32 %v3623_v27, %v3622_v26  ;;  %v5830_v38 = vld [vmem:[#allocation2 + $0x68] sm:$0xff] }
 0x4fd   : > { %v5868_v26 = vld [vmem:[#allocation2 + $0xa8] sm:$0xff] }
 0x4fe   : > { %3566 = vst.msk [vmem:[#allocation2 + $0xc0] sm:$0xff] %vm680_vm6, %v3534_v21  ;;  %v3626_v29 = vadd.f32 %v3625_v51, %v3624_v39  ;;  %v2959_v21 = vld [vmem:[#allocation2 + $0xf0] sm:$0xff]  ;;  %v3647_v39 = vsel %vm680_vm6, %v5868_v26, 0.0 }
 0x4ff   : > { %v3078_v59 = vpop.f32.mrf.mxu3 }
 0x500   : > { %v3118_v60 = vadd.f32 %v3078_v59, %v2956_v40  ;;  %v3301_v42 = vpop.f32.mrf.mxu0  ;;  %v3629_v40 = vsel %vm680_vm6, %v5825_v49, 0.0  ;;  %v3628_v59 = vadd.f32 %v3627_v61, %v3626_v29  ;;  %v5877_v61 = vld [vmem:[#allocation2 + $0xb8] sm:$0xff] }
 0x501   : > { %v3206_v13 = vld [vmem:[#allocation2 + $0xd0] sm:$0xff]  ;;  %v3500_v45 = vpop.f32.mrf.mxu1 }
 0x502   : > { %v3340_v0 = vadd.f32 %v3299_v54, %v3206_v13  ;;  %3150 = vst.msk [vmem:[#allocation2 + $0xd8] sm:$0xff] %vm680_vm6, %v3118_v60  ;;  %v3631_v60 = vsel %vm680_vm6, %v5830_v38, 0.0 }
 0x503   : > { %v3403_v22 = vld [vmem:[#allocation2 + $0xc8] sm:$0xff] }
 0x504   : > { %v3535_v12 = vadd.f32 %v3492_v57, %v3403_v22  ;;  %3372 = vst.msk [vmem:[#allocation2 + $0xd0] sm:$0xff] %vm680_vm6, %v3340_v0  ;;  %v3633_v0 = vsel %vm680_vm6, %v5835_v56, 0.0 }
 0x506   : > { %3567 = vst.msk [vmem:[#allocation2 + $0xc8] sm:$0xff] %vm680_vm6, %v3535_v12 }
 0x507   : > { %v3081_v58 = vpop.f32.mrf.mxu3 }
 0x508   : > { %v3119_v4 = vadd.f32 %v3081_v58, %v2957_v20  ;;  %v3304_v33 = vpop.f32.mrf.mxu0  ;;  %v2960_v58 = vld [vmem:[#allocation2 + $0xf8] sm:$0xff] }
 0x509   : > { %v3207_v48 = vld [vmem:[#allocation2 + $0xd8] sm:$0xff] }
 0x50a   : > { %v3341_v34 = vadd.f32 %v3301_v42, %v3207_v48  ;;  %3151 = vst.msk [vmem:[#allocation2 + $0xe0] sm:$0xff] %vm680_vm6, %v3119_v4  ;;  %v3630_v42 = vadd.f32 %v3629_v40, %v3628_v59  ;;  %v3502_v4 = vpop.f32.mrf.mxu1  ;;  %v5854_v48 = vld [vmem:[#allocation2 + $0x90] sm:$0xff]  ;;  %v5881_v59 = vld [vmem:[#allocation2 + $0xc0] sm:$0xff] }
 0x50b   : > { %v3404_v28 = vld [vmem:[#allocation2 + $0xd0] sm:$0xff] }
 0x50c   : > { %v3536_v36 = vadd.f32 %v3495_v17, %v3404_v28  ;;  %3373 = vst.msk [vmem:[#allocation2 + $0xd8] sm:$0xff] %vm680_vm6, %v3341_v34  ;;  %v3632_v22 = vadd.f32 %v3631_v60, %v3630_v42  ;;  %v3639_v34 = vsel %vm680_vm6, %v5849_v43, 0.0  ;;  %v3651_v60 = vsel %vm680_vm6, %v5877_v61, 0.0 }
 0x50e   : > { %3568 = vst.msk [vmem:[#allocation2 + $0xd0] sm:$0xff] %vm680_vm6, %v3536_v36  ;;  %v3634_v41 = vadd.f32 %v3633_v0, %v3632_v22  ;;  %v3641_v36 = vsel %vm680_vm6, %v5854_v48, 0.0  ;;  %v3653_v0 = vsel %vm680_vm6, %v5881_v59, 0.0 }
 0x50f   : > { %v3083_v63 = vpop.f32.mrf.mxu3 }
 0x510   : > { %v3120_v35 = vadd.f32 %v3083_v63, %v2958_v16  ;;  %v3306_v53 = vpop.f32.mrf.mxu0  ;;  %v3636_v14 = vadd.f32 %v3635_v2, %v3634_v41 }
 0x511   : > { %v3208_v9 = vld [vmem:[#allocation2 + $0xe0] sm:$0xff] }
 0x512   : > { %v3342_v62 = vadd.f32 %v3304_v33, %v3208_v9  ;;  %3152 = vst.msk [vmem:[#allocation2 + $0xe8] sm:$0xff] %vm680_vm6, %v3120_v35  ;;  %v3638_v28 = vadd.f32 %v3637_v7, %v3636_v14  ;;  %v5858_v33 = vld [vmem:[#allocation2 + $0x98] sm:$0xff]  ;;  %v3645_v9 = vsel %vm680_vm6, %v5863_v32, 0.0 }
 0x513   : > { %v3405_v57 = vld [vmem:[#allocation2 + $0xd8] sm:$0xff]  ;;  %v3643_v63 = vsel %vm680_vm6, %v5858_v33, 0.0 }
 0x514   : > { %v3537_v54 = vadd.f32 %v3497_v46, %v3405_v57  ;;  %3374 = vst.msk [vmem:[#allocation2 + $0xe0] sm:$0xff] %vm680_vm6, %v3342_v62  ;;  %v3640_v16 = vadd.f32 %v3639_v34, %v3638_v28  ;;  %v5873_v62 = vld [vmem:[#allocation2 + $0xb0] sm:$0xff] }
 0x515   : > { %v5891_v22 = vld [vmem:[#allocation2 + $0xd0] sm:$0xff] }
 0x516   : > { %3569 = vst.msk [vmem:[#allocation2 + $0xd8] sm:$0xff] %vm680_vm6, %v3537_v54  ;;  %v3642_v35 = vadd.f32 %v3641_v36, %v3640_v16  ;;  %v3505_v54 = vpop.f32.mrf.mxu1  ;;  %v3657_v41 = vsel %vm680_vm6, %v5891_v22, 0.0 }
 0x517   : > { %v3086_v17 = vpop.f32.mrf.mxu3 }
 0x518   : > { %v3121_v13 = vadd.f32 %v3086_v17, %v2959_v21  ;;  %v3309_v18 = vpop.f32.mrf.mxu0  ;;  %v3644_v51 = vadd.f32 %v3643_v63, %v3642_v35 }
 0x519   : > { %v3209_v44 = vld [vmem:[#allocation2 + $0xe8] sm:$0xff] }
 0x51a   : > { %v3343_v19 = vadd.f32 %v3306_v53, %v3209_v44  ;;  %3153 = vst.msk [vmem:[#allocation2 + $0xf0] sm:$0xff] %vm680_vm6, %v3121_v13  ;;  %v3646_v57 = vadd.f32 %v3645_v9, %v3644_v51  ;;  %v3649_v53 = vsel %vm680_vm6, %v5873_v62, 0.0  ;;  %v5886_v44 = vld [vmem:[#allocation2 + $0xc8] sm:$0xff] }
 0x51b   : > { %v3406_v12 = vld [vmem:[#allocation2 + $0xe0] sm:$0xff] }
 0x51c   : > { %v3538_v20 = vadd.f32 %v3500_v45, %v3406_v12  ;;  %3375 = vst.msk [vmem:[#allocation2 + $0xe8] sm:$0xff] %vm680_vm6, %v3343_v19  ;;  %v3648_v40 = vadd.f32 %v3647_v39, %v3646_v57  ;;  %v3655_v12 = vsel %vm680_vm6, %v5886_v44, 0.0 }
 0x51e   : > { %3570 = vst.msk [vmem:[#allocation2 + $0xe0] sm:$0xff] %vm680_vm6, %v3538_v20  ;;  %v3650_v42 = vadd.f32 %v3649_v53, %v3648_v40  ;;  %v5895_v20 = vld [vmem:[#allocation2 + $0xd8] sm:$0xff] }
 0x51f   : > { %v3088_v46 = vpop.f32.mrf.mxu3 }
 0x520   : > { %v3122_v10 = vadd.f32 %v3088_v46, %v2960_v58  ;;  %v3311_v45 = vpop.f32.mrf.mxu0  ;;  %v3652_v19 = vadd.f32 %v3651_v60, %v3650_v42 }
 0x521   : > { %v3210_v3 = vld [vmem:[#allocation2 + $0xf0] sm:$0xff] }
 0x522   : > { %v3344_v1 = vadd.f32 %v3309_v18, %v3210_v3  ;;  %3154 = vst.msk [vmem:[#allocation2 + $0xf8] sm:$0xff] %vm680_vm6, %v3122_v10  ;;  %v3654_v2 = vadd.f32 %v3653_v0, %v3652_v19  ;;  %v3659_v18 = vsel %vm680_vm6, %v5895_v20, 0.0 }
 0x523   : > { %v3407_v8 = vld [vmem:[#allocation2 + $0xe8] sm:$0xff] }
 0x524   : > { %v3539_v27 = vadd.f32 %v3502_v4, %v3407_v8  ;;  %3376 = vst.msk [vmem:[#allocation2 + $0xf0] sm:$0xff] %vm680_vm6, %v3344_v1  ;;  %v3656_v58 = vadd.f32 %v3655_v12, %v3654_v2  ;;  %v3507_v4 = vpop.f32.mrf.mxu1 }
 0x525   : > { %v5899_v7 = vld [vmem:[#allocation2 + $0xe0] sm:$0xff] }
 0x526   : > { %3571 = vst.msk [vmem:[#allocation2 + $0xe8] sm:$0xff] %vm680_vm6, %v3539_v27  ;;  %v3658_v34 = vadd.f32 %v3657_v41, %v3656_v58  ;;  %v3661_v28 = vsel %vm680_vm6, %v5899_v7, 0.0 }
 0x528   : > { %v3660_v3 = vadd.f32 %v3659_v18, %v3658_v34 }
 0x529   : > { %v3211_v29 = vld [vmem:[#allocation2 + $0xf8] sm:$0xff] }
 0x52a   : > { %v3345_v21 = vadd.f32 %v3311_v45, %v3211_v29  ;;  %v3662_v16 = vadd.f32 %v3661_v28, %v3660_v3 }
 0x52b   : > { %v3408_v17 = vld [vmem:[#allocation2 + $0xf0] sm:$0xff] }
 0x52c   : > { %v3540_v13 = vadd.f32 %v3505_v54, %v3408_v17  ;;  %3377 = vst.msk [vmem:[#allocation2 + $0xf8] sm:$0xff] %vm680_vm6, %v3345_v21 }
 0x52d   : > { %v5903_v10 = vld [vmem:[#allocation2 + $0xe8] sm:$0xff] }
 0x52e   : > { %3572 = vst.msk [vmem:[#allocation2 + $0xf0] sm:$0xff] %vm680_vm6, %v3540_v13  ;;  %v3663_v1 = vsel %vm680_vm6, %v5903_v10, 0.0 }
 0x52f   : > { %v3664_v63 = vadd.f32 %v3663_v1, %v3662_v16 }
 0x533   : > { %v3409_v14 = vld [vmem:[#allocation2 + $0xf8] sm:$0xff] }
 0x534   : > { %v3541_v46 = vadd.f32 %v3507_v4, %v3409_v14 }
 0x535   : > { %v5908_v36 = vld [vmem:[#allocation2 + $0xf0] sm:$0xff] }
 0x536   : > { %3573 = vst.msk [vmem:[#allocation2 + $0xf8] sm:$0xff] %vm680_vm6, %v3541_v46  ;;  %v3665_v8 = vsel %vm680_vm6, %v5908_v36, 0.0 }
 0x537   : > { %v3666_v27 = vadd.f32 %v3665_v8, %v3664_v63 }
 0x53d   : > { %v5914_v35 = vld [vmem:[#allocation2 + $0xf8] sm:$0xff] }
 0x53e   : > { %v3667_v9 = vsel %vm680_vm6, %v5914_v35, 0.0 }
 0x53f   : > { %v3668_v51 = vadd.f32 %v3667_v9, %v3666_v27 }
 0x541   : > { %v3669_v39 = vrot.slane %v3668_v51, 4 }
 0x543   : > { %v3670_v57 = vadd.f32 %v3669_v39, %v3668_v51 }
 0x545   : > { %v3671_v54 = vrot.slane %v3670_v57, 2 }
 0x547   : > { %v3672_v45 = vadd.f32 %v3671_v54, %v3670_v57 }
 0x549   : > { %v3673_v29 = vrot.slane %v3672_v45, 1 }
 0x54b   : > { %v3674_v53 = vadd.f32 %v3673_v29, %v3672_v45 }
 0x54d   : > { %v5918_v21 = vmul.f32 0.00390625, %v3674_v53 }
 0x54f   : > { %v5922_v40 = vsub.f32 %v5774_v25, %v5918_v21  ;;  %v5926_v17 = vsub.f32 %v5771_v31, %v5918_v21  ;;  %v5930_v60 = vsub.f32 %v5776_v52, %v5918_v21  ;;  %v5934_v13 = vsub.f32 %v5780_v30, %v5918_v21 }
 0x550   : > { %v5942_v25 = vsub.f32 %v5787_v55, %v5918_v21  ;;  %v5948_v52 = vsub.f32 %v5792_v11, %v5918_v21  ;;  %v5956_v41 = vsub.f32 %v5797_v6, %v5918_v21  ;;  %v5963_v11 = vsub.f32 %v5801_v5, %v5918_v21 }
 0x551   : > { %v3708_v42 = vmul.f32 %v5922_v40, %v5922_v40  ;;  %v3709_v0 = vmul.f32 %v5926_v17, %v5926_v17  ;;  %v3710_v31 = vmul.f32 %v5930_v60, %v5930_v60  ;;  %v3711_v30 = vmul.f32 %v5934_v13, %v5934_v13 }
 0x552   : > { %v3712_v55 = vmul.f32 %v5942_v25, %v5942_v25  ;;  %v3713_v14 = vmul.f32 %v5948_v52, %v5948_v52  ;;  %v5970_v6 = vsub.f32 %v5806_v47, %v5918_v21  ;;  %v3714_v34 = vmul.f32 %v5956_v41, %v5956_v41 }
 0x553   : > { %v3740_v19 = vsel %vm680_vm6, %v3708_v42, 0.0  ;;  %v3741_v12 = vsel %vm680_vm6, %v3709_v0, 0.0  ;;  %v3743_v58 = vsel %vm680_vm6, %v3710_v31, 0.0  ;;  %v3745_v18 = vsel %vm680_vm6, %v3711_v30, 0.0 }
 0x554   : > { %v3742_v2 = vadd.f32 %v3741_v12, %v3740_v19  ;;  %v3747_v28 = vsel %vm680_vm6, %v3712_v55, 0.0  ;;  %v5977_v5 = vsub.f32 %v5811_v24, %v5918_v21  ;;  %v3715_v1 = vmul.f32 %v5963_v11, %v5963_v11 }
 0x555   : > { %v3749_v16 = vsel %vm680_vm6, %v3713_v14, 0.0  ;;  %v5984_v47 = vsub.f32 %v5816_v15, %v5918_v21  ;;  %v3716_v63 = vmul.f32 %v5970_v6, %v5970_v6  ;;  %v3751_v27 = vsel %vm680_vm6, %v3714_v34, 0.0 }
 0x556   : > { %v3744_v4 = vadd.f32 %v3743_v58, %v3742_v2  ;;  %v5991_v24 = vsub.f32 %v5820_v50, %v5918_v21  ;;  %v3717_v51 = vmul.f32 %v5977_v5, %v5977_v5  ;;  %v3753_v39 = vsel %vm680_vm6, %v3715_v1, 0.0 }
 0x557   : > { %v5998_v15 = vsub.f32 %v5825_v49, %v5918_v21  ;;  %v3718_v54 = vmul.f32 %v5984_v47, %v5984_v47  ;;  %v3755_v45 = vsel %vm680_vm6, %v3716_v63, 0.0  ;;  %v6005_v50 = vsub.f32 %v5830_v38, %v5918_v21 }
 0x558   : > { %v3746_v46 = vadd.f32 %v3745_v18, %v3744_v4  ;;  %v3719_v53 = vmul.f32 %v5991_v24, %v5991_v24  ;;  %v3757_v42 = vsel %vm680_vm6, %v3717_v51, 0.0  ;;  %v6012_v49 = vsub.f32 %v5835_v56, %v5918_v21 }
 0x559   : > { %v3720_v31 = vmul.f32 %v5998_v15, %v5998_v15  ;;  %v3759_v30 = vsel %vm680_vm6, %v3718_v54, 0.0  ;;  %v6019_v38 = vsub.f32 %v5839_v37, %v5918_v21  ;;  %v3721_v12 = vmul.f32 %v6005_v50, %v6005_v50 }
 0x55a   : > { %v3748_v3 = vadd.f32 %v3747_v28, %v3746_v46  ;;  %v3761_v2 = vsel %vm680_vm6, %v3719_v53, 0.0  ;;  %v6026_v56 = vsub.f32 %v5844_v23, %v5918_v21  ;;  %v3722_v58 = vmul.f32 %v6012_v49, %v6012_v49 }
 0x55b   : > { %v3763_v4 = vsel %vm680_vm6, %v3720_v31, 0.0  ;;  %v6033_v37 = vsub.f32 %v5849_v43, %v5918_v21  ;;  %v3723_v18 = vmul.f32 %v6019_v38, %v6019_v38  ;;  %v3765_v46 = vsel %vm680_vm6, %v3721_v12, 0.0 }
 0x55c   : > { %v3750_v8 = vadd.f32 %v3749_v16, %v3748_v3  ;;  %v6040_v23 = vsub.f32 %v5854_v48, %v5918_v21  ;;  %v3724_v28 = vmul.f32 %v6026_v56, %v6026_v56  ;;  %v3767_v3 = vsel %vm680_vm6, %v3722_v58, 0.0 }
 0x55d   : > { %v6047_v43 = vsub.f32 %v5858_v33, %v5918_v21  ;;  %v3725_v16 = vmul.f32 %v6033_v37, %v6033_v37  ;;  %v6054_v48 = vsub.f32 %v5863_v32, %v5918_v21  ;;  %v6061_v33 = vsub.f32 %v5868_v26, %v5918_v21 }
 0x55e   : > { %v3752_v9 = vadd.f32 %v3751_v27, %v3750_v8  ;;  %v3769_v8 = vsel %vm680_vm6, %v3723_v18, 0.0  ;;  %v3726_v27 = vmul.f32 %v6040_v23, %v6040_v23  ;;  %v6068_v32 = vsub.f32 %v5873_v62, %v5918_v21 }
 0x55f   : > { %v6075_v26 = vsub.f32 %v5877_v61, %v5918_v21  ;;  %v6082_v62 = vsub.f32 %v5881_v59, %v5918_v21  ;;  %v6089_v61 = vsub.f32 %v5886_v44, %v5918_v21  ;;  %v6096_v59 = vsub.f32 %v5891_v22, %v5918_v21 }
 0x560   : > { %v3754_v57 = vadd.f32 %v3753_v39, %v3752_v9  ;;  %v3771_v9 = vsel %vm680_vm6, %v3724_v28, 0.0  ;;  %v3727_v39 = vmul.f32 %v6047_v43, %v6047_v43  ;;  %v6103_v44 = vsub.f32 %v5895_v20, %v5918_v21 }
 0x561   : > { %v6110_v22 = vsub.f32 %v5899_v7, %v5918_v21  ;;  %v6117_v20 = vsub.f32 %v5903_v10, %v5918_v21  ;;  %v6124_v7 = vsub.f32 %v5908_v36, %v5918_v21  ;;  %v6131_v10 = vsub.f32 %v5914_v35, %v5918_v21 }
 0x562   : > { %v3756_v29 = vadd.f32 %v3755_v45, %v3754_v57  ;;  %v3773_v57 = vsel %vm680_vm6, %v3725_v16, 0.0  ;;  %v3728_v45 = vmul.f32 %v6054_v48, %v6054_v48 }
 0x563   : > { %v3738_v36 = vmul.f32 %v6124_v7, %v6124_v7 }
 0x564   : > { %v3758_v0 = vadd.f32 %v3757_v42, %v3756_v29  ;;  %v3775_v29 = vsel %vm680_vm6, %v3726_v27, 0.0  ;;  %v3729_v42 = vmul.f32 %v6061_v33, %v6061_v33 }
 0x565   : > { %v3799_v35 = vsel %vm680_vm6, %v3738_v36, 0.0 }
 0x566   : > { %v3760_v19 = vadd.f32 %v3759_v30, %v3758_v0  ;;  %v3777_v0 = vsel %vm680_vm6, %v3727_v39, 0.0  ;;  %v3730_v30 = vmul.f32 %v6068_v32, %v6068_v32 }
 0x568   : > { %v3762_v55 = vadd.f32 %v3761_v2, %v3760_v19  ;;  %v3779_v19 = vsel %vm680_vm6, %v3728_v45, 0.0  ;;  %v3731_v2 = vmul.f32 %v6075_v26, %v6075_v26 }
 0x56a   : > { %v3764_v14 = vadd.f32 %v3763_v4, %v3762_v55  ;;  %v3781_v55 = vsel %vm680_vm6, %v3729_v42, 0.0  ;;  %v3732_v4 = vmul.f32 %v6082_v62, %v6082_v62  ;;  %v3739_v42 = vmul.f32 %v6131_v10, %v6131_v10 }
 0x56c   : > { %v3766_v34 = vadd.f32 %v3765_v46, %v3764_v14  ;;  %v3783_v14 = vsel %vm680_vm6, %v3730_v30, 0.0  ;;  %v3733_v46 = vmul.f32 %v6089_v61, %v6089_v61  ;;  %v3801_v30 = vsel %vm680_vm6, %v3739_v42, 0.0 }
 0x56e   : > { %v3768_v1 = vadd.f32 %v3767_v3, %v3766_v34  ;;  %v3785_v34 = vsel %vm680_vm6, %v3731_v2, 0.0  ;;  %v3734_v3 = vmul.f32 %v6096_v59, %v6096_v59 }
 0x570   : > { %v3770_v63 = vadd.f32 %v3769_v8, %v3768_v1  ;;  %v3787_v1 = vsel %vm680_vm6, %v3732_v4, 0.0  ;;  %v3735_v8 = vmul.f32 %v6103_v44, %v6103_v44 }
 0x572   : > { %v3772_v51 = vadd.f32 %v3771_v9, %v3770_v63  ;;  %v3789_v63 = vsel %vm680_vm6, %v3733_v46, 0.0  ;;  %v3736_v9 = vmul.f32 %v6110_v22, %v6110_v22 }
 0x574   : > { %v3774_v54 = vadd.f32 %v3773_v57, %v3772_v51  ;;  %v3791_v51 = vsel %vm680_vm6, %v3734_v3, 0.0  ;;  %v3737_v57 = vmul.f32 %v6117_v20, %v6117_v20 }
 0x576   : > { %v3776_v53 = vadd.f32 %v3775_v29, %v3774_v54  ;;  %v3793_v54 = vsel %vm680_vm6, %v3735_v8, 0.0  ;;  %v3795_v29 = vsel %vm680_vm6, %v3736_v9, 0.0 }
 0x578   : > { %v3778_v31 = vadd.f32 %v3777_v0, %v3776_v53  ;;  %v3797_v0 = vsel %vm680_vm6, %v3737_v57, 0.0  ;;  %v3853_v57 = vld [vmem:[%s4177_s17] sm:$0xff] }
 0x57a   : > { %v3780_v12 = vadd.f32 %v3779_v19, %v3778_v31 }
 0x57c   : > { %v3782_v58 = vadd.f32 %v3781_v55, %v3780_v12 }
 0x57e   : > { %v3784_v18 = vadd.f32 %v3783_v14, %v3782_v58 }
 0x580   : > { %v3786_v28 = vadd.f32 %v3785_v34, %v3784_v18 }
 0x582   : > { %v3788_v16 = vadd.f32 %v3787_v1, %v3786_v28 }
 0x584   : > { %v3790_v27 = vadd.f32 %v3789_v63, %v3788_v16 }
 0x586   : > { %v3792_v39 = vadd.f32 %v3791_v51, %v3790_v27 }
 0x588   : > { %v3794_v45 = vadd.f32 %v3793_v54, %v3792_v39  ;;  %v3854_v54 = vld [vmem:[%s4177_s17 + $0x8] sm:$0xff] }
 0x58a   : > { %v3796_v53 = vadd.f32 %v3795_v29, %v3794_v45  ;;  %v3855_v45 = vld [vmem:[%s4177_s17 + $0x10] sm:$0xff]  ;;  %v3856_v29 = vld [vmem:[%s4177_s17 + $0x18] sm:$0xff] }
 0x58c   : > { %v3798_v31 = vadd.f32 %v3797_v0, %v3796_v53 }
 0x58e   : > { %v3800_v21 = vadd.f32 %v3799_v35, %v3798_v31  ;;  %v3859_v31 = vld [vmem:[%s4177_s17 + $0x30] sm:$0xff] }
 0x590   : > { %v3802_v19 = vadd.f32 %v3801_v30, %v3800_v21  ;;  %v3860_v21 = vld [vmem:[%s4177_s17 + $0x38] sm:$0xff] }
 0x592   : > { %v3803_v12 = vrot.slane %v3802_v19, 4 }
 0x594   : > { %v3804_v2 = vadd.f32 %v3803_v12, %v3802_v19  ;;  %v3861_v19 = vld [vmem:[%s4177_s17 + $0x40] sm:$0xff] }
 0x596   : > { %v3805_v55 = vrot.slane %v3804_v2, 2 }
 0x598   : > { %v3806_v58 = vadd.f32 %v3805_v55, %v3804_v2  ;;  %v3862_v2 = vld [vmem:[%s4177_s17 + $0x48] sm:$0xff] }
 0x59a   : > { %v3807_v4 = vrot.slane %v3806_v58, 1 }
 0x59c   : > { %v3808_v14 = vadd.f32 %v3807_v4, %v3806_v58  ;;  %v3863_v58 = vld [vmem:[%s4177_s17 + $0x50] sm:$0xff] }
 0x59e   : > { %v3809_v18 = vmul.f32 0.00390625, %v3808_v14  ;;  %v3864_v14 = vld [vmem:[%s4177_s17 + $0x58] sm:$0xff] }
 0x5a0   : > { %v3810_v46 = vadd.f32 1e-05, %v3809_v18 }
 0x5a2   : > { %4128 = vrsqrt.f32 %v3810_v46  ;;  %vm3817_vm13 = vweird.f32 %v3810_v46 }
 0x5a8   : > { %v4129_v34 = vpop.eup %4128 }
 0x5a9   : > { %v3812_v28 = vmul.f32 %v4129_v34, %v3810_v46  ;;  %vm3818_vm12 = vweird.f32 %v4129_v34  ;;  %v3865_v46 = vld [vmem:[%s4177_s17 + $0x60] sm:$0xff] }
 0x5aa   : > { %vm3819_vm14 = vmor %vm3817_vm13, %vm3818_vm12 }
 0x5ab   : > { %v3813_v3 = vmul.f32 %v4129_v34, %v3812_v28  ;;  %v3866_v28 = vld [vmem:[%s4177_s17 + $0x68] sm:$0xff] }
 0x5ad   : > { %v3814_v1 = vmul.f32 0.5, %v3813_v3 }
 0x5af   : > { %v3815_v16 = vsub.f32 1.5, %v3814_v1  ;;  %v3867_v1 = vld [vmem:[%s4177_s17 + $0x70] sm:$0xff] }
 0x5b1   : > { %v3816_v8 = vmul.f32 %v4129_v34, %v3815_v16 }
 0x5b3   : > { %v6144_v63 = vsel %vm3819_vm14, %v4129_v34, %v3816_v8  ;;  %v3868_v8 = vld [vmem:[%s4177_s17 + $0x78] sm:$0xff] }
 0x5b4   : > { %v3821_v27 = vmul.f32 %v6144_v63, %v5922_v40  ;;  %v3822_v9 = vmul.f32 %v6144_v63, %v5926_v17  ;;  %v3823_v51 = vmul.f32 %v6144_v63, %v5930_v60  ;;  %v3824_v39 = vmul.f32 %v6144_v63, %v5934_v13  ;;  %v3857_v17 = vld [vmem:[%s4177_s17 + $0x20] sm:$0xff]  ;;  %v3858_v13 = vld [vmem:[%s4177_s17 + $0x28] sm:$0xff] }
 0x5b5   : > { %v3825_v36 = vmul.f32 %v6144_v63, %v5942_v25  ;;  %v3826_v40 = vmul.f32 %v6144_v63, %v5948_v52  ;;  %v3827_v60 = vmul.f32 %v6144_v63, %v5956_v41  ;;  %v3828_v0 = vmul.f32 %v6144_v63, %v5963_v11 }
 0x5b6   : > { %v3885_v25 = vadd.f32 %v3853_v57, %v3821_v27  ;;  %v3886_v53 = vadd.f32 %v3854_v54, %v3822_v9  ;;  %v3887_v42 = vadd.f32 %v3855_v45, %v3823_v51  ;;  %v3888_v35 = vadd.f32 %v3856_v29, %v3824_v39  ;;  %v3869_v9 = vld [vmem:[%s4177_s17 + $0x80] sm:$0xff]  ;;  %v3870_v39 = vld [vmem:[%s4177_s17 + $0x88] sm:$0xff]  ;;  %v3871_v54 = vld [vmem:[%s4177_s17 + $0x90] sm:$0xff] }
 0x5b7   : > { %v3829_v52 = vmul.f32 %v6144_v63, %v5970_v6  ;;  %v3889_v30 = vadd.f32 %v3857_v17, %v3825_v36  ;;  %v3830_v41 = vmul.f32 %v6144_v63, %v5977_v5  ;;  %v3890_v12 = vadd.f32 %v3858_v13, %v3826_v40  ;;  %v3872_v36 = vld [vmem:[%s4177_s17 + $0x98] sm:$0xff]  ;;  %v3873_v40 = vld [vmem:[%s4177_s17 + $0xa0] sm:$0xff] }
 0x5b8   : > { %3917 = vst.msk [vmem:[%s6165_s8] sm:$0xff] %vm680_vm6, %v3885_v25  ;;  %v3831_v11 = vmul.f32 %v6144_v63, %v5984_v47  ;;  %v3891_v6 = vadd.f32 %v3859_v31, %v3827_v60  ;;  %v3832_v55 = vmul.f32 %v6144_v63, %v5991_v24  ;;  %v3892_v5 = vadd.f32 %v3860_v21, %v3828_v0  ;;  %v3874_v60 = vld [vmem:[%s4177_s17 + $0xa8] sm:$0xff]  ;;  %v3875_v25 = vld [vmem:[%s4177_s17 + $0xb0] sm:$0xff]  ;;  %v3877_v31 = vld [vmem:[%s4177_s17 + $0xc0] sm:$0xff] }
 0x5b9   : > { %3918 = vst.msk [vmem:[%s6165_s8 + $0x8] sm:$0xff] %vm680_vm6, %v3886_v53  ;;  %v3833_v4 = vmul.f32 %v6144_v63, %v5998_v15  ;;  %v3893_v47 = vadd.f32 %v3861_v19, %v3829_v52  ;;  %v3834_v18 = vmul.f32 %v6144_v63, %v6005_v50  ;;  %v3894_v24 = vadd.f32 %v3862_v2, %v3830_v41  ;;  %v3878_v52 = vld [vmem:[%s4177_s17 + $0xc8] sm:$0xff] }
 0x5ba   : > { %3919 = vst.msk [vmem:[%s6165_s8 + $0x10] sm:$0xff] %vm680_vm6, %v3887_v42  ;;  %v3835_v34 = vmul.f32 %v6144_v63, %v6012_v49  ;;  %v3895_v15 = vadd.f32 %v3863_v58, %v3831_v11  ;;  %v3836_v3 = vmul.f32 %v6144_v63, %v6019_v38  ;;  %v3896_v50 = vadd.f32 %v3864_v14, %v3832_v55  ;;  %v3876_v42 = vld [vmem:[%s4177_s17 + $0xb8] sm:$0xff]  ;;  %v3883_v55 = vld [vmem:[%s4177_s17 + $0xf0] sm:$0xff] }
 0x5bb   : > { %3920 = vst.msk [vmem:[%s6165_s8 + $0x18] sm:$0xff] %vm680_vm6, %v3888_v35  ;;  %v3837_v16 = vmul.f32 %v6144_v63, %v6026_v56  ;;  %v3897_v49 = vadd.f32 %v3865_v46, %v3833_v4  ;;  %v3838_v27 = vmul.f32 %v6144_v63, %v6033_v37  ;;  %v3898_v38 = vadd.f32 %v3866_v28, %v3834_v18 }
 0x5bc   : > { %3921 = vst.msk [vmem:[%s6165_s8 + $0x20] sm:$0xff] %vm680_vm6, %v3889_v30  ;;  %v3839_v51 = vmul.f32 %v6144_v63, %v6040_v23  ;;  %v3899_v56 = vadd.f32 %v3867_v1, %v3835_v34  ;;  %v3840_v57 = vmul.f32 %v6144_v63, %v6047_v43  ;;  %v3900_v37 = vadd.f32 %v3868_v8, %v3836_v3  ;;  %v3879_v30 = vld [vmem:[%s4177_s17 + $0xd0] sm:$0xff] }
 0x5bd   : > { %3922 = vst.msk [vmem:[%s6165_s8 + $0x28] sm:$0xff] %vm680_vm6, %v3890_v12  ;;  %v3841_v45 = vmul.f32 %v6144_v63, %v6054_v48  ;;  %v3901_v23 = vadd.f32 %v3869_v9, %v3837_v16  ;;  %v3842_v29 = vmul.f32 %v6144_v63, %v6061_v33  ;;  %v3902_v43 = vadd.f32 %v3870_v39, %v3838_v27 }
 0x5be   : > { %3923 = vst.msk [vmem:[%s6165_s8 + $0x30] sm:$0xff] %vm680_vm6, %v3891_v6  ;;  %v3843_v17 = vmul.f32 %v6144_v63, %v6068_v32  ;;  %v3903_v48 = vadd.f32 %v3871_v54, %v3839_v51  ;;  %v3844_v13 = vmul.f32 %v6144_v63, %v6075_v26  ;;  %v3904_v33 = vadd.f32 %v3872_v36, %v3840_v57 }
 0x5bf   : > { %3924 = vst.msk [vmem:[%s6165_s8 + $0x38] sm:$0xff] %vm680_vm6, %v3892_v5  ;;  %v3845_v53 = vmul.f32 %v6144_v63, %v6082_v62  ;;  %v3905_v32 = vadd.f32 %v3873_v40, %v3841_v45  ;;  %v3846_v0 = vmul.f32 %v6144_v63, %v6089_v61  ;;  %v3906_v26 = vadd.f32 %v3874_v60, %v3842_v29  ;;  %v3884_v5 = vld [vmem:[%s4177_s17 + $0xf8] sm:$0xff] }
 0x5c0   : > { %3925 = vst.msk [vmem:[%s6165_s8 + $0x40] sm:$0xff] %vm680_vm6, %v3893_v47  ;;  %v3847_v35 = vmul.f32 %v6144_v63, %v6096_v59  ;;  %v3907_v62 = vadd.f32 %v3875_v25, %v3843_v17  ;;  %v3848_v21 = vmul.f32 %v6144_v63, %v6103_v44  ;;  %v3908_v61 = vadd.f32 %v3876_v42, %v3844_v13  ;;  %v3880_v59 = vld [vmem:[%s4177_s17 + $0xd8] sm:$0xff]  ;;  %v3881_v44 = vld [vmem:[%s4177_s17 + $0xe0] sm:$0xff] }
 0x5c1   : > { %3926 = vst.msk [vmem:[%s6165_s8 + $0x48] sm:$0xff] %vm680_vm6, %v3894_v24  ;;  %v3849_v41 = vmul.f32 %v6144_v63, %v6110_v22  ;;  %v3909_v19 = vadd.f32 %v3877_v31, %v3845_v53  ;;  %v3850_v12 = vmul.f32 %v6144_v63, %v6117_v20  ;;  %v3910_v11 = vadd.f32 %v3878_v52, %v3846_v0  ;;  %v3882_v22 = vld [vmem:[%s4177_s17 + $0xe8] sm:$0xff] }
 0x5c2   : > { %3927 = vst.msk [vmem:[%s6165_s8 + $0x50] sm:$0xff] %vm680_vm6, %v3895_v15  ;;  %v3851_v2 = vmul.f32 %v6144_v63, %v6124_v7  ;;  %v3911_v6 = vadd.f32 %v3879_v30, %v3847_v35  ;;  %v3852_v20 = vmul.f32 %v6144_v63, %v6131_v10  ;;  %v3912_v58 = vadd.f32 %v3880_v59, %v3848_v21 }
 0x5c3   : > { %3928 = vst.msk [vmem:[%s6165_s8 + $0x58] sm:$0xff] %vm680_vm6, %v3896_v50  ;;  %v3913_v4 = vadd.f32 %v3881_v44, %v3849_v41  ;;  %v3914_v7 = vadd.f32 %v3882_v22, %v3850_v12 }
 0x5c4   : > { %3929 = vst.msk [vmem:[%s6165_s8 + $0x60] sm:$0xff] %vm680_vm6, %v3897_v49  ;;  %v3915_v14 = vadd.f32 %v3883_v55, %v3851_v2  ;;  %v3916_v47 = vadd.f32 %v3884_v5, %v3852_v20 }
 0x5c5   : > { %3930 = vst.msk [vmem:[%s6165_s8 + $0x68] sm:$0xff] %vm680_vm6, %v3898_v38 }
 0x5c6   : > { %3931 = vst.msk [vmem:[%s6165_s8 + $0x70] sm:$0xff] %vm680_vm6, %v3899_v56 }
 0x5c7   : > { %3932 = vst.msk [vmem:[%s6165_s8 + $0x78] sm:$0xff] %vm680_vm6, %v3900_v37 }
 0x5c8   : > { %3933 = vst.msk [vmem:[%s6165_s8 + $0x80] sm:$0xff] %vm680_vm6, %v3901_v23 }
 0x5c9   : > { %3934 = vst.msk [vmem:[%s6165_s8 + $0x88] sm:$0xff] %vm680_vm6, %v3902_v43 }
 0x5ca   : > { %3935 = vst.msk [vmem:[%s6165_s8 + $0x90] sm:$0xff] %vm680_vm6, %v3903_v48 }
 0x5cb   : > { %3936 = vst.msk [vmem:[%s6165_s8 + $0x98] sm:$0xff] %vm680_vm6, %v3904_v33 }
 0x5cc   : > { %3937 = vst.msk [vmem:[%s6165_s8 + $0xa0] sm:$0xff] %vm680_vm6, %v3905_v32 }
 0x5cd   : > { %3938 = vst.msk [vmem:[%s6165_s8 + $0xa8] sm:$0xff] %vm680_vm6, %v3906_v26 }
 0x5ce   : > { %3939 = vst.msk [vmem:[%s6165_s8 + $0xb0] sm:$0xff] %vm680_vm6, %v3907_v62 }
 0x5cf   : > { %3940 = vst.msk [vmem:[%s6165_s8 + $0xb8] sm:$0xff] %vm680_vm6, %v3908_v61 }
 0x5d0   : > { %3941 = vst.msk [vmem:[%s6165_s8 + $0xc0] sm:$0xff] %vm680_vm6, %v3909_v19 }
 0x5d1   : > { %3942 = vst.msk [vmem:[%s6165_s8 + $0xc8] sm:$0xff] %vm680_vm6, %v3910_v11 }
 0x5d2   : > { %3943 = vst.msk [vmem:[%s6165_s8 + $0xd0] sm:$0xff] %vm680_vm6, %v3911_v6 }
 0x5d3   : > { %3944 = vst.msk [vmem:[%s6165_s8 + $0xd8] sm:$0xff] %vm680_vm6, %v3912_v58 }
 0x5d4   : > { %3945 = vst.msk [vmem:[%s6165_s8 + $0xe0] sm:$0xff] %vm680_vm6, %v3913_v4 }
 0x5d5   : > { %3946 = vst.msk [vmem:[%s6165_s8 + $0xe8] sm:$0xff] %vm680_vm6, %v3914_v7 }
 0x5d6   : > { %3947 = vst.msk [vmem:[%s6165_s8 + $0xf0] sm:$0xff] %vm680_vm6, %v3915_v14 }
 0x5d7   : > { %3948 = vst.msk [vmem:[%s6165_s8 + $0xf8] sm:$0xff] %vm680_vm6, %v3916_v47 }
 0x5d8 PF: > { %s13_s12 = sadd.s32 1, %s4136_s12  }
 0x5d9   : > { %p10_p4 = scmp.ge.s32.totalorder %s13_s12, 4  }
 0x5db   :  { %12 = sbr.rel (!%p10_p4) target bundleno = 1 (0x1), region = 74 }

</bundles_post_ra>
